<compile_context>
chip_gen: v5e
topology: v5e:2x2
jax: 0.10.0
libtpu: 0.0.40
codegen_flags: <defaults>
</compile_context>

<pallas_src>
import functools

import jax
import jax.numpy as jnp
from jax.experimental import pallas as pl
from jax.experimental.pallas import tpu as pltpu


_TM = 512                      # lane tile over M = N*Ho*Wo (multiple of 128)
_VMEM_LIMIT = 32 * 1024 * 1024  # explicit scoped-VMEM cap (safe on v5e/v6e/v7x)


# ---------------------------------------------------------------------------
# Pallas kernels (hot paths)
# ---------------------------------------------------------------------------
def _conv_bn_act_kernel(a_ref, w_ref, shift_ref, o_ref, *, relu):
    # out[Cout, TM] = (W_scaled[Cout, K] @ patches[K, TM]) + shift  (+ ReLU)
    # W has the frozen-BN scale folded in; operands bf16, accumulate f32 (MXU).
    acc = jnp.dot(w_ref[...], a_ref[...], preferred_element_type=jnp.float32)
    y = acc + shift_ref[...]
    if relu:
        y = jnp.maximum(y, 0.0)
    o_ref[...] = y.astype(o_ref.dtype)


def _conv_bn_res_relu_kernel(a_ref, w_ref, shift_ref, res_ref, o_ref):
    # Second conv of a BasicBlock: fused residual add + ReLU epilogue.
    acc = jnp.dot(w_ref[...], a_ref[...], preferred_element_type=jnp.float32)
    y = acc + shift_ref[...] + res_ref[...]
    o_ref[...] = jnp.maximum(y, 0.0).astype(o_ref.dtype)


def _maxpool9_kernel(t0, t1, t2, t3, t4, t5, t6, t7, t8, o_ref):
    # Running max over the 9 window taps, all tiles lane-dense over M.
    m = jnp.maximum(jnp.maximum(jnp.maximum(t0[...], t1[...]),
                                jnp.maximum(t2[...], t3[...])),
                    jnp.maximum(jnp.maximum(t4[...], t5[...]),
                                jnp.maximum(t6[...], t7[...])))
    o_ref[...] = jnp.maximum(m, t8[...])


def _avgpool_kernel(x_ref, o_ref):
    # x: (C, N, H*W) -> mean over spatial -> (C, N)
    o_ref[...] = jnp.mean(x_ref[...], axis=-1)


# ---------------------------------------------------------------------------
# Pallas wrappers
# ---------------------------------------------------------------------------
def _conv_matmul(a_bf16, w_bf16, shift, residual=None, *, relu):
    """a: (K, M) bf16 patches, w: (Cout, K) bf16 (BN-scale folded),
    shift: (Cout, 1) f32, residual: optional (Cout, M) f32 -> (Cout, M) f32."""
    K, M = a_bf16.shape
    Cout = w_bf16.shape[0]
    tm = min(_TM, M)                       # full-dim block if M is small
    grid = (pl.cdiv(M, tm),)

    a_spec = pl.BlockSpec((K, tm), lambda i: (0, i))
    w_spec = pl.BlockSpec((Cout, K), lambda i: (0, 0))
    s_spec = pl.BlockSpec((Cout, 1), lambda i: (0, 0))
    o_spec = pl.BlockSpec((Cout, tm), lambda i: (0, i))

    bytes_accessed = (a_bf16.size * 2 + w_bf16.size * 2 + shift.size * 4
                      + M * Cout * 4)
    if residual is not None:
        bytes_accessed += residual.size * 4
        kernel = _conv_bn_res_relu_kernel
        in_specs = [a_spec, w_spec, s_spec,
                    pl.BlockSpec((Cout, tm), lambda i: (0, i))]
        args = (a_bf16, w_bf16, shift, residual)
    else:
        kernel = functools.partial(_conv_bn_act_kernel, relu=relu)
        in_specs = [a_spec, w_spec, s_spec]
        args = (a_bf16, w_bf16, shift)

    return pl.pallas_call(
        kernel,
        grid=grid,
        in_specs=in_specs,
        out_specs=o_spec,
        out_shape=jax.ShapeDtypeStruct((Cout, M), jnp.float32),
        compiler_params=pltpu.CompilerParams(
            dimension_semantics=("parallel",),
            vmem_limit_bytes=_VMEM_LIMIT),
        cost_estimate=pl.CostEstimate(
            flops=2 * M * K * Cout,
            transcendentals=0,
            bytes_accessed=bytes_accessed),
    )(*args)


def _im2col_cm(x, kh, kw, stride, pad):
    """Channel-major im2col.  x: (C, N, H, W) -> (C*kh*kw, N*Ho*Wo) with
    channel slowest / tap fastest, matching w.reshape(Cout, Cin*kh*kw)."""
    C, N, H, W = x.shape
    Ho = (H + 2 * pad - kh) // stride + 1
    Wo = (W + 2 * pad - kw) // stride + 1
    if kh == 1 and kw == 1 and pad == 0:     # 1x1 conv: no patch expansion
        sl = x[:, :, ::stride, ::stride]
        return sl.reshape(C, N * Ho * Wo), Ho, Wo
    xp = jnp.pad(x, ((0, 0), (0, 0), (pad, pad), (pad, pad)))
    taps = []
    for di in range(kh):
        for dj in range(kw):
            sl = jax.lax.slice(
                xp, (0, 0, di, dj),
                (C, N, di + (Ho - 1) * stride + 1, dj + (Wo - 1) * stride + 1),
                (1, 1, stride, stride))     # (C, N, Ho, Wo)
            taps.append(sl)
    col = jnp.stack(taps, axis=1)            # (C, kh*kw, N, Ho, Wo)
    return col.reshape(C * kh * kw, N * Ho * Wo), Ho, Wo


def conv_bn(x, w, bn_scale, bn_shift, *, stride, pad, relu, residual=None):
    """Conv2d (PyTorch (Cout,Cin,kh,kw) weights, no bias) + frozen BN (folded)
    + optional fused residual-add+ReLU.  Channel-major:
    x: (Cin, N, H, W) f32 -> (Cout, N, Ho, Wo) f32."""
    Cout, Cin, kh, kw = w.shape
    N = x.shape[1]
    # bf16 patches for the MXU (halves the dominant HBM stream); epilogue f32.
    a, Ho, Wo = _im2col_cm(x.astype(jnp.bfloat16), kh, kw, stride, pad)
    w_mat = (w.reshape(Cout, Cin * kh * kw)
             * bn_scale[:, None]).astype(jnp.bfloat16)
    shift = bn_shift.reshape(Cout, 1).astype(jnp.float32)
    res = None
    if residual is not None:
        res = residual.reshape(Cout, N * Ho * Wo)
    out = _conv_matmul(a, w_mat, shift, res, relu=relu)
    return out.reshape(Cout, N, Ho, Wo)


def maxpool_3x3_s2(x):
    """MaxPool2d(kernel=3, stride=2, padding=1), channel-major (C, N, H, W)."""
    C, N, H, W = x.shape
    k, stride, pad = 3, 2, 1
    Ho = (H + 2 * pad - k) // stride + 1
    Wo = (W + 2 * pad - k) // stride + 1
    xp = jnp.pad(x, ((0, 0), (0, 0), (pad, pad), (pad, pad)),
                 constant_values=-jnp.inf)
    M = N * Ho * Wo
    taps = []
    for di in range(k):
        for dj in range(k):
            sl = jax.lax.slice(
                xp, (0, 0, di, dj),
                (C, N, di + (Ho - 1) * stride + 1, dj + (Wo - 1) * stride + 1),
                (1, 1, stride, stride))
            taps.append(sl.reshape(C, M))
    tm = min(_TM, M)
    spec = pl.BlockSpec((C, tm), lambda i: (0, i))
    out = pl.pallas_call(
        _maxpool9_kernel,
        grid=(pl.cdiv(M, tm),),
        in_specs=[spec] * 9,
        out_specs=spec,
        out_shape=jax.ShapeDtypeStruct((C, M), jnp.float32),
        compiler_params=pltpu.CompilerParams(
            dimension_semantics=("parallel",),
            vmem_limit_bytes=_VMEM_LIMIT),
    )(*taps)
    return out.reshape(C, N, Ho, Wo)


def global_avgpool(x):
    """(C, N, H, W) -> (N, C) globally average-pooled features."""
    C, N, H, W = x.shape
    xr = x.reshape(C, N, H * W)
    out = pl.pallas_call(
        _avgpool_kernel,
        grid=(1,),
        in_specs=[pl.BlockSpec((C, N, H * W), lambda i: (0, 0, 0))],
        out_specs=pl.BlockSpec((C, N), lambda i: (0, 0)),
        out_shape=jax.ShapeDtypeStruct((C, N), jnp.float32),
    )(xr)
    return out.T


# ---------------------------------------------------------------------------
# Deterministic parameter init (synthetic weights; ResNet-18 topology with
# scaled-down widths)
# ---------------------------------------------------------------------------
def _bn_params(key, c, eps=1e-5):
    k1, k2, k3, k4 = jax.random.split(key, 4)
    gamma = jax.random.uniform(k1, (c,), minval=0.5, maxval=1.5)
    beta = jax.random.normal(k2, (c,)) * 0.1
    running_mean = jax.random.normal(k3, (c,)) * 0.1
    running_var = jax.random.uniform(k4, (c,), minval=0.5, maxval=1.5)
    # Frozen BN (eval): y = (x - mean)/sqrt(var+eps)*gamma + beta  -> affine
    scale = gamma / jnp.sqrt(running_var + eps)
    shift = beta - running_mean * scale
    return scale.astype(jnp.float32), shift.astype(jnp.float32)


def _conv_w(key, cout, cin, kh, kw):
    fan_in = cin * kh * kw
    std = (2.0 / fan_in) ** 0.5
    return (jax.random.normal(key, (cout, cin, kh, kw)) * std).astype(jnp.float32)


def init_urresnet_params(key, widths=(8, 16, 32, 64), in_ch=3):
    keys = iter(jax.random.split(key, 128))
    params = {
        "conv1_w": _conv_w(next(keys), widths[0], in_ch, 7, 7),
        "bn1": _bn_params(next(keys), widths[0]),
    }
    layers = []
    c_in = widths[0]
    for li, c_out in enumerate(widths):
        blocks = []
        for bi in range(2):  # 2 BasicBlocks per stage (ResNet-18)
            stride = 2 if (li > 0 and bi == 0) else 1
            blk = {
                "conv1_w": _conv_w(next(keys), c_out, c_in if bi == 0 else c_out, 3, 3),
                "bn1": _bn_params(next(keys), c_out),
                "conv2_w": _conv_w(next(keys), c_out, c_out, 3, 3),
                "bn2": _bn_params(next(keys), c_out),
            }
            if bi == 0 and (stride != 1 or c_in != c_out):
                blk["down_w"] = _conv_w(next(keys), c_out, c_in, 1, 1)
                blk["down_bn"] = _bn_params(next(keys), c_out)
            blocks.append(blk)
        layers.append(blocks)
        c_in = c_out
    params["layers"] = layers
    return params


# ---------------------------------------------------------------------------
# URResNet.forward (eval semantics: FrozenBN; dropout is identity at inference)
# ---------------------------------------------------------------------------
def urresnet_forward(params, x_nchw):
    # Internal channel-major layout (C, N, H, W): the big N*H*W axis maps to
    # lanes for every kernel, keeping loads/stores lane-dense.
    x = jnp.transpose(x_nchw, (1, 0, 2, 3)).astype(jnp.float32)
    # stem: conv1 -> bn1 -> relu -> maxpool
    s, b = params["bn1"]
    x = conv_bn(x, params["conv1_w"], s, b, stride=2, pad=3, relu=True)
    x = maxpool_3x3_s2(x)
    # layer1..layer4 (BasicBlocks), residual add+ReLU fused into conv2 epilogue
    for li, blocks in enumerate(params["layers"]):
        for bi, blk in enumerate(blocks):
            stride = 2 if (li > 0 and bi == 0) else 1
            s1, b1 = blk["bn1"]
            s2, b2 = blk["bn2"]
            out = conv_bn(x, blk["conv1_w"], s1, b1, stride=stride, pad=1,
                          relu=True)
            if "down_w" in blk:
                sd, bd = blk["down_bn"]
                identity = conv_bn(x, blk["down_w"], sd, bd, stride=stride,
                                   pad=0, relu=False)
            else:
                identity = x
            x = conv_bn(out, blk["conv2_w"], s2, b2, stride=1, pad=1,
                        relu=True, residual=identity)
    feat = global_avgpool(x)  # avgpool + flatten; fc == Identity
    # self.dropout(.): identity at inference / resnet_dropout=0.0
    # TODO(synk): train-mode stochastic Dropout (needs RNG plumbing) not modeled.
    return feat


if __name__ == "__main__":
    key = jax.random.PRNGKey(0)
    pkey, xkey = jax.random.split(key)
    params = init_urresnet_params(pkey)
    # Small stand-in for the (3, 224, 224) input the module asserts on.
    x = jax.random.normal(xkey, (2, 3, 32, 32), dtype=jnp.float32)
    out = jax.jit(urresnet_forward)(params, x)
    out = jax.block_until_ready(out)
    assert out.shape == (2, 64), out.shape
    assert jnp.all(jnp.isfinite(out))
    print("KERNEL_OK")
</pallas_src>

<mosaic_0001>
module attributes {stable_mosaic.version = 11 : i64} {
  func.func @_conv_bn_act_kernel(%arg0: i32, %arg1: memref<147x512xbf16, #tpu.memory_space<vmem>>, %arg2: memref<8x147xbf16, #tpu.memory_space<vmem>>, %arg3: memref<8x1xf32, #tpu.memory_space<vmem>>, %arg4: memref<8x512xf32, #tpu.memory_space<vmem>>) attributes {dimension_semantics = [#tpu.dimension_semantics<parallel>], iteration_bounds = array<i64: 1>, scalar_prefetch = 0 : i64, scratch_operands = 0 : i64, tpu.core_type = #tpu.core_type<tc>, window_params = [{transform_indices = @transform_0, window_bounds = array<i64: 147, 512>}, {pipeline_mode = #tpu.pipeline_mode<synchronous>, transform_indices = @transform_1, window_bounds = array<i64: 8, 147>}, {pipeline_mode = #tpu.pipeline_mode<synchronous>, transform_indices = @transform_2, window_bounds = array<i64: 8, 1>}, {transform_indices = @transform_3, window_bounds = array<i64: 8, 512>}]} {
    %c0 = arith.constant 0 : index
    %c0_0 = arith.constant 0 : index
    %0 = vector.load %arg2[%c0, %c0_0] : memref<8x147xbf16, #tpu.memory_space<vmem>>, vector<8x147xbf16>
    %c0_1 = arith.constant 0 : index
    %c0_2 = arith.constant 0 : index
    %1 = vector.load %arg1[%c0_1, %c0_2] : memref<147x512xbf16, #tpu.memory_space<vmem>>, vector<147x512xbf16>
    %cst = arith.constant dense<0.000000e+00> : vector<8x512xf32>
    %2 = tpu.matmul %0, %1, %cst {dimension_numbers = #tpu.dot_dimension_numbers<[1], [0], [0], [1], [0, 0, 1, 1], [], []>} : vector<8x147xbf16>, vector<147x512xbf16>, vector<8x512xf32> -> vector<8x512xf32>
    %c0_3 = arith.constant 0 : index
    %c0_4 = arith.constant 0 : index
    %3 = vector.load %arg3[%c0_3, %c0_4] : memref<8x1xf32, #tpu.memory_space<vmem>>, vector<8x1xf32>
    %4 = vector.broadcast %3 : vector<8x1xf32> to vector<8x512xf32>
    %5 = arith.addf %2, %4 : vector<8x512xf32>
    %cst_5 = arith.constant 0.000000e+00 : f32
    %6 = vector.broadcast %cst_5 : f32 to vector<8x512xf32>
    %7 = arith.maximumf %5, %6 : vector<8x512xf32>
    %c0_6 = arith.constant 0 : index
    %c0_7 = arith.constant 0 : index
    %8 = vector.load %arg4[%c0_6, %c0_7] : memref<8x512xf32, #tpu.memory_space<vmem>>, vector<8x512xf32>
    tpu.vector_store %arg4[%c0_6, %c0_7], %7 {strides = array<i32>} : memref<8x512xf32, #tpu.memory_space<vmem>>, vector<8x512xf32>,
    return
  }
  func.func @transform_0(%arg0: i32) -> (i32, i32) {
    %c0_i32 = arith.constant 0 : i32
    %c0_i32_0 = arith.constant 0 : i32
    return %c0_i32, %arg0 : i32, i32
  }
  func.func @transform_1(%arg0: i32) -> (i32, i32) {
    %c0_i32 = arith.constant 0 : i32
    %c0_i32_0 = arith.constant 0 : i32
    %c0_i32_1 = arith.constant 0 : i32
    return %c0_i32, %c0_i32_0 : i32, i32
  }
  func.func @transform_2(%arg0: i32) -> (i32, i32) {
    %c0_i32 = arith.constant 0 : i32
    %c0_i32_0 = arith.constant 0 : i32
    %c0_i32_1 = arith.constant 0 : i32
    return %c0_i32, %c0_i32_0 : i32, i32
  }
  func.func @transform_3(%arg0: i32) -> (i32, i32) {
    %c0_i32 = arith.constant 0 : i32
    %c0_i32_0 = arith.constant 0 : i32
    return %c0_i32, %arg0 : i32, i32
  }
}

module attributes {stable_mosaic.version = 11 : i64} {
  func.func @_maxpool9_kernel(%arg0: i32, %arg1: memref<8x128xf32, #tpu.memory_space<vmem>>, %arg2: memref<8x128xf32, #tpu.memory_space<vmem>>, %arg3: memref<8x128xf32, #tpu.memory_space<vmem>>, %arg4: memref<8x128xf32, #tpu.memory_space<vmem>>, %arg5: memref<8x128xf32, #tpu.memory_space<vmem>>, %arg6: memref<8x128xf32, #tpu.memory_space<vmem>>, %arg7: memref<8x128xf32, #tpu.memory_space<vmem>>, %arg8: memref<8x128xf32, #tpu.memory_space<vmem>>, %arg9: memref<8x128xf32, #tpu.memory_space<vmem>>, %arg10: memref<8x128xf32, #tpu.memory_space<vmem>>) attributes {dimension_semantics = [#tpu.dimension_semantics<parallel>], iteration_bounds = array<i64: 1>, scalar_prefetch = 0 : i64, scratch_operands = 0 : i64, tpu.core_type = #tpu.core_type<tc>, window_params = [{transform_indices = @transform_0, window_bounds = array<i64: 8, 128>}, {transform_indices = @transform_1, window_bounds = array<i64: 8, 128>}, {transform_indices = @transform_2, window_bounds = array<i64: 8, 128>}, {transform_indices = @transform_3, window_bounds = array<i64: 8, 128>}, {transform_indices = @transform_4, window_bounds = array<i64: 8, 128>}, {transform_indices = @transform_5, window_bounds = array<i64: 8, 128>}, {transform_indices = @transform_6, window_bounds = array<i64: 8, 128>}, {transform_indices = @transform_7, window_bounds = array<i64: 8, 128>}, {transform_indices = @transform_8, window_bounds = array<i64: 8, 128>}, {transform_indices = @transform_9, window_bounds = array<i64: 8, 128>}]} {
    %c0 = arith.constant 0 : index
    %c0_0 = arith.constant 0 : index
    %0 = vector.load %arg1[%c0, %c0_0] : memref<8x128xf32, #tpu.memory_space<vmem>>, vector<8x128xf32>
    %c0_1 = arith.constant 0 : index
    %c0_2 = arith.constant 0 : index
    %1 = vector.load %arg2[%c0_1, %c0_2] : memref<8x128xf32, #tpu.memory_space<vmem>>, vector<8x128xf32>
    %2 = arith.maximumf %0, %1 : vector<8x128xf32>
    %c0_3 = arith.constant 0 : index
    %c0_4 = arith.constant 0 : index
    %3 = vector.load %arg3[%c0_3, %c0_4] : memref<8x128xf32, #tpu.memory_space<vmem>>, vector<8x128xf32>
    %c0_5 = arith.constant 0 : index
    %c0_6 = arith.constant 0 : index
    %4 = vector.load %arg4[%c0_5, %c0_6] : memref<8x128xf32, #tpu.memory_space<vmem>>, vector<8x128xf32>
    %5 = arith.maximumf %3, %4 : vector<8x128xf32>
    %6 = arith.maximumf %2, %5 : vector<8x128xf32>
    %c0_7 = arith.constant 0 : index
    %c0_8 = arith.constant 0 : index
    %7 = vector.load %arg5[%c0_7, %c0_8] : memref<8x128xf32, #tpu.memory_space<vmem>>, vector<8x128xf32>
    %c0_9 = arith.constant 0 : index
    %c0_10 = arith.constant 0 : index
    %8 = vector.load %arg6[%c0_9, %c0_10] : memref<8x128xf32, #tpu.memory_space<vmem>>, vector<8x128xf32>
    %9 = arith.maximumf %7, %8 : vector<8x128xf32>
    %c0_11 = arith.constant 0 : index
    %c0_12 = arith.constant 0 : index
    %10 = vector.load %arg7[%c0_11, %c0_12] : memref<8x128xf32, #tpu.memory_space<vmem>>, vector<8x128xf32>
    %c0_13 = arith.constant 0 : index
    %c0_14 = arith.constant 0 : index
    %11 = vector.load %arg8[%c0_13, %c0_14] : memref<8x128xf32, #tpu.memory_space<vmem>>, vector<8x128xf32>
    %12 = arith.maximumf %10, %11 : vector<8x128xf32>
    %13 = arith.maximumf %9, %12 : vector<8x128xf32>
    %14 = arith.maximumf %6, %13 : vector<8x128xf32>
    %c0_15 = arith.constant 0 : index
    %c0_16 = arith.constant 0 : index
    %15 = vector.load %arg9[%c0_15, %c0_16] : memref<8x128xf32, #tpu.memory_space<vmem>>, vector<8x128xf32>
    %16 = arith.maximumf %14, %15 : vector<8x128xf32>
    %c0_17 = arith.constant 0 : index
    %c0_18 = arith.constant 0 : index
    %17 = vector.load %arg10[%c0_17, %c0_18] : memref<8x128xf32, #tpu.memory_space<vmem>>, vector<8x128xf32>
    tpu.vector_store %arg10[%c0_17, %c0_18], %16 {strides = array<i32>} : memref<8x128xf32, #tpu.memory_space<vmem>>, vector<8x128xf32>,
    return
  }
  func.func @transform_0(%arg0: i32) -> (i32, i32) {
    %c0_i32 = arith.constant 0 : i32
    %c0_i32_0 = arith.constant 0 : i32
    return %c0_i32, %arg0 : i32, i32
  }
  func.func @transform_1(%arg0: i32) -> (i32, i32) {
    %c0_i32 = arith.constant 0 : i32
    %c0_i32_0 = arith.constant 0 : i32
    return %c0_i32, %arg0 : i32, i32
  }
  func.func @transform_2(%arg0: i32) -> (i32, i32) {
    %c0_i32 = arith.constant 0 : i32
    %c0_i32_0 = arith.constant 0 : i32
    return %c0_i32, %arg0 : i32, i32
  }
  func.func @transform_3(%arg0: i32) -> (i32, i32) {
    %c0_i32 = arith.constant 0 : i32
    %c0_i32_0 = arith.constant 0 : i32
    return %c0_i32, %arg0 : i32, i32
  }
  func.func @transform_4(%arg0: i32) -> (i32, i32) {
    %c0_i32 = arith.constant 0 : i32
    %c0_i32_0 = arith.constant 0 : i32
    return %c0_i32, %arg0 : i32, i32
  }
  func.func @transform_5(%arg0: i32) -> (i32, i32) {
    %c0_i32 = arith.constant 0 : i32
    %c0_i32_0 = arith.constant 0 : i32
    return %c0_i32, %arg0 : i32, i32
  }
  func.func @transform_6(%arg0: i32) -> (i32, i32) {
    %c0_i32 = arith.constant 0 : i32
    %c0_i32_0 = arith.constant 0 : i32
    return %c0_i32, %arg0 : i32, i32
  }
  func.func @transform_7(%arg0: i32) -> (i32, i32) {
    %c0_i32 = arith.constant 0 : i32
    %c0_i32_0 = arith.constant 0 : i32
    return %c0_i32, %arg0 : i32, i32
  }
  func.func @transform_8(%arg0: i32) -> (i32, i32) {
    %c0_i32 = arith.constant 0 : i32
    %c0_i32_0 = arith.constant 0 : i32
    return %c0_i32, %arg0 : i32, i32
  }
  func.func @transform_9(%arg0: i32) -> (i32, i32) {
    %c0_i32 = arith.constant 0 : i32
    %c0_i32_0 = arith.constant 0 : i32
    return %c0_i32, %arg0 : i32, i32
  }
}

module attributes {stable_mosaic.version = 11 : i64} {
  func.func @_conv_bn_res_relu_kernel(%arg0: i32, %arg1: memref<72x128xbf16, #tpu.memory_space<vmem>>, %arg2: memref<8x72xbf16, #tpu.memory_space<vmem>>, %arg3: memref<8x1xf32, #tpu.memory_space<vmem>>, %arg4: memref<8x128xf32, #tpu.memory_space<vmem>>, %arg5: memref<8x128xf32, #tpu.memory_space<vmem>>) attributes {dimension_semantics = [#tpu.dimension_semantics<parallel>], iteration_bounds = array<i64: 1>, scalar_prefetch = 0 : i64, scratch_operands = 0 : i64, tpu.core_type = #tpu.core_type<tc>, window_params = [{transform_indices = @transform_0, window_bounds = array<i64: 72, 128>}, {pipeline_mode = #tpu.pipeline_mode<synchronous>, transform_indices = @transform_1, window_bounds = array<i64: 8, 72>}, {pipeline_mode = #tpu.pipeline_mode<synchronous>, transform_indices = @transform_2, window_bounds = array<i64: 8, 1>}, {transform_indices = @transform_3, window_bounds = array<i64: 8, 128>}, {transform_indices = @transform_4, window_bounds = array<i64: 8, 128>}]} {
    %c0 = arith.constant 0 : index
    %c0_0 = arith.constant 0 : index
    %0 = vector.load %arg2[%c0, %c0_0] : memref<8x72xbf16, #tpu.memory_space<vmem>>, vector<8x72xbf16>
    %c0_1 = arith.constant 0 : index
    %c0_2 = arith.constant 0 : index
    %1 = vector.load %arg1[%c0_1, %c0_2] : memref<72x128xbf16, #tpu.memory_space<vmem>>, vector<72x128xbf16>
    %cst = arith.constant dense<0.000000e+00> : vector<8x128xf32>
    %2 = tpu.matmul %0, %1, %cst {dimension_numbers = #tpu.dot_dimension_numbers<[1], [0], [0], [1], [0, 0, 1, 1], [], []>} : vector<8x72xbf16>, vector<72x128xbf16>, vector<8x128xf32> -> vector<8x128xf32>
    %c0_3 = arith.constant 0 : index
    %c0_4 = arith.constant 0 : index
    %3 = vector.load %arg3[%c0_3, %c0_4] : memref<8x1xf32, #tpu.memory_space<vmem>>, vector<8x1xf32>
    %4 = vector.broadcast %3 : vector<8x1xf32> to vector<8x128xf32>
    %5 = arith.addf %2, %4 : vector<8x128xf32>
    %c0_5 = arith.constant 0 : index
    %c0_6 = arith.constant 0 : index
    %6 = vector.load %arg4[%c0_5, %c0_6] : memref<8x128xf32, #tpu.memory_space<vmem>>, vector<8x128xf32>
    %7 = arith.addf %5, %6 : vector<8x128xf32>
    %cst_7 = arith.constant 0.000000e+00 : f32
    %8 = vector.broadcast %cst_7 : f32 to vector<8x128xf32>
    %9 = arith.maximumf %7, %8 : vector<8x128xf32>
    %c0_8 = arith.constant 0 : index
    %c0_9 = arith.constant 0 : index
    %10 = vector.load %arg5[%c0_8, %c0_9] : memref<8x128xf32, #tpu.memory_space<vmem>>, vector<8x128xf32>
    tpu.vector_store %arg5[%c0_8, %c0_9], %9 {strides = array<i32>} : memref<8x128xf32, #tpu.memory_space<vmem>>, vector<8x128xf32>,
    return
  }
  func.func @transform_0(%arg0: i32) -> (i32, i32) {
    %c0_i32 = arith.constant 0 : i32
    %c0_i32_0 = arith.constant 0 : i32
    return %c0_i32, %arg0 : i32, i32
  }
  func.func @transform_1(%arg0: i32) -> (i32, i32) {
    %c0_i32 = arith.constant 0 : i32
    %c0_i32_0 = arith.constant 0 : i32
    %c0_i32_1 = arith.constant 0 : i32
    return %c0_i32, %c0_i32_0 : i32, i32
  }
  func.func @transform_2(%arg0: i32) -> (i32, i32) {
    %c0_i32 = arith.constant 0 : i32
    %c0_i32_0 = arith.constant 0 : i32
    %c0_i32_1 = arith.constant 0 : i32
    return %c0_i32, %c0_i32_0 : i32, i32
  }
  func.func @transform_3(%arg0: i32) -> (i32, i32) {
    %c0_i32 = arith.constant 0 : i32
    %c0_i32_0 = arith.constant 0 : i32
    return %c0_i32, %arg0 : i32, i32
  }
  func.func @transform_4(%arg0: i32) -> (i32, i32) {
    %c0_i32 = arith.constant 0 : i32
    %c0_i32_0 = arith.constant 0 : i32
    return %c0_i32, %arg0 : i32, i32
  }
}

module attributes {stable_mosaic.version = 11 : i64} {
  func.func @_conv_bn_act_kernel(%arg0: i32, %arg1: memref<72x128xbf16, #tpu.memory_space<vmem>>, %arg2: memref<8x72xbf16, #tpu.memory_space<vmem>>, %arg3: memref<8x1xf32, #tpu.memory_space<vmem>>, %arg4: memref<8x128xf32, #tpu.memory_space<vmem>>) attributes {dimension_semantics = [#tpu.dimension_semantics<parallel>], iteration_bounds = array<i64: 1>, scalar_prefetch = 0 : i64, scratch_operands = 0 : i64, tpu.core_type = #tpu.core_type<tc>, window_params = [{transform_indices = @transform_0, window_bounds = array<i64: 72, 128>}, {pipeline_mode = #tpu.pipeline_mode<synchronous>, transform_indices = @transform_1, window_bounds = array<i64: 8, 72>}, {pipeline_mode = #tpu.pipeline_mode<synchronous>, transform_indices = @transform_2, window_bounds = array<i64: 8, 1>}, {transform_indices = @transform_3, window_bounds = array<i64: 8, 128>}]} {
    %c0 = arith.constant 0 : index
    %c0_0 = arith.constant 0 : index
    %0 = vector.load %arg2[%c0, %c0_0] : memref<8x72xbf16, #tpu.memory_space<vmem>>, vector<8x72xbf16>
    %c0_1 = arith.constant 0 : index
    %c0_2 = arith.constant 0 : index
    %1 = vector.load %arg1[%c0_1, %c0_2] : memref<72x128xbf16, #tpu.memory_space<vmem>>, vector<72x128xbf16>
    %cst = arith.constant dense<0.000000e+00> : vector<8x128xf32>
    %2 = tpu.matmul %0, %1, %cst {dimension_numbers = #tpu.dot_dimension_numbers<[1], [0], [0], [1], [0, 0, 1, 1], [], []>} : vector<8x72xbf16>, vector<72x128xbf16>, vector<8x128xf32> -> vector<8x128xf32>
    %c0_3 = arith.constant 0 : index
    %c0_4 = arith.constant 0 : index
    %3 = vector.load %arg3[%c0_3, %c0_4] : memref<8x1xf32, #tpu.memory_space<vmem>>, vector<8x1xf32>
    %4 = vector.broadcast %3 : vector<8x1xf32> to vector<8x128xf32>
    %5 = arith.addf %2, %4 : vector<8x128xf32>
    %cst_5 = arith.constant 0.000000e+00 : f32
    %6 = vector.broadcast %cst_5 : f32 to vector<8x128xf32>
    %7 = arith.maximumf %5, %6 : vector<8x128xf32>
    %c0_6 = arith.constant 0 : index
    %c0_7 = arith.constant 0 : index
    %8 = vector.load %arg4[%c0_6, %c0_7] : memref<8x128xf32, #tpu.memory_space<vmem>>, vector<8x128xf32>
    tpu.vector_store %arg4[%c0_6, %c0_7], %7 {strides = array<i32>} : memref<8x128xf32, #tpu.memory_space<vmem>>, vector<8x128xf32>,
    return
  }
  func.func @transform_0(%arg0: i32) -> (i32, i32) {
    %c0_i32 = arith.constant 0 : i32
    %c0_i32_0 = arith.constant 0 : i32
    return %c0_i32, %arg0 : i32, i32
  }
  func.func @transform_1(%arg0: i32) -> (i32, i32) {
    %c0_i32 = arith.constant 0 : i32
    %c0_i32_0 = arith.constant 0 : i32
    %c0_i32_1 = arith.constant 0 : i32
    return %c0_i32, %c0_i32_0 : i32, i32
  }
  func.func @transform_2(%arg0: i32) -> (i32, i32) {
    %c0_i32 = arith.constant 0 : i32
    %c0_i32_0 = arith.constant 0 : i32
    %c0_i32_1 = arith.constant 0 : i32
    return %c0_i32, %c0_i32_0 : i32, i32
  }
  func.func @transform_3(%arg0: i32) -> (i32, i32) {
    %c0_i32 = arith.constant 0 : i32
    %c0_i32_0 = arith.constant 0 : i32
    return %c0_i32, %arg0 : i32, i32
  }
}

module attributes {stable_mosaic.version = 11 : i64} {
  func.func @_conv_bn_act_kernel(%arg0: i32, %arg1: memref<72x32xbf16, #tpu.memory_space<vmem>>, %arg2: memref<16x72xbf16, #tpu.memory_space<vmem>>, %arg3: memref<16x1xf32, #tpu.memory_space<vmem>>, %arg4: memref<16x32xf32, #tpu.memory_space<vmem>>) attributes {dimension_semantics = [#tpu.dimension_semantics<parallel>], iteration_bounds = array<i64: 1>, scalar_prefetch = 0 : i64, scratch_operands = 0 : i64, tpu.core_type = #tpu.core_type<tc>, window_params = [{transform_indices = @transform_0, window_bounds = array<i64: 72, 32>}, {pipeline_mode = #tpu.pipeline_mode<synchronous>, transform_indices = @transform_1, window_bounds = array<i64: 16, 72>}, {pipeline_mode = #tpu.pipeline_mode<synchronous>, transform_indices = @transform_2, window_bounds = array<i64: 16, 1>}, {transform_indices = @transform_3, window_bounds = array<i64: 16, 32>}]} {
    %c0 = arith.constant 0 : index
    %c0_0 = arith.constant 0 : index
    %0 = vector.load %arg2[%c0, %c0_0] : memref<16x72xbf16, #tpu.memory_space<vmem>>, vector<16x72xbf16>
    %c0_1 = arith.constant 0 : index
    %c0_2 = arith.constant 0 : index
    %1 = vector.load %arg1[%c0_1, %c0_2] : memref<72x32xbf16, #tpu.memory_space<vmem>>, vector<72x32xbf16>
    %cst = arith.constant dense<0.000000e+00> : vector<16x32xf32>
    %2 = tpu.matmul %0, %1, %cst {dimension_numbers = #tpu.dot_dimension_numbers<[1], [0], [0], [1], [0, 0, 1, 1], [], []>} : vector<16x72xbf16>, vector<72x32xbf16>, vector<16x32xf32> -> vector<16x32xf32>
    %c0_3 = arith.constant 0 : index
    %c0_4 = arith.constant 0 : index
    %3 = vector.load %arg3[%c0_3, %c0_4] : memref<16x1xf32, #tpu.memory_space<vmem>>, vector<16x1xf32>
    %4 = vector.broadcast %3 : vector<16x1xf32> to vector<16x32xf32>
    %5 = arith.addf %2, %4 : vector<16x32xf32>
    %cst_5 = arith.constant 0.000000e+00 : f32
    %6 = vector.broadcast %cst_5 : f32 to vector<16x32xf32>
    %7 = arith.maximumf %5, %6 : vector<16x32xf32>
    %c0_6 = arith.constant 0 : index
    %c0_7 = arith.constant 0 : index
    %8 = vector.load %arg4[%c0_6, %c0_7] : memref<16x32xf32, #tpu.memory_space<vmem>>, vector<16x32xf32>
    tpu.vector_store %arg4[%c0_6, %c0_7], %7 {strides = array<i32>} : memref<16x32xf32, #tpu.memory_space<vmem>>, vector<16x32xf32>,
    return
  }
  func.func @transform_0(%arg0: i32) -> (i32, i32) {
    %c0_i32 = arith.constant 0 : i32
    %c0_i32_0 = arith.constant 0 : i32
    return %c0_i32, %arg0 : i32, i32
  }
  func.func @transform_1(%arg0: i32) -> (i32, i32) {
    %c0_i32 = arith.constant 0 : i32
    %c0_i32_0 = arith.constant 0 : i32
    %c0_i32_1 = arith.constant 0 : i32
    return %c0_i32, %c0_i32_0 : i32, i32
  }
  func.func @transform_2(%arg0: i32) -> (i32, i32) {
    %c0_i32 = arith.constant 0 : i32
    %c0_i32_0 = arith.constant 0 : i32
    %c0_i32_1 = arith.constant 0 : i32
    return %c0_i32, %c0_i32_0 : i32, i32
  }
  func.func @transform_3(%arg0: i32) -> (i32, i32) {
    %c0_i32 = arith.constant 0 : i32
    %c0_i32_0 = arith.constant 0 : i32
    return %c0_i32, %arg0 : i32, i32
  }
}

module attributes {stable_mosaic.version = 11 : i64} {
  func.func @_conv_bn_act_kernel(%arg0: i32, %arg1: memref<8x32xbf16, #tpu.memory_space<vmem>>, %arg2: memref<16x8xbf16, #tpu.memory_space<vmem>>, %arg3: memref<16x1xf32, #tpu.memory_space<vmem>>, %arg4: memref<16x32xf32, #tpu.memory_space<vmem>>) attributes {dimension_semantics = [#tpu.dimension_semantics<parallel>], iteration_bounds = array<i64: 1>, scalar_prefetch = 0 : i64, scratch_operands = 0 : i64, tpu.core_type = #tpu.core_type<tc>, window_params = [{transform_indices = @transform_0, window_bounds = array<i64: 8, 32>}, {pipeline_mode = #tpu.pipeline_mode<synchronous>, transform_indices = @transform_1, window_bounds = array<i64: 16, 8>}, {pipeline_mode = #tpu.pipeline_mode<synchronous>, transform_indices = @transform_2, window_bounds = array<i64: 16, 1>}, {transform_indices = @transform_3, window_bounds = array<i64: 16, 32>}]} {
    %c0 = arith.constant 0 : index
    %c0_0 = arith.constant 0 : index
    %0 = vector.load %arg2[%c0, %c0_0] : memref<16x8xbf16, #tpu.memory_space<vmem>>, vector<16x8xbf16>
    %c0_1 = arith.constant 0 : index
    %c0_2 = arith.constant 0 : index
    %1 = vector.load %arg1[%c0_1, %c0_2] : memref<8x32xbf16, #tpu.memory_space<vmem>>, vector<8x32xbf16>
    %cst = arith.constant dense<0.000000e+00> : vector<16x32xf32>
    %2 = tpu.matmul %0, %1, %cst {dimension_numbers = #tpu.dot_dimension_numbers<[1], [0], [0], [1], [0, 0, 1, 1], [], []>} : vector<16x8xbf16>, vector<8x32xbf16>, vector<16x32xf32> -> vector<16x32xf32>
    %c0_3 = arith.constant 0 : index
    %c0_4 = arith.constant 0 : index
    %3 = vector.load %arg3[%c0_3, %c0_4] : memref<16x1xf32, #tpu.memory_space<vmem>>, vector<16x1xf32>
    %4 = vector.broadcast %3 : vector<16x1xf32> to vector<16x32xf32>
    %5 = arith.addf %2, %4 : vector<16x32xf32>
    %c0_5 = arith.constant 0 : index
    %c0_6 = arith.constant 0 : index
    %6 = vector.load %arg4[%c0_5, %c0_6] : memref<16x32xf32, #tpu.memory_space<vmem>>, vector<16x32xf32>
    tpu.vector_store %arg4[%c0_5, %c0_6], %5 {strides = array<i32>} : memref<16x32xf32, #tpu.memory_space<vmem>>, vector<16x32xf32>,
    return
  }
  func.func @transform_0(%arg0: i32) -> (i32, i32) {
    %c0_i32 = arith.constant 0 : i32
    %c0_i32_0 = arith.constant 0 : i32
    return %c0_i32, %arg0 : i32, i32
  }
  func.func @transform_1(%arg0: i32) -> (i32, i32) {
    %c0_i32 = arith.constant 0 : i32
    %c0_i32_0 = arith.constant 0 : i32
    %c0_i32_1 = arith.constant 0 : i32
    return %c0_i32, %c0_i32_0 : i32, i32
  }
  func.func @transform_2(%arg0: i32) -> (i32, i32) {
    %c0_i32 = arith.constant 0 : i32
    %c0_i32_0 = arith.constant 0 : i32
    %c0_i32_1 = arith.constant 0 : i32
    return %c0_i32, %c0_i32_0 : i32, i32
  }
  func.func @transform_3(%arg0: i32) -> (i32, i32) {
    %c0_i32 = arith.constant 0 : i32
    %c0_i32_0 = arith.constant 0 : i32
    return %c0_i32, %arg0 : i32, i32
  }
}

module attributes {stable_mosaic.version = 11 : i64} {
  func.func @_conv_bn_act_kernel(%arg0: i32, %arg1: memref<144x32xbf16, #tpu.memory_space<vmem>>, %arg2: memref<16x144xbf16, #tpu.memory_space<vmem>>, %arg3: memref<16x1xf32, #tpu.memory_space<vmem>>, %arg4: memref<16x32xf32, #tpu.memory_space<vmem>>) attributes {dimension_semantics = [#tpu.dimension_semantics<parallel>], iteration_bounds = array<i64: 1>, scalar_prefetch = 0 : i64, scratch_operands = 0 : i64, tpu.core_type = #tpu.core_type<tc>, window_params = [{transform_indices = @transform_0, window_bounds = array<i64: 144, 32>}, {pipeline_mode = #tpu.pipeline_mode<synchronous>, transform_indices = @transform_1, window_bounds = array<i64: 16, 144>}, {pipeline_mode = #tpu.pipeline_mode<synchronous>, transform_indices = @transform_2, window_bounds = array<i64: 16, 1>}, {transform_indices = @transform_3, window_bounds = array<i64: 16, 32>}]} {
    %c0 = arith.constant 0 : index
    %c0_0 = arith.constant 0 : index
    %0 = vector.load %arg2[%c0, %c0_0] : memref<16x144xbf16, #tpu.memory_space<vmem>>, vector<16x144xbf16>
    %c0_1 = arith.constant 0 : index
    %c0_2 = arith.constant 0 : index
    %1 = vector.load %arg1[%c0_1, %c0_2] : memref<144x32xbf16, #tpu.memory_space<vmem>>, vector<144x32xbf16>
    %cst = arith.constant dense<0.000000e+00> : vector<16x32xf32>
    %2 = tpu.matmul %0, %1, %cst {dimension_numbers = #tpu.dot_dimension_numbers<[1], [0], [0], [1], [0, 0, 1, 1], [], []>} : vector<16x144xbf16>, vector<144x32xbf16>, vector<16x32xf32> -> vector<16x32xf32>
    %c0_3 = arith.constant 0 : index
    %c0_4 = arith.constant 0 : index
    %3 = vector.load %arg3[%c0_3, %c0_4] : memref<16x1xf32, #tpu.memory_space<vmem>>, vector<16x1xf32>
    %4 = vector.broadcast %3 : vector<16x1xf32> to vector<16x32xf32>
    %5 = arith.addf %2, %4 : vector<16x32xf32>
    %cst_5 = arith.constant 0.000000e+00 : f32
    %6 = vector.broadcast %cst_5 : f32 to vector<16x32xf32>
    %7 = arith.maximumf %5, %6 : vector<16x32xf32>
    %c0_6 = arith.constant 0 : index
    %c0_7 = arith.constant 0 : index
    %8 = vector.load %arg4[%c0_6, %c0_7] : memref<16x32xf32, #tpu.memory_space<vmem>>, vector<16x32xf32>
    tpu.vector_store %arg4[%c0_6, %c0_7], %7 {strides = array<i32>} : memref<16x32xf32, #tpu.memory_space<vmem>>, vector<16x32xf32>,
    return
  }
  func.func @transform_0(%arg0: i32) -> (i32, i32) {
    %c0_i32 = arith.constant 0 : i32
    %c0_i32_0 = arith.constant 0 : i32
    return %c0_i32, %arg0 : i32, i32
  }
  func.func @transform_1(%arg0: i32) -> (i32, i32) {
    %c0_i32 = arith.constant 0 : i32
    %c0_i32_0 = arith.constant 0 : i32
    %c0_i32_1 = arith.constant 0 : i32
    return %c0_i32, %c0_i32_0 : i32, i32
  }
  func.func @transform_2(%arg0: i32) -> (i32, i32) {
    %c0_i32 = arith.constant 0 : i32
    %c0_i32_0 = arith.constant 0 : i32
    %c0_i32_1 = arith.constant 0 : i32
    return %c0_i32, %c0_i32_0 : i32, i32
  }
  func.func @transform_3(%arg0: i32) -> (i32, i32) {
    %c0_i32 = arith.constant 0 : i32
    %c0_i32_0 = arith.constant 0 : i32
    return %c0_i32, %arg0 : i32, i32
  }
}

module attributes {stable_mosaic.version = 11 : i64} {
  func.func @_conv_bn_res_relu_kernel(%arg0: i32, %arg1: memref<144x32xbf16, #tpu.memory_space<vmem>>, %arg2: memref<16x144xbf16, #tpu.memory_space<vmem>>, %arg3: memref<16x1xf32, #tpu.memory_space<vmem>>, %arg4: memref<16x32xf32, #tpu.memory_space<vmem>>, %arg5: memref<16x32xf32, #tpu.memory_space<vmem>>) attributes {dimension_semantics = [#tpu.dimension_semantics<parallel>], iteration_bounds = array<i64: 1>, scalar_prefetch = 0 : i64, scratch_operands = 0 : i64, tpu.core_type = #tpu.core_type<tc>, window_params = [{transform_indices = @transform_0, window_bounds = array<i64: 144, 32>}, {pipeline_mode = #tpu.pipeline_mode<synchronous>, transform_indices = @transform_1, window_bounds = array<i64: 16, 144>}, {pipeline_mode = #tpu.pipeline_mode<synchronous>, transform_indices = @transform_2, window_bounds = array<i64: 16, 1>}, {transform_indices = @transform_3, window_bounds = array<i64: 16, 32>}, {transform_indices = @transform_4, window_bounds = array<i64: 16, 32>}]} {
    %c0 = arith.constant 0 : index
    %c0_0 = arith.constant 0 : index
    %0 = vector.load %arg2[%c0, %c0_0] : memref<16x144xbf16, #tpu.memory_space<vmem>>, vector<16x144xbf16>
    %c0_1 = arith.constant 0 : index
    %c0_2 = arith.constant 0 : index
    %1 = vector.load %arg1[%c0_1, %c0_2] : memref<144x32xbf16, #tpu.memory_space<vmem>>, vector<144x32xbf16>
    %cst = arith.constant dense<0.000000e+00> : vector<16x32xf32>
    %2 = tpu.matmul %0, %1, %cst {dimension_numbers = #tpu.dot_dimension_numbers<[1], [0], [0], [1], [0, 0, 1, 1], [], []>} : vector<16x144xbf16>, vector<144x32xbf16>, vector<16x32xf32> -> vector<16x32xf32>
    %c0_3 = arith.constant 0 : index
    %c0_4 = arith.constant 0 : index
    %3 = vector.load %arg3[%c0_3, %c0_4] : memref<16x1xf32, #tpu.memory_space<vmem>>, vector<16x1xf32>
    %4 = vector.broadcast %3 : vector<16x1xf32> to vector<16x32xf32>
    %5 = arith.addf %2, %4 : vector<16x32xf32>
    %c0_5 = arith.constant 0 : index
    %c0_6 = arith.constant 0 : index
    %6 = vector.load %arg4[%c0_5, %c0_6] : memref<16x32xf32, #tpu.memory_space<vmem>>, vector<16x32xf32>
    %7 = arith.addf %5, %6 : vector<16x32xf32>
    %cst_7 = arith.constant 0.000000e+00 : f32
    %8 = vector.broadcast %cst_7 : f32 to vector<16x32xf32>
    %9 = arith.maximumf %7, %8 : vector<16x32xf32>
    %c0_8 = arith.constant 0 : index
    %c0_9 = arith.constant 0 : index
    %10 = vector.load %arg5[%c0_8, %c0_9] : memref<16x32xf32, #tpu.memory_space<vmem>>, vector<16x32xf32>
    tpu.vector_store %arg5[%c0_8, %c0_9], %9 {strides = array<i32>} : memref<16x32xf32, #tpu.memory_space<vmem>>, vector<16x32xf32>,
    return
  }
  func.func @transform_0(%arg0: i32) -> (i32, i32) {
    %c0_i32 = arith.constant 0 : i32
    %c0_i32_0 = arith.constant 0 : i32
    return %c0_i32, %arg0 : i32, i32
  }
  func.func @transform_1(%arg0: i32) -> (i32, i32) {
    %c0_i32 = arith.constant 0 : i32
    %c0_i32_0 = arith.constant 0 : i32
    %c0_i32_1 = arith.constant 0 : i32
    return %c0_i32, %c0_i32_0 : i32, i32
  }
  func.func @transform_2(%arg0: i32) -> (i32, i32) {
    %c0_i32 = arith.constant 0 : i32
    %c0_i32_0 = arith.constant 0 : i32
    %c0_i32_1 = arith.constant 0 : i32
    return %c0_i32, %c0_i32_0 : i32, i32
  }
  func.func @transform_3(%arg0: i32) -> (i32, i32) {
    %c0_i32 = arith.constant 0 : i32
    %c0_i32_0 = arith.constant 0 : i32
    return %c0_i32, %arg0 : i32, i32
  }
  func.func @transform_4(%arg0: i32) -> (i32, i32) {
    %c0_i32 = arith.constant 0 : i32
    %c0_i32_0 = arith.constant 0 : i32
    return %c0_i32, %arg0 : i32, i32
  }
}

module attributes {stable_mosaic.version = 11 : i64} {
  func.func @_conv_bn_act_kernel(%arg0: i32, %arg1: memref<144x8xbf16, #tpu.memory_space<vmem>>, %arg2: memref<32x144xbf16, #tpu.memory_space<vmem>>, %arg3: memref<32x1xf32, #tpu.memory_space<vmem>>, %arg4: memref<32x8xf32, #tpu.memory_space<vmem>>) attributes {dimension_semantics = [#tpu.dimension_semantics<parallel>], iteration_bounds = array<i64: 1>, scalar_prefetch = 0 : i64, scratch_operands = 0 : i64, tpu.core_type = #tpu.core_type<tc>, window_params = [{transform_indices = @transform_0, window_bounds = array<i64: 144, 8>}, {pipeline_mode = #tpu.pipeline_mode<synchronous>, transform_indices = @transform_1, window_bounds = array<i64: 32, 144>}, {pipeline_mode = #tpu.pipeline_mode<synchronous>, transform_indices = @transform_2, window_bounds = array<i64: 32, 1>}, {transform_indices = @transform_3, window_bounds = array<i64: 32, 8>}]} {
    %c0 = arith.constant 0 : index
    %c0_0 = arith.constant 0 : index
    %0 = vector.load %arg2[%c0, %c0_0] : memref<32x144xbf16, #tpu.memory_space<vmem>>, vector<32x144xbf16>
    %c0_1 = arith.constant 0 : index
    %c0_2 = arith.constant 0 : index
    %1 = vector.load %arg1[%c0_1, %c0_2] : memref<144x8xbf16, #tpu.memory_space<vmem>>, vector<144x8xbf16>
    %cst = arith.constant dense<0.000000e+00> : vector<32x8xf32>
    %2 = tpu.matmul %0, %1, %cst {dimension_numbers = #tpu.dot_dimension_numbers<[1], [0], [0], [1], [0, 0, 1, 1], [], []>} : vector<32x144xbf16>, vector<144x8xbf16>, vector<32x8xf32> -> vector<32x8xf32>
    %c0_3 = arith.constant 0 : index
    %c0_4 = arith.constant 0 : index
    %3 = vector.load %arg3[%c0_3, %c0_4] : memref<32x1xf32, #tpu.memory_space<vmem>>, vector<32x1xf32>
    %4 = vector.broadcast %3 : vector<32x1xf32> to vector<32x8xf32>
    %5 = arith.addf %2, %4 : vector<32x8xf32>
    %cst_5 = arith.constant 0.000000e+00 : f32
    %6 = vector.broadcast %cst_5 : f32 to vector<32x8xf32>
    %7 = arith.maximumf %5, %6 : vector<32x8xf32>
    %c0_6 = arith.constant 0 : index
    %c0_7 = arith.constant 0 : index
    %8 = vector.load %arg4[%c0_6, %c0_7] : memref<32x8xf32, #tpu.memory_space<vmem>>, vector<32x8xf32>
    tpu.vector_store %arg4[%c0_6, %c0_7], %7 {strides = array<i32>} : memref<32x8xf32, #tpu.memory_space<vmem>>, vector<32x8xf32>,
    return
  }
  func.func @transform_0(%arg0: i32) -> (i32, i32) {
    %c0_i32 = arith.constant 0 : i32
    %c0_i32_0 = arith.constant 0 : i32
    return %c0_i32, %arg0 : i32, i32
  }
  func.func @transform_1(%arg0: i32) -> (i32, i32) {
    %c0_i32 = arith.constant 0 : i32
    %c0_i32_0 = arith.constant 0 : i32
    %c0_i32_1 = arith.constant 0 : i32
    return %c0_i32, %c0_i32_0 : i32, i32
  }
  func.func @transform_2(%arg0: i32) -> (i32, i32) {
    %c0_i32 = arith.constant 0 : i32
    %c0_i32_0 = arith.constant 0 : i32
    %c0_i32_1 = arith.constant 0 : i32
    return %c0_i32, %c0_i32_0 : i32, i32
  }
  func.func @transform_3(%arg0: i32) -> (i32, i32) {
    %c0_i32 = arith.constant 0 : i32
    %c0_i32_0 = arith.constant 0 : i32
    return %c0_i32, %arg0 : i32, i32
  }
}

module attributes {stable_mosaic.version = 11 : i64} {
  func.func @_conv_bn_act_kernel(%arg0: i32, %arg1: memref<16x8xbf16, #tpu.memory_space<vmem>>, %arg2: memref<32x16xbf16, #tpu.memory_space<vmem>>, %arg3: memref<32x1xf32, #tpu.memory_space<vmem>>, %arg4: memref<32x8xf32, #tpu.memory_space<vmem>>) attributes {dimension_semantics = [#tpu.dimension_semantics<parallel>], iteration_bounds = array<i64: 1>, scalar_prefetch = 0 : i64, scratch_operands = 0 : i64, tpu.core_type = #tpu.core_type<tc>, window_params = [{transform_indices = @transform_0, window_bounds = array<i64: 16, 8>}, {pipeline_mode = #tpu.pipeline_mode<synchronous>, transform_indices = @transform_1, window_bounds = array<i64: 32, 16>}, {pipeline_mode = #tpu.pipeline_mode<synchronous>, transform_indices = @transform_2, window_bounds = array<i64: 32, 1>}, {transform_indices = @transform_3, window_bounds = array<i64: 32, 8>}]} {
    %c0 = arith.constant 0 : index
    %c0_0 = arith.constant 0 : index
    %0 = vector.load %arg2[%c0, %c0_0] : memref<32x16xbf16, #tpu.memory_space<vmem>>, vector<32x16xbf16>
    %c0_1 = arith.constant 0 : index
    %c0_2 = arith.constant 0 : index
    %1 = vector.load %arg1[%c0_1, %c0_2] : memref<16x8xbf16, #tpu.memory_space<vmem>>, vector<16x8xbf16>
    %cst = arith.constant dense<0.000000e+00> : vector<32x8xf32>
    %2 = tpu.matmul %0, %1, %cst {dimension_numbers = #tpu.dot_dimension_numbers<[1], [0], [0], [1], [0, 0, 1, 1], [], []>} : vector<32x16xbf16>, vector<16x8xbf16>, vector<32x8xf32> -> vector<32x8xf32>
    %c0_3 = arith.constant 0 : index
    %c0_4 = arith.constant 0 : index
    %3 = vector.load %arg3[%c0_3, %c0_4] : memref<32x1xf32, #tpu.memory_space<vmem>>, vector<32x1xf32>
    %4 = vector.broadcast %3 : vector<32x1xf32> to vector<32x8xf32>
    %5 = arith.addf %2, %4 : vector<32x8xf32>
    %c0_5 = arith.constant 0 : index
    %c0_6 = arith.constant 0 : index
    %6 = vector.load %arg4[%c0_5, %c0_6] : memref<32x8xf32, #tpu.memory_space<vmem>>, vector<32x8xf32>
    tpu.vector_store %arg4[%c0_5, %c0_6], %5 {strides = array<i32>} : memref<32x8xf32, #tpu.memory_space<vmem>>, vector<32x8xf32>,
    return
  }
  func.func @transform_0(%arg0: i32) -> (i32, i32) {
    %c0_i32 = arith.constant 0 : i32
    %c0_i32_0 = arith.constant 0 : i32
    return %c0_i32, %arg0 : i32, i32
  }
  func.func @transform_1(%arg0: i32) -> (i32, i32) {
    %c0_i32 = arith.constant 0 : i32
    %c0_i32_0 = arith.constant 0 : i32
    %c0_i32_1 = arith.constant 0 : i32
    return %c0_i32, %c0_i32_0 : i32, i32
  }
  func.func @transform_2(%arg0: i32) -> (i32, i32) {
    %c0_i32 = arith.constant 0 : i32
    %c0_i32_0 = arith.constant 0 : i32
    %c0_i32_1 = arith.constant 0 : i32
    return %c0_i32, %c0_i32_0 : i32, i32
  }
  func.func @transform_3(%arg0: i32) -> (i32, i32) {
    %c0_i32 = arith.constant 0 : i32
    %c0_i32_0 = arith.constant 0 : i32
    return %c0_i32, %arg0 : i32, i32
  }
}

module attributes {stable_mosaic.version = 11 : i64} {
  func.func @_conv_bn_res_relu_kernel(%arg0: i32, %arg1: memref<288x8xbf16, #tpu.memory_space<vmem>>, %arg2: memref<32x288xbf16, #tpu.memory_space<vmem>>, %arg3: memref<32x1xf32, #tpu.memory_space<vmem>>, %arg4: memref<32x8xf32, #tpu.memory_space<vmem>>, %arg5: memref<32x8xf32, #tpu.memory_space<vmem>>) attributes {dimension_semantics = [#tpu.dimension_semantics<parallel>], iteration_bounds = array<i64: 1>, scalar_prefetch = 0 : i64, scratch_operands = 0 : i64, tpu.core_type = #tpu.core_type<tc>, window_params = [{transform_indices = @transform_0, window_bounds = array<i64: 288, 8>}, {pipeline_mode = #tpu.pipeline_mode<synchronous>, transform_indices = @transform_1, window_bounds = array<i64: 32, 288>}, {pipeline_mode = #tpu.pipeline_mode<synchronous>, transform_indices = @transform_2, window_bounds = array<i64: 32, 1>}, {transform_indices = @transform_3, window_bounds = array<i64: 32, 8>}, {transform_indices = @transform_4, window_bounds = array<i64: 32, 8>}]} {
    %c0 = arith.constant 0 : index
    %c0_0 = arith.constant 0 : index
    %0 = vector.load %arg2[%c0, %c0_0] : memref<32x288xbf16, #tpu.memory_space<vmem>>, vector<32x288xbf16>
    %c0_1 = arith.constant 0 : index
    %c0_2 = arith.constant 0 : index
    %1 = vector.load %arg1[%c0_1, %c0_2] : memref<288x8xbf16, #tpu.memory_space<vmem>>, vector<288x8xbf16>
    %cst = arith.constant dense<0.000000e+00> : vector<32x8xf32>
    %2 = tpu.matmul %0, %1, %cst {dimension_numbers = #tpu.dot_dimension_numbers<[1], [0], [0], [1], [0, 0, 1, 1], [], []>} : vector<32x288xbf16>, vector<288x8xbf16>, vector<32x8xf32> -> vector<32x8xf32>
    %c0_3 = arith.constant 0 : index
    %c0_4 = arith.constant 0 : index
    %3 = vector.load %arg3[%c0_3, %c0_4] : memref<32x1xf32, #tpu.memory_space<vmem>>, vector<32x1xf32>
    %4 = vector.broadcast %3 : vector<32x1xf32> to vector<32x8xf32>
    %5 = arith.addf %2, %4 : vector<32x8xf32>
    %c0_5 = arith.constant 0 : index
    %c0_6 = arith.constant 0 : index
    %6 = vector.load %arg4[%c0_5, %c0_6] : memref<32x8xf32, #tpu.memory_space<vmem>>, vector<32x8xf32>
    %7 = arith.addf %5, %6 : vector<32x8xf32>
    %cst_7 = arith.constant 0.000000e+00 : f32
    %8 = vector.broadcast %cst_7 : f32 to vector<32x8xf32>
    %9 = arith.maximumf %7, %8 : vector<32x8xf32>
    %c0_8 = arith.constant 0 : index
    %c0_9 = arith.constant 0 : index
    %10 = vector.load %arg5[%c0_8, %c0_9] : memref<32x8xf32, #tpu.memory_space<vmem>>, vector<32x8xf32>
    tpu.vector_store %arg5[%c0_8, %c0_9], %9 {strides = array<i32>} : memref<32x8xf32, #tpu.memory_space<vmem>>, vector<32x8xf32>,
    return
  }
  func.func @transform_0(%arg0: i32) -> (i32, i32) {
    %c0_i32 = arith.constant 0 : i32
    %c0_i32_0 = arith.constant 0 : i32
    return %c0_i32, %arg0 : i32, i32
  }
  func.func @transform_1(%arg0: i32) -> (i32, i32) {
    %c0_i32 = arith.constant 0 : i32
    %c0_i32_0 = arith.constant 0 : i32
    %c0_i32_1 = arith.constant 0 : i32
    return %c0_i32, %c0_i32_0 : i32, i32
  }
  func.func @transform_2(%arg0: i32) -> (i32, i32) {
    %c0_i32 = arith.constant 0 : i32
    %c0_i32_0 = arith.constant 0 : i32
    %c0_i32_1 = arith.constant 0 : i32
    return %c0_i32, %c0_i32_0 : i32, i32
  }
  func.func @transform_3(%arg0: i32) -> (i32, i32) {
    %c0_i32 = arith.constant 0 : i32
    %c0_i32_0 = arith.constant 0 : i32
    return %c0_i32, %arg0 : i32, i32
  }
  func.func @transform_4(%arg0: i32) -> (i32, i32) {
    %c0_i32 = arith.constant 0 : i32
    %c0_i32_0 = arith.constant 0 : i32
    return %c0_i32, %arg0 : i32, i32
  }
}

module attributes {stable_mosaic.version = 11 : i64} {
  func.func @_conv_bn_act_kernel(%arg0: i32, %arg1: memref<288x8xbf16, #tpu.memory_space<vmem>>, %arg2: memref<32x288xbf16, #tpu.memory_space<vmem>>, %arg3: memref<32x1xf32, #tpu.memory_space<vmem>>, %arg4: memref<32x8xf32, #tpu.memory_space<vmem>>) attributes {dimension_semantics = [#tpu.dimension_semantics<parallel>], iteration_bounds = array<i64: 1>, scalar_prefetch = 0 : i64, scratch_operands = 0 : i64, tpu.core_type = #tpu.core_type<tc>, window_params = [{transform_indices = @transform_0, window_bounds = array<i64: 288, 8>}, {pipeline_mode = #tpu.pipeline_mode<synchronous>, transform_indices = @transform_1, window_bounds = array<i64: 32, 288>}, {pipeline_mode = #tpu.pipeline_mode<synchronous>, transform_indices = @transform_2, window_bounds = array<i64: 32, 1>}, {transform_indices = @transform_3, window_bounds = array<i64: 32, 8>}]} {
    %c0 = arith.constant 0 : index
    %c0_0 = arith.constant 0 : index
    %0 = vector.load %arg2[%c0, %c0_0] : memref<32x288xbf16, #tpu.memory_space<vmem>>, vector<32x288xbf16>
    %c0_1 = arith.constant 0 : index
    %c0_2 = arith.constant 0 : index
    %1 = vector.load %arg1[%c0_1, %c0_2] : memref<288x8xbf16, #tpu.memory_space<vmem>>, vector<288x8xbf16>
    %cst = arith.constant dense<0.000000e+00> : vector<32x8xf32>
    %2 = tpu.matmul %0, %1, %cst {dimension_numbers = #tpu.dot_dimension_numbers<[1], [0], [0], [1], [0, 0, 1, 1], [], []>} : vector<32x288xbf16>, vector<288x8xbf16>, vector<32x8xf32> -> vector<32x8xf32>
    %c0_3 = arith.constant 0 : index
    %c0_4 = arith.constant 0 : index
    %3 = vector.load %arg3[%c0_3, %c0_4] : memref<32x1xf32, #tpu.memory_space<vmem>>, vector<32x1xf32>
    %4 = vector.broadcast %3 : vector<32x1xf32> to vector<32x8xf32>
    %5 = arith.addf %2, %4 : vector<32x8xf32>
    %cst_5 = arith.constant 0.000000e+00 : f32
    %6 = vector.broadcast %cst_5 : f32 to vector<32x8xf32>
    %7 = arith.maximumf %5, %6 : vector<32x8xf32>
    %c0_6 = arith.constant 0 : index
    %c0_7 = arith.constant 0 : index
    %8 = vector.load %arg4[%c0_6, %c0_7] : memref<32x8xf32, #tpu.memory_space<vmem>>, vector<32x8xf32>
    tpu.vector_store %arg4[%c0_6, %c0_7], %7 {strides = array<i32>} : memref<32x8xf32, #tpu.memory_space<vmem>>, vector<32x8xf32>,
    return
  }
  func.func @transform_0(%arg0: i32) -> (i32, i32) {
    %c0_i32 = arith.constant 0 : i32
    %c0_i32_0 = arith.constant 0 : i32
    return %c0_i32, %arg0 : i32, i32
  }
  func.func @transform_1(%arg0: i32) -> (i32, i32) {
    %c0_i32 = arith.constant 0 : i32
    %c0_i32_0 = arith.constant 0 : i32
    %c0_i32_1 = arith.constant 0 : i32
    return %c0_i32, %c0_i32_0 : i32, i32
  }
  func.func @transform_2(%arg0: i32) -> (i32, i32) {
    %c0_i32 = arith.constant 0 : i32
    %c0_i32_0 = arith.constant 0 : i32
    %c0_i32_1 = arith.constant 0 : i32
    return %c0_i32, %c0_i32_0 : i32, i32
  }
  func.func @transform_3(%arg0: i32) -> (i32, i32) {
    %c0_i32 = arith.constant 0 : i32
    %c0_i32_0 = arith.constant 0 : i32
    return %c0_i32, %arg0 : i32, i32
  }
}

module attributes {stable_mosaic.version = 11 : i64} {
  func.func @_conv_bn_act_kernel(%arg0: i32, %arg1: memref<288x2xbf16, #tpu.memory_space<vmem>>, %arg2: memref<64x288xbf16, #tpu.memory_space<vmem>>, %arg3: memref<64x1xf32, #tpu.memory_space<vmem>>, %arg4: memref<64x2xf32, #tpu.memory_space<vmem>>) attributes {dimension_semantics = [#tpu.dimension_semantics<parallel>], iteration_bounds = array<i64: 1>, scalar_prefetch = 0 : i64, scratch_operands = 0 : i64, tpu.core_type = #tpu.core_type<tc>, window_params = [{transform_indices = @transform_0, window_bounds = array<i64: 288, 2>}, {pipeline_mode = #tpu.pipeline_mode<synchronous>, transform_indices = @transform_1, window_bounds = array<i64: 64, 288>}, {pipeline_mode = #tpu.pipeline_mode<synchronous>, transform_indices = @transform_2, window_bounds = array<i64: 64, 1>}, {transform_indices = @transform_3, window_bounds = array<i64: 64, 2>}]} {
    %c0 = arith.constant 0 : index
    %c0_0 = arith.constant 0 : index
    %0 = vector.load %arg2[%c0, %c0_0] : memref<64x288xbf16, #tpu.memory_space<vmem>>, vector<64x288xbf16>
    %c0_1 = arith.constant 0 : index
    %c0_2 = arith.constant 0 : index
    %1 = vector.load %arg1[%c0_1, %c0_2] : memref<288x2xbf16, #tpu.memory_space<vmem>>, vector<288x2xbf16>
    %cst = arith.constant dense<0.000000e+00> : vector<64x2xf32>
    %2 = tpu.matmul %0, %1, %cst {dimension_numbers = #tpu.dot_dimension_numbers<[1], [0], [0], [1], [0, 0, 1, 1], [], []>} : vector<64x288xbf16>, vector<288x2xbf16>, vector<64x2xf32> -> vector<64x2xf32>
    %c0_3 = arith.constant 0 : index
    %c0_4 = arith.constant 0 : index
    %3 = vector.load %arg3[%c0_3, %c0_4] : memref<64x1xf32, #tpu.memory_space<vmem>>, vector<64x1xf32>
    %4 = vector.broadcast %3 : vector<64x1xf32> to vector<64x2xf32>
    %5 = arith.addf %2, %4 : vector<64x2xf32>
    %cst_5 = arith.constant 0.000000e+00 : f32
    %6 = vector.broadcast %cst_5 : f32 to vector<64x2xf32>
    %7 = arith.maximumf %5, %6 : vector<64x2xf32>
    %c0_6 = arith.constant 0 : index
    %c0_7 = arith.constant 0 : index
    %8 = vector.load %arg4[%c0_6, %c0_7] : memref<64x2xf32, #tpu.memory_space<vmem>>, vector<64x2xf32>
    tpu.vector_store %arg4[%c0_6, %c0_7], %7 {strides = array<i32>} : memref<64x2xf32, #tpu.memory_space<vmem>>, vector<64x2xf32>,
    return
  }
  func.func @transform_0(%arg0: i32) -> (i32, i32) {
    %c0_i32 = arith.constant 0 : i32
    %c0_i32_0 = arith.constant 0 : i32
    return %c0_i32, %arg0 : i32, i32
  }
  func.func @transform_1(%arg0: i32) -> (i32, i32) {
    %c0_i32 = arith.constant 0 : i32
    %c0_i32_0 = arith.constant 0 : i32
    %c0_i32_1 = arith.constant 0 : i32
    return %c0_i32, %c0_i32_0 : i32, i32
  }
  func.func @transform_2(%arg0: i32) -> (i32, i32) {
    %c0_i32 = arith.constant 0 : i32
    %c0_i32_0 = arith.constant 0 : i32
    %c0_i32_1 = arith.constant 0 : i32
    return %c0_i32, %c0_i32_0 : i32, i32
  }
  func.func @transform_3(%arg0: i32) -> (i32, i32) {
    %c0_i32 = arith.constant 0 : i32
    %c0_i32_0 = arith.constant 0 : i32
    return %c0_i32, %arg0 : i32, i32
  }
}

module attributes {stable_mosaic.version = 11 : i64} {
  func.func @_conv_bn_act_kernel(%arg0: i32, %arg1: memref<32x2xbf16, #tpu.memory_space<vmem>>, %arg2: memref<64x32xbf16, #tpu.memory_space<vmem>>, %arg3: memref<64x1xf32, #tpu.memory_space<vmem>>, %arg4: memref<64x2xf32, #tpu.memory_space<vmem>>) attributes {dimension_semantics = [#tpu.dimension_semantics<parallel>], iteration_bounds = array<i64: 1>, scalar_prefetch = 0 : i64, scratch_operands = 0 : i64, tpu.core_type = #tpu.core_type<tc>, window_params = [{transform_indices = @transform_0, window_bounds = array<i64: 32, 2>}, {pipeline_mode = #tpu.pipeline_mode<synchronous>, transform_indices = @transform_1, window_bounds = array<i64: 64, 32>}, {pipeline_mode = #tpu.pipeline_mode<synchronous>, transform_indices = @transform_2, window_bounds = array<i64: 64, 1>}, {transform_indices = @transform_3, window_bounds = array<i64: 64, 2>}]} {
    %c0 = arith.constant 0 : index
    %c0_0 = arith.constant 0 : index
    %0 = vector.load %arg2[%c0, %c0_0] : memref<64x32xbf16, #tpu.memory_space<vmem>>, vector<64x32xbf16>
    %c0_1 = arith.constant 0 : index
    %c0_2 = arith.constant 0 : index
    %1 = vector.load %arg1[%c0_1, %c0_2] : memref<32x2xbf16, #tpu.memory_space<vmem>>, vector<32x2xbf16>
    %cst = arith.constant dense<0.000000e+00> : vector<64x2xf32>
    %2 = tpu.matmul %0, %1, %cst {dimension_numbers = #tpu.dot_dimension_numbers<[1], [0], [0], [1], [0, 0, 1, 1], [], []>} : vector<64x32xbf16>, vector<32x2xbf16>, vector<64x2xf32> -> vector<64x2xf32>
    %c0_3 = arith.constant 0 : index
    %c0_4 = arith.constant 0 : index
    %3 = vector.load %arg3[%c0_3, %c0_4] : memref<64x1xf32, #tpu.memory_space<vmem>>, vector<64x1xf32>
    %4 = vector.broadcast %3 : vector<64x1xf32> to vector<64x2xf32>
    %5 = arith.addf %2, %4 : vector<64x2xf32>
    %c0_5 = arith.constant 0 : index
    %c0_6 = arith.constant 0 : index
    %6 = vector.load %arg4[%c0_5, %c0_6] : memref<64x2xf32, #tpu.memory_space<vmem>>, vector<64x2xf32>
    tpu.vector_store %arg4[%c0_5, %c0_6], %5 {strides = array<i32>} : memref<64x2xf32, #tpu.memory_space<vmem>>, vector<64x2xf32>,
    return
  }
  func.func @transform_0(%arg0: i32) -> (i32, i32) {
    %c0_i32 = arith.constant 0 : i32
    %c0_i32_0 = arith.constant 0 : i32
    return %c0_i32, %arg0 : i32, i32
  }
  func.func @transform_1(%arg0: i32) -> (i32, i32) {
    %c0_i32 = arith.constant 0 : i32
    %c0_i32_0 = arith.constant 0 : i32
    %c0_i32_1 = arith.constant 0 : i32
    return %c0_i32, %c0_i32_0 : i32, i32
  }
  func.func @transform_2(%arg0: i32) -> (i32, i32) {
    %c0_i32 = arith.constant 0 : i32
    %c0_i32_0 = arith.constant 0 : i32
    %c0_i32_1 = arith.constant 0 : i32
    return %c0_i32, %c0_i32_0 : i32, i32
  }
  func.func @transform_3(%arg0: i32) -> (i32, i32) {
    %c0_i32 = arith.constant 0 : i32
    %c0_i32_0 = arith.constant 0 : i32
    return %c0_i32, %arg0 : i32, i32
  }
}

module attributes {stable_mosaic.version = 11 : i64} {
  func.func @_conv_bn_act_kernel(%arg0: i32, %arg1: memref<576x2xbf16, #tpu.memory_space<vmem>>, %arg2: memref<64x576xbf16, #tpu.memory_space<vmem>>, %arg3: memref<64x1xf32, #tpu.memory_space<vmem>>, %arg4: memref<64x2xf32, #tpu.memory_space<vmem>>) attributes {dimension_semantics = [#tpu.dimension_semantics<parallel>], iteration_bounds = array<i64: 1>, scalar_prefetch = 0 : i64, scratch_operands = 0 : i64, tpu.core_type = #tpu.core_type<tc>, window_params = [{transform_indices = @transform_0, window_bounds = array<i64: 576, 2>}, {pipeline_mode = #tpu.pipeline_mode<synchronous>, transform_indices = @transform_1, window_bounds = array<i64: 64, 576>}, {pipeline_mode = #tpu.pipeline_mode<synchronous>, transform_indices = @transform_2, window_bounds = array<i64: 64, 1>}, {transform_indices = @transform_3, window_bounds = array<i64: 64, 2>}]} {
    %c0 = arith.constant 0 : index
    %c0_0 = arith.constant 0 : index
    %0 = vector.load %arg2[%c0, %c0_0] : memref<64x576xbf16, #tpu.memory_space<vmem>>, vector<64x576xbf16>
    %c0_1 = arith.constant 0 : index
    %c0_2 = arith.constant 0 : index
    %1 = vector.load %arg1[%c0_1, %c0_2] : memref<576x2xbf16, #tpu.memory_space<vmem>>, vector<576x2xbf16>
    %cst = arith.constant dense<0.000000e+00> : vector<64x2xf32>
    %2 = tpu.matmul %0, %1, %cst {dimension_numbers = #tpu.dot_dimension_numbers<[1], [0], [0], [1], [0, 0, 1, 1], [], []>} : vector<64x576xbf16>, vector<576x2xbf16>, vector<64x2xf32> -> vector<64x2xf32>
    %c0_3 = arith.constant 0 : index
    %c0_4 = arith.constant 0 : index
    %3 = vector.load %arg3[%c0_3, %c0_4] : memref<64x1xf32, #tpu.memory_space<vmem>>, vector<64x1xf32>
    %4 = vector.broadcast %3 : vector<64x1xf32> to vector<64x2xf32>
    %5 = arith.addf %2, %4 : vector<64x2xf32>
    %cst_5 = arith.constant 0.000000e+00 : f32
    %6 = vector.broadcast %cst_5 : f32 to vector<64x2xf32>
    %7 = arith.maximumf %5, %6 : vector<64x2xf32>
    %c0_6 = arith.constant 0 : index
    %c0_7 = arith.constant 0 : index
    %8 = vector.load %arg4[%c0_6, %c0_7] : memref<64x2xf32, #tpu.memory_space<vmem>>, vector<64x2xf32>
    tpu.vector_store %arg4[%c0_6, %c0_7], %7 {strides = array<i32>} : memref<64x2xf32, #tpu.memory_space<vmem>>, vector<64x2xf32>,
    return
  }
  func.func @transform_0(%arg0: i32) -> (i32, i32) {
    %c0_i32 = arith.constant 0 : i32
    %c0_i32_0 = arith.constant 0 : i32
    return %c0_i32, %arg0 : i32, i32
  }
  func.func @transform_1(%arg0: i32) -> (i32, i32) {
    %c0_i32 = arith.constant 0 : i32
    %c0_i32_0 = arith.constant 0 : i32
    %c0_i32_1 = arith.constant 0 : i32
    return %c0_i32, %c0_i32_0 : i32, i32
  }
  func.func @transform_2(%arg0: i32) -> (i32, i32) {
    %c0_i32 = arith.constant 0 : i32
    %c0_i32_0 = arith.constant 0 : i32
    %c0_i32_1 = arith.constant 0 : i32
    return %c0_i32, %c0_i32_0 : i32, i32
  }
  func.func @transform_3(%arg0: i32) -> (i32, i32) {
    %c0_i32 = arith.constant 0 : i32
    %c0_i32_0 = arith.constant 0 : i32
    return %c0_i32, %arg0 : i32, i32
  }
}

module attributes {stable_mosaic.version = 11 : i64} {
  func.func @_conv_bn_res_relu_kernel(%arg0: i32, %arg1: memref<576x2xbf16, #tpu.memory_space<vmem>>, %arg2: memref<64x576xbf16, #tpu.memory_space<vmem>>, %arg3: memref<64x1xf32, #tpu.memory_space<vmem>>, %arg4: memref<64x2xf32, #tpu.memory_space<vmem>>, %arg5: memref<64x2xf32, #tpu.memory_space<vmem>>) attributes {dimension_semantics = [#tpu.dimension_semantics<parallel>], iteration_bounds = array<i64: 1>, scalar_prefetch = 0 : i64, scratch_operands = 0 : i64, tpu.core_type = #tpu.core_type<tc>, window_params = [{transform_indices = @transform_0, window_bounds = array<i64: 576, 2>}, {pipeline_mode = #tpu.pipeline_mode<synchronous>, transform_indices = @transform_1, window_bounds = array<i64: 64, 576>}, {pipeline_mode = #tpu.pipeline_mode<synchronous>, transform_indices = @transform_2, window_bounds = array<i64: 64, 1>}, {transform_indices = @transform_3, window_bounds = array<i64: 64, 2>}, {transform_indices = @transform_4, window_bounds = array<i64: 64, 2>}]} {
    %c0 = arith.constant 0 : index
    %c0_0 = arith.constant 0 : index
    %0 = vector.load %arg2[%c0, %c0_0] : memref<64x576xbf16, #tpu.memory_space<vmem>>, vector<64x576xbf16>
    %c0_1 = arith.constant 0 : index
    %c0_2 = arith.constant 0 : index
    %1 = vector.load %arg1[%c0_1, %c0_2] : memref<576x2xbf16, #tpu.memory_space<vmem>>, vector<576x2xbf16>
    %cst = arith.constant dense<0.000000e+00> : vector<64x2xf32>
    %2 = tpu.matmul %0, %1, %cst {dimension_numbers = #tpu.dot_dimension_numbers<[1], [0], [0], [1], [0, 0, 1, 1], [], []>} : vector<64x576xbf16>, vector<576x2xbf16>, vector<64x2xf32> -> vector<64x2xf32>
    %c0_3 = arith.constant 0 : index
    %c0_4 = arith.constant 0 : index
    %3 = vector.load %arg3[%c0_3, %c0_4] : memref<64x1xf32, #tpu.memory_space<vmem>>, vector<64x1xf32>
    %4 = vector.broadcast %3 : vector<64x1xf32> to vector<64x2xf32>
    %5 = arith.addf %2, %4 : vector<64x2xf32>
    %c0_5 = arith.constant 0 : index
    %c0_6 = arith.constant 0 : index
    %6 = vector.load %arg4[%c0_5, %c0_6] : memref<64x2xf32, #tpu.memory_space<vmem>>, vector<64x2xf32>
    %7 = arith.addf %5, %6 : vector<64x2xf32>
    %cst_7 = arith.constant 0.000000e+00 : f32
    %8 = vector.broadcast %cst_7 : f32 to vector<64x2xf32>
    %9 = arith.maximumf %7, %8 : vector<64x2xf32>
    %c0_8 = arith.constant 0 : index
    %c0_9 = arith.constant 0 : index
    %10 = vector.load %arg5[%c0_8, %c0_9] : memref<64x2xf32, #tpu.memory_space<vmem>>, vector<64x2xf32>
    tpu.vector_store %arg5[%c0_8, %c0_9], %9 {strides = array<i32>} : memref<64x2xf32, #tpu.memory_space<vmem>>, vector<64x2xf32>,
    return
  }
  func.func @transform_0(%arg0: i32) -> (i32, i32) {
    %c0_i32 = arith.constant 0 : i32
    %c0_i32_0 = arith.constant 0 : i32
    return %c0_i32, %arg0 : i32, i32
  }
  func.func @transform_1(%arg0: i32) -> (i32, i32) {
    %c0_i32 = arith.constant 0 : i32
    %c0_i32_0 = arith.constant 0 : i32
    %c0_i32_1 = arith.constant 0 : i32
    return %c0_i32, %c0_i32_0 : i32, i32
  }
  func.func @transform_2(%arg0: i32) -> (i32, i32) {
    %c0_i32 = arith.constant 0 : i32
    %c0_i32_0 = arith.constant 0 : i32
    %c0_i32_1 = arith.constant 0 : i32
    return %c0_i32, %c0_i32_0 : i32, i32
  }
  func.func @transform_3(%arg0: i32) -> (i32, i32) {
    %c0_i32 = arith.constant 0 : i32
    %c0_i32_0 = arith.constant 0 : i32
    return %c0_i32, %arg0 : i32, i32
  }
  func.func @transform_4(%arg0: i32) -> (i32, i32) {
    %c0_i32 = arith.constant 0 : i32
    %c0_i32_0 = arith.constant 0 : i32
    return %c0_i32, %arg0 : i32, i32
  }
}

module attributes {stable_mosaic.version = 11 : i64} {
  func.func @_avgpool_kernel(%arg0: i32, %arg1: memref<64x2x1xf32, #tpu.memory_space<vmem>>, %arg2: memref<64x2xf32, #tpu.memory_space<vmem>>) attributes {dimension_semantics = [#tpu.dimension_semantics<arbitrary>], iteration_bounds = array<i64: 1>, scalar_prefetch = 0 : i64, scratch_operands = 0 : i64, tpu.core_type = #tpu.core_type<tc>, window_params = [{pipeline_mode = #tpu.pipeline_mode<synchronous>, transform_indices = @transform_0, window_bounds = array<i64: 64, 2, 1>}, {pipeline_mode = #tpu.pipeline_mode<synchronous>, transform_indices = @transform_1, window_bounds = array<i64: 64, 2>}]} {
    %c0 = arith.constant 0 : index
    %c0_0 = arith.constant 0 : index
    %c0_1 = arith.constant 0 : index
    %0 = vector.load %arg1[%c0, %c0_0, %c0_1] : memref<64x2x1xf32, #tpu.memory_space<vmem>>, vector<64x2x1xf32>
    %cst = arith.constant dense<0.000000e+00> : vector<64x2xf32>
    %1 = vector.multi_reduction <add>, %0, %cst [2] : vector<64x2x1xf32> to vector<64x2xf32>
    %cst_2 = arith.constant 1.000000e+00 : f32
    %2 = vector.broadcast %cst_2 : f32 to vector<64x2xf32>
    %3 = arith.divf %1, %2 : vector<64x2xf32>
    %c0_3 = arith.constant 0 : index
    %c0_4 = arith.constant 0 : index
    %4 = vector.load %arg2[%c0_3, %c0_4] : memref<64x2xf32, #tpu.memory_space<vmem>>, vector<64x2xf32>
    tpu.vector_store %arg2[%c0_3, %c0_4], %3 {strides = array<i32>} : memref<64x2xf32, #tpu.memory_space<vmem>>, vector<64x2xf32>,
    return
  }
  func.func @transform_0(%arg0: i32) -> (i32, i32, i32) {
    %c0_i32 = arith.constant 0 : i32
    %c0_i32_0 = arith.constant 0 : i32
    %c0_i32_1 = arith.constant 0 : i32
    %c0_i32_2 = arith.constant 0 : i32
    return %c0_i32, %c0_i32_0, %c0_i32_1 : i32, i32, i32
  }
  func.func @transform_1(%arg0: i32) -> (i32, i32) {
    %c0_i32 = arith.constant 0 : i32
    %c0_i32_0 = arith.constant 0 : i32
    %c0_i32_1 = arith.constant 0 : i32
    return %c0_i32, %c0_i32_0 : i32, i32
  }
}

</mosaic_0001>

<bundles_post_ra>
// kernel: urresnet_forward.22
= control target key start
LH: loop header
LB: loop body
LE: loop exit
PB: predicated region body
PF: predicated region fallthrough
CT: control target
= control target key end

     0   :  { %vm260_vm0 = vcmask 1040384   ;;  %vm261_vm1 = vcmask 1041408   ;;  %v579_v9 = vmov 65535   ;;  %vm256_vm2 = vcmask 154624   ;;  %s870_s0 = inlined_call_operand.vmem [shape: bf16[147,512], index: 0, kind: input, shape index: {}]   ;;  %s871_s1 = inlined_call_operand.vmem [shape: bf16[8,147], index: 1, kind: input, shape index: {}]   ;;  %s872_s2 = inlined_call_operand.vmem [shape: f32[8,1], index: 2, kind: input, shape index: {}]   ;;  %s873_s3 = inlined_call_operand.vmem [shape: f32[8,512], index: 3, kind: output, shape index: {}]  }
   0x1   :  { %v506_v0 = vld [vmem:[%s870_s0 + $0xe0] sm:$0xf]  ;;  %v570_v1 = vld [vmem:[%s870_s0 + $0xec] sm:$0xf0]  ;;  %v568_v2 = vld [vmem:[%s870_s0 + $0xe4] sm:$0xf] }
   0x2   :  { %v507_v3 = vor.u32 %v570_v1, %v506_v0  ;;  %v508_v4 = vld [vmem:[%s870_s0 + $0xf0] sm:$0xf0]  ;;  %v490_v5 = vld [vmem:[%s870_s0 + $0xc0] sm:$0xf]  ;;  %v566_v6 = vld [vmem:[%s870_s0 + $0xcc] sm:$0xf0] }
   0x3   :  { %v511_v7 = vor.u32 %v568_v2, %v508_v4  ;;  %v622_v8 = vld [vmem:[%s870_s0 + $0x120] sm:$0x33]  ;;  %v262_v10 = vsel %vm260_vm0, 4294967295, %v579_v9  ;;  %v491_v12 = vor.u32 %v566_v6, %v490_v5  ;;  %v492_v14 = vld [vmem:[%s870_s0 + $0xd0] sm:$0xf0] }
   0x4   :  { %v564_v11 = vld [vmem:[%s870_s0 + $0xc4] sm:$0xf]  ;;  %276 = vmatpush.bf16.msra.mxu0 %v507_v3  ;;  %v176_v13 = vunpack.c.l.b16 %v622_v8  ;;  %v634_v15 = vld [vmem:[%s870_s0 + $0x128] sm:$0x33]  ;;  %v637_v16 = vsel %vm261_vm1, %v262_v10, 0 }
   0x5   :  { %302 = vmatpush.bf16.msra.mxu2 %v511_v7  ;;  %v495_v17 = vor.u32 %v564_v11, %v492_v14  ;;  %v178_v18 = vunpack.c.l.b16 %v634_v15  ;;  %v474_v19 = vld [vmem:[%s870_s0 + $0xa0] sm:$0xf]  ;;  %v562_v20 = vld [vmem:[%s870_s0 + $0xac] sm:$0xf0]  ;;  %v560_v24 = vld [vmem:[%s870_s0 + $0xa4] sm:$0xf] }
   0x6   :  { %v649_v21 = vld [vmem:[%s871_s1] sm:$0xff]  ;;  %v216_v22 = vpack.c.b16 %v176_v13, %v176_v13  ;;  %v476_v25 = vld [vmem:[%s870_s0 + $0xb0] sm:$0xf0]  ;;  %v574_v27 = vld [vmem:[%s870_s0 + $0x10c] sm:$0xf0]  ;;  %v475_v31 = vor.u32 %v562_v20, %v474_v19  ;;  %v179_v19 = vunpack.c.h.b16 %v634_v15 }
   0x7   :  { %v522_v23 = vld [vmem:[%s870_s0 + $0x100] sm:$0xf]  ;;  %v218_v26 = vpack.c.b16 %v178_v18, %v178_v18  ;;  %v530_v28 = vld [vmem:[%s870_s0 + $0x108] sm:$0xf]  ;;  %v575_v29 = vld [vmem:[%s870_s0 + $0x114] sm:$0xf0]  ;;  %v479_v36 = vor.u32 %v560_v24, %v476_v25  ;;  %v62_v40 = vunpack.c.h.b16 %v649_v21 }
   0x8   :  { %277 = vmatpush.bf16.msra.mxu0 %v491_v12  ;;  %v265_v30 = vand.u32 %v637_v16, %v216_v22  ;;  %v514_v32 = vld [vmem:[%s870_s0 + $0xe8] sm:$0xf]  ;;  %v571_v33 = vld [vmem:[%s870_s0 + $0xf4] sm:$0xf0]  ;;  %v569_v34 = vld [vmem:[%s870_s0 + $0xec] sm:$0xf]  ;;  %v523_v41 = vor.u32 %v574_v27, %v522_v23  ;;  %v531_v44 = vor.u32 %v575_v29, %v530_v28  ;;  %v177_v23 = vunpack.c.h.b16 %v622_v8 }
   0x9   :  { %303 = vmatpush.bf16.msra.mxu2 %v495_v17  ;;  %v271_v35 = vand.u32 %v637_v16, %v218_v26  ;;  %v516_v37 = vld [vmem:[%s870_s0 + $0xf8] sm:$0xf0]  ;;  %v458_v38 = vld [vmem:[%s870_s0 + $0x80] sm:$0xf]  ;;  %v558_v39 = vld [vmem:[%s870_s0 + $0x8c] sm:$0xf0]  ;;  %v515_v45 = vor.u32 %v571_v33, %v514_v32  ;;  %v714_v55 = vpack.c.b16 %v62_v40, %v62_v40  ;;  %v219_v32 = vpack.c.b16 %v179_v19, %v179_v19 }
   0xa   :  { %295 = vmatpush.bf16.msra.mxu1 %v265_v30  ;;  %v556_v42 = vld [vmem:[%s870_s0 + $0x84] sm:$0xf]  ;;  %v460_v43 = vld [vmem:[%s870_s0 + $0x90] sm:$0xf0]  ;;  %v519_v46 = vor.u32 %v569_v34, %v516_v37  ;;  %v459_v47 = vor.u32 %v558_v39, %v458_v38  ;;  %v498_v48 = vld [vmem:[%s870_s0 + $0xc8] sm:$0xf]  ;;  %v61_v38 = vunpack.c.l.b16 %v649_v21 }
   0xb   :  { %347 = vmatpush.bf16.msra.mxu3 %v271_v35  ;;  %v567_v49 = vld [vmem:[%s870_s0 + $0xd4] sm:$0xf0]  ;;  %v565_v50 = vld [vmem:[%s870_s0 + $0xcc] sm:$0xf]  ;;  %v463_v51 = vor.u32 %v556_v42, %v460_v43  ;;  %v500_v52 = vld [vmem:[%s870_s0 + $0xd8] sm:$0xf0]  ;;  %v217_v35 = vpack.c.b16 %v177_v23, %v177_v23 }
   0xc   :  { %278 = vmatpush.bf16.msra.mxu0 %v475_v31  ;;  %v442_v53 = vld [vmem:[%s870_s0 + $0x60] sm:$0xf]  ;;  %v554_v54 = vld [vmem:[%s870_s0 + $0x6c] sm:$0xf0]  ;;  %v552_v56 = vld [vmem:[%s870_s0 + $0x64] sm:$0xf]  ;;  %v499_v58 = vor.u32 %v567_v49, %v498_v48  ;;  %v503_v59 = vor.u32 %v565_v50, %v500_v52 }
   0xd   :  { %304 = vmatpush.bf16.msra.mxu2 %v479_v36  ;;  %v444_v57 = vld [vmem:[%s870_s0 + $0x70] sm:$0xf0]  ;;  %v443_v60 = vor.u32 %v554_v54, %v442_v53  ;;  %v482_v61 = vld [vmem:[%s870_s0 + $0xa8] sm:$0xf]  ;;  %v563_v62 = vld [vmem:[%s870_s0 + $0xb4] sm:$0xf0] }
   0xe   :  { %296 = vmatpush.bf16.msra.mxu1 %v523_v41  ;;  %v561_v63 = vld [vmem:[%s870_s0 + $0xac] sm:$0xf]  ;;  %v447_v0 = vor.u32 %v552_v56, %v444_v57  ;;  %v484_v1 = vld [vmem:[%s870_s0 + $0xb8] sm:$0xf0]  ;;  %v426_v2 = vld [vmem:[%s870_s0 + $0x40] sm:$0xf]  ;;  %v483_v6 = vor.u32 %v563_v62, %v482_v61 }
   0xf   :  { %348 = vmatpush.bf16.msra.mxu3 %v531_v44  ;;  %v550_v3 = vld [vmem:[%s870_s0 + $0x4c] sm:$0xf0]  ;;  %v548_v4 = vld [vmem:[%s870_s0 + $0x44] sm:$0xf]  ;;  %v428_v5 = vld [vmem:[%s870_s0 + $0x50] sm:$0xf0]  ;;  %v487_v7 = vor.u32 %v561_v63, %v484_v1 }
  0x10   :  { %279 = vmatpush.bf16.msra.mxu0 %v459_v47  ;;  %v427_v9 = vor.u32 %v550_v3, %v426_v2  ;;  %v466_v10 = vld [vmem:[%s870_s0 + $0x88] sm:$0xf]  ;;  %v559_v11 = vld [vmem:[%s870_s0 + $0x94] sm:$0xf0]  ;;  %v557_v12 = vld [vmem:[%s870_s0 + $0x8c] sm:$0xf]  ;;  %v431_v13 = vor.u32 %v548_v4, %v428_v5  ;;  %v268_v47 = vand.u32 %v637_v16, %v217_v35 }
  0x11   :  { %305 = vmatpush.bf16.msra.mxu2 %v463_v51  ;;  %536 = vmatmul.msk.bf16.vlgmr.msra.gmra.mxu1 %vm256_vm2, %v714_v55  ;;  %v468_v14 = vld [vmem:[%s870_s0 + $0x98] sm:$0xf0]  ;;  %v410_v17 = vld [vmem:[%s870_s0 + $0x20] sm:$0xf]  ;;  %v546_v18 = vld [vmem:[%s870_s0 + $0x2c] sm:$0xf0]  ;;  %v467_v24 = vor.u32 %v559_v11, %v466_v10  ;;  %v63_v51 = vpack.c.b16 %v61_v38, %v61_v38 }
  0x12   :  { %328 = vmatpush.bf16.msrb.mxu1 %v515_v45  ;;  %538 = vmatmul.msk.bf16.vlgmr.msra.gmra.mxu3 %vm256_vm2, %v714_v55  ;;  %v544_v20 = vld [vmem:[%s870_s0 + $0x24] sm:$0xf]  ;;  %v412_v22 = vld [vmem:[%s870_s0 + $0x30] sm:$0xf0]  ;;  %v471_v25 = vor.u32 %v557_v12, %v468_v14  ;;  %v411_v26 = vor.u32 %v546_v18, %v410_v17  ;;  %v450_v15 = vld [vmem:[%s870_s0 + $0x68] sm:$0xf] }
  0x13   :  { %354 = vmatpush.bf16.msrb.mxu3 %v519_v46  ;;  %v555_v27 = vld [vmem:[%s870_s0 + $0x74] sm:$0xf0]  ;;  %v553_v28 = vld [vmem:[%s870_s0 + $0x6c] sm:$0xf]  ;;  %v415_v8 = vor.u32 %v544_v20, %v412_v22  ;;  %v452_v29 = vld [vmem:[%s870_s0 + $0x78] sm:$0xf0]  ;;  %v274_v46 = vand.u32 %v637_v16, %v219_v32 }
  0x14   :  { %280 = vmatpush.bf16.msra.mxu0 %v443_v60  ;;  %v394_v30 = vld [vmem:[%s870_s0] sm:$0xf]  ;;  %v542_v31 = vld [vmem:[%s870_s0 + $0xc] sm:$0xf0]  ;;  %v540_v33 = vld [vmem:[%s870_s0 + $0x4] sm:$0xf]  ;;  %v451_v37 = vor.u32 %v555_v27, %v450_v15  ;;  %v455_v40 = vor.u32 %v553_v28, %v452_v29 }
  0x15   :  { %306 = vmatpush.bf16.msra.mxu2 %v447_v0  ;;  %v396_v34 = vld [vmem:[%s870_s0 + $0x10] sm:$0xf0]  ;;  %v54_v36 = vld [vmem:[%s872_s2] sm:$0xff]  ;;  %v580_v39 = vmov 0   ;;  %v395_v41 = vor.u32 %v542_v31, %v394_v30  ;;  %v434_v42 = vld [vmem:[%s870_s0 + $0x48] sm:$0xf] }
  0x16   :  { %329 = vmatpush.bf16.msrb.mxu1 %v499_v58  ;;  %578 = vset.pattern.permute.xlu0 %v580_v39  ;;  %v551_v43 = vld [vmem:[%s870_s0 + $0x54] sm:$0xf0]  ;;  %v399_v44 = vor.u32 %v540_v33, %v396_v34  ;;  %v549_v21 = vld [vmem:[%s870_s0 + $0x4c] sm:$0xf]  ;;  %v436_v45 = vld [vmem:[%s870_s0 + $0x58] sm:$0xf0] }
  0x17   :  { %355 = vmatpush.bf16.msrb.mxu3 %v503_v59  ;;  %57 = vperm.xlu0 %578, %v54_v36   ;;  %v573_v48 = vld [vmem:[%s870_s0 + $0x10c] sm:$0xf]  ;;  %v532_v49 = vld [vmem:[%s870_s0 + $0x118] sm:$0xf0]  ;;  %v435_v50 = vor.u32 %v551_v43, %v434_v42  ;;  %v572_v52 = vld [vmem:[%s870_s0 + $0x104] sm:$0xf]  ;;  %v439_v16 = vor.u32 %v549_v21, %v436_v45 }
  0x18   :  { %281 = vmatpush.bf16.msra.mxu0 %v427_v9  ;;  %v524_v53 = vld [vmem:[%s870_s0 + $0x110] sm:$0xf0]  ;;  %v418_v54 = vld [vmem:[%s870_s0 + $0x28] sm:$0xf]  ;;  %v547_v56 = vld [vmem:[%s870_s0 + $0x34] sm:$0xf0]  ;;  %v535_v59 = vor.u32 %v573_v48, %v532_v49 }
  0x19   :  { %307 = vmatpush.bf16.msra.mxu2 %v431_v13  ;;  %v545_v57 = vld [vmem:[%s870_s0 + $0x2c] sm:$0xf]  ;;  %v420_v58 = vld [vmem:[%s870_s0 + $0x38] sm:$0xf0]  ;;  %v527_v60 = vor.u32 %v572_v52, %v524_v53  ;;  %v419_v61 = vor.u32 %v547_v56, %v418_v54  ;;  %v402_v63 = vld [vmem:[%s870_s0 + $0x8] sm:$0xf] }
  0x1a   :  { %330 = vmatpush.bf16.msrb.mxu1 %v483_v6  ;;  %v423_v62 = vor.u32 %v545_v57, %v420_v58  ;;  %v543_v0 = vld [vmem:[%s870_s0 + $0x14] sm:$0xf0]  ;;  %v541_v1 = vld [vmem:[%s870_s0 + $0xc] sm:$0xf]  ;;  %v404_v2 = vld [vmem:[%s870_s0 + $0x18] sm:$0xf0] }
  0x1b   :  { %356 = vmatpush.bf16.msrb.mxu3 %v487_v7  ;;  %v403_v3 = vor.u32 %v543_v0, %v402_v63  ;;  %v407_v4 = vor.u32 %v541_v1, %v404_v2 }
  0x1c   :  { %282 = vmatpush.bf16.msra.mxu0 %v411_v26 }
  0x1d   :  { %308 = vmatpush.bf16.msra.mxu2 %v415_v8 }
  0x1e   :  { %331 = vmatpush.bf16.msrb.mxu1 %v467_v24 }
  0x1f   :  { %357 = vmatpush.bf16.msrb.mxu3 %v471_v25 }
  0x20   :  { %283 = vmatpush.bf16.msra.mxu0 %v395_v41 }
  0x21   :  { %309 = vmatpush.bf16.msra.mxu2 %v399_v44 }
  0x22   :  { %332 = vmatpush.bf16.msrb.mxu1 %v451_v37 }
  0x23   :  { %358 = vmatpush.bf16.msrb.mxu3 %v455_v40  ;;  %284 = vmatmul.bf16.vlgmr.msra.gmra.mxu0 %v63_v51 }
  0x24   :  { %373 = vmatpush.bf16.msrb.mxu0 %v274_v46  ;;  %310 = vmatmul.bf16.vlgmr.msra.gmra.mxu2 %v63_v51 }
  0x25   :  { %321 = vmatpush.bf16.msrb.mxu2 %v268_v47 }
  0x26   :  { %333 = vmatpush.bf16.msrb.mxu1 %v435_v50 }
  0x27   :  { %359 = vmatpush.bf16.msrb.mxu3 %v439_v16 }
  0x28   :  { %374 = vmatpush.bf16.msrb.mxu0 %v535_v59 }
  0x29   :  { %322 = vmatpush.bf16.msrb.mxu2 %v527_v60 }
  0x2a   :  { %334 = vmatpush.bf16.msrb.mxu1 %v419_v61 }
  0x2b   :  { %360 = vmatpush.bf16.msrb.mxu3 %v423_v62 }
  0x2e   :  { %335 = vmatpush.bf16.msrb.mxu1 %v403_v3 }
  0x2f   :  { %361 = vmatpush.bf16.msrb.mxu3 %v407_v4 }
  0x31   :  { %336 = vmatmul.bf16.vlgmr.msrb.gmra.mxu1 %v63_v51 }
  0x32   :  { %362 = vmatmul.bf16.vlgmr.msrb.gmra.mxu3 %v63_v51 }
  0x33   :  { %539 = vmatmul.msk.bf16.vlgmr.msrb.gmra.mxu0 %vm256_vm2, %v714_v55 }
  0x34   :  { %537 = vmatmul.msk.bf16.vlgmr.msrb.gmra.mxu2 %vm256_vm2, %v714_v55 }
  0x89   :  { %v58_v10 = vpop.permute.xlu0 %57 }
  0x8e   :  { %v298_v5 = vpop.f32.mrf.mxu1 }
  0x95   :  { %v350_v6 = vpop.f32.mrf.mxu3 }
  0x96   :  { %v300_v7 = vpop.f32.mrf.mxu1 }
  0x9d   :  { %v352_v9 = vpop.f32.mrf.mxu3 }
  0xa0   :  { %v285_v11 = vpop.f32.mrf.mxu0 }
  0xa1   :  { %v286_v12 = vadd.f32 %v285_v11, %v58_v10 }
  0xa3   :  { %v299_v13 = vadd.f32 %v298_v5, %v286_v12 }
  0xa5   :  { %v380_v14 = vmax.f32 %v299_v13, 0.0 }
  0xa7   :  { %v311_v17 = vpop.f32.mrf.mxu2  ;;  %384 = vst [vmem:[%s873_s3] sm:$0xff] %v380_v14 }
  0xa8   :  { %v287_v18 = vpop.f32.mrf.mxu0  ;;  %v312_v28 = vadd.f32 %v311_v17, %v58_v10 }
  0xae   :  { %v337_v19 = vpop.f32.mrf.mxu1 }
  0xaf   :  { %v338_v20 = vadd.f32 %v337_v19, %v58_v10  ;;  %v313_v23 = vpop.f32.mrf.mxu2 }
  0xb0   :  { %v376_v24 = vpop.f32.mrf.mxu0 }
  0xb1   :  { %v351_v22 = vadd.f32 %v350_v6, %v338_v20 }
  0xb3   :  { %v382_v55 = vmax.f32 %v351_v22, 0.0 }
  0xb5   :  { %386 = vst [vmem:[%s873_s3 + $0x10] sm:$0xff] %v382_v55  ;;  %v363_v25 = vpop.f32.mrf.mxu3 }
  0xb6   :  { %v364_v26 = vadd.f32 %v363_v25, %v58_v10  ;;  %v339_v15 = vpop.f32.mrf.mxu1 }
  0xb7   :  { %v324_v29 = vpop.f32.mrf.mxu2 }
  0xb8   :  { %v377_v27 = vadd.f32 %v376_v24, %v364_v26  ;;  %v325_v30 = vadd.f32 %v324_v29, %v312_v28  ;;  %v378_v31 = vpop.f32.mrf.mxu0 }
  0xba   :  { %v383_v8 = vmax.f32 %v377_v27, 0.0  ;;  %v381_v32 = vmax.f32 %v325_v30, 0.0 }
  0xbc   :  { %387 = vst [vmem:[%s873_s3 + $0x18] sm:$0xff] %v383_v8 }
  0xbd   :  { %v365_v33 = vpop.f32.mrf.mxu3  ;;  %385 = vst [vmem:[%s873_s3 + $0x8] sm:$0xff] %v381_v32 }
  0xbf   :  { %v326_v34 = vpop.f32.mrf.mxu2 }

// kernel: urresnet_forward.23
= control target key start
LH: loop header
LB: loop body
LE: loop exit
PB: predicated region body
PF: predicated region fallthrough
CT: control target
= control target key end

     0   :  { %s134_s0 = inlined_call_operand.vmem [shape: f32[8,128], index: 0, kind: input, shape index: {}]   ;;  %s135_s1 = inlined_call_operand.vmem [shape: f32[8,128], index: 1, kind: input, shape index: {}]   ;;  %s136_s2 = inlined_call_operand.vmem [shape: f32[8,128], index: 2, kind: input, shape index: {}]   ;;  %s137_s3 = inlined_call_operand.vmem [shape: f32[8,128], index: 3, kind: input, shape index: {}]   ;;  %s138_s4 = inlined_call_operand.vmem [shape: f32[8,128], index: 4, kind: input, shape index: {}]   ;;  %s139_s5 = inlined_call_operand.vmem [shape: f32[8,128], index: 5, kind: input, shape index: {}]   ;;  %s140_s6 = inlined_call_operand.vmem [shape: f32[8,128], index: 6, kind: input, shape index: {}]   ;;  %s141_s7 = inlined_call_operand.vmem [shape: f32[8,128], index: 7, kind: input, shape index: {}]   ;;  %s142_s8 = inlined_call_operand.vmem [shape: f32[8,128], index: 8, kind: input, shape index: {}]   ;;  %s143_s9 = inlined_call_operand.vmem [shape: f32[8,128], index: 9, kind: output, shape index: {}]  }
   0x1   :  { %v32_v0 = vld [vmem:[%s134_s0] sm:$0xff] }
   0x2   :  { %v33_v1 = vld [vmem:[%s135_s1] sm:$0xff] }
   0x3   :  { %v35_v2 = vld [vmem:[%s136_s2] sm:$0xff]  ;;  %v34_v3 = vmax.f32 %v32_v0, %v33_v1 }
   0x4   :  { %v36_v4 = vld [vmem:[%s137_s3] sm:$0xff] }
   0x5   :  { %v39_v5 = vld [vmem:[%s138_s4] sm:$0xff]  ;;  %v37_v7 = vmax.f32 %v35_v2, %v36_v4 }
   0x6   :  { %v40_v6 = vld [vmem:[%s139_s5] sm:$0xff] }
   0x7   :  { %v41_v8 = vmax.f32 %v39_v5, %v40_v6  ;;  %v42_v9 = vld [vmem:[%s140_s6] sm:$0xff]  ;;  %v38_v12 = vmax.f32 %v34_v3, %v37_v7 }
   0x8   :  { %v43_v10 = vld [vmem:[%s141_s7] sm:$0xff] }
   0x9   :  { %v44_v11 = vmax.f32 %v42_v9, %v43_v10  ;;  %v47_v14 = vld [vmem:[%s142_s8] sm:$0xff] }
   0xb   :  { %v45_v13 = vmax.f32 %v41_v8, %v44_v11 }
   0xd   :  { %v46_v15 = vmax.f32 %v38_v12, %v45_v13 }
   0xf   :  { %v48_v16 = vmax.f32 %v46_v15, %v47_v14 }
  0x11   :  { %49 = vst [vmem:[%s143_s9] sm:$0xff] %v48_v16 }

// kernel: urresnet_forward.25
= control target key start
LH: loop header
LB: loop body
LE: loop exit
PB: predicated region body
PF: predicated region fallthrough
CT: control target
= control target key end

     0   :  { %v113_v1 = vmov 0   ;;  %vm65_vm0 = vcmask 1043456   ;;  %vm61_vm1 = vcmask 588800   ;;  %s166_s0 = inlined_call_operand.vmem [shape: bf16[72,128], index: 0, kind: input, shape index: {}]   ;;  %s167_s2 = inlined_call_operand.vmem [shape: f32[8,1], index: 2, kind: input, shape index: {}]   ;;  %s168_s1 = inlined_call_operand.vmem [shape: bf16[8,72], index: 1, kind: input, shape index: {}]   ;;  %s169_s3 = inlined_call_operand.vmem [shape: f32[8,128], index: 3, kind: input, shape index: {}]   ;;  %s170_s4 = inlined_call_operand.vmem [shape: f32[8,128], index: 4, kind: output, shape index: {}]  }
   0x1   :  { %v27_v0 = vld [vmem:[%s166_s0 + $0x20] sm:$0xf]  ;;  %112 = vset.pattern.permute.xlu0 %v113_v1  ;;  %v110_v6 = vld [vmem:[%s166_s0 + $0x18] sm:$0xff]  ;;  %v109_v7 = vld [vmem:[%s166_s0 + $0x10] sm:$0xff] }
   0x2   :  { %v51_v2 = vunpack.c.l.b16 %v27_v0  ;;  %v28_v3 = vld [vmem:[%s167_s2] sm:$0xff]  ;;  %v108_v8 = vld [vmem:[%s166_s0 + $0x8] sm:$0xff] }
   0x3   :  { %31 = vperm.xlu0 %112, %v28_v3   ;;  %v107_v9 = vld [vmem:[%s166_s0] sm:$0xff] }
   0x4   :  { %v56_v4 = vpack.c.b16 %v51_v2, %v51_v2  ;;  %v18_v10 = vld [vmem:[%s168_s1] sm:$0xf] }
   0x5   :  { %v82_v13 = vld [vmem:[%s169_s3] sm:$0xff] }
   0x6   :  { %v67_v5 = vsel %vm65_vm0, %v56_v4, 0 }
   0x7   :  { %72 = vmatpush.bf16.msra.mxu0 %v67_v5 }
   0xb   :  { %73 = vmatpush.bf16.msra.mxu0 %v110_v6 }
   0xf   :  { %74 = vmatpush.bf16.msra.mxu0 %v109_v7 }
  0x13   :  { %75 = vmatpush.bf16.msra.mxu0 %v108_v8 }
  0x17   :  { %76 = vmatpush.bf16.msra.mxu0 %v107_v9 }
  0x1a   :  { %106 = vmatmul.msk.bf16.vlgmr.msra.gmra.mxu0 %vm61_vm1, %v18_v10 }
  0x75   :  { %v32_v11 = vpop.permute.xlu0 %31 }
  0x97   :  { %v78_v12 = vpop.f32.mrf.mxu0 }
  0x98   :  { %v79_v14 = vadd.f32 %v78_v12, %v32_v11 }
  0x9a   :  { %v83_v15 = vadd.f32 %v82_v13, %v79_v14 }
  0x9c   :  { %v84_v16 = vmax.f32 %v83_v15, 0.0 }
  0x9e   :  { %85 = vst [vmem:[%s170_s4] sm:$0xff] %v84_v16 }
  0x9f   :  { %v80_v17 = vpop.f32.mrf.mxu0 }

// kernel: urresnet_forward.24
= control target key start
LH: loop header
LB: loop body
LE: loop exit
PB: predicated region body
PF: predicated region fallthrough
CT: control target
= control target key end

     0   :  { %v108_v1 = vmov 0   ;;  %vm62_vm0 = vcmask 1043456   ;;  %vm58_vm1 = vcmask 588800   ;;  %s153_s0 = inlined_call_operand.vmem [shape: bf16[72,128], index: 0, kind: input, shape index: {}]   ;;  %s154_s2 = inlined_call_operand.vmem [shape: f32[8,1], index: 2, kind: input, shape index: {}]   ;;  %s155_s1 = inlined_call_operand.vmem [shape: bf16[8,72], index: 1, kind: input, shape index: {}]   ;;  %s156_s3 = inlined_call_operand.vmem [shape: f32[8,128], index: 3, kind: output, shape index: {}]  }
   0x1   :  { %v24_v0 = vld [vmem:[%s153_s0 + $0x20] sm:$0xf]  ;;  %107 = vset.pattern.permute.xlu0 %v108_v1  ;;  %v105_v6 = vld [vmem:[%s153_s0 + $0x18] sm:$0xff]  ;;  %v104_v7 = vld [vmem:[%s153_s0 + $0x10] sm:$0xff] }
   0x2   :  { %v48_v2 = vunpack.c.l.b16 %v24_v0  ;;  %v25_v3 = vld [vmem:[%s154_s2] sm:$0xff]  ;;  %v103_v8 = vld [vmem:[%s153_s0 + $0x8] sm:$0xff] }
   0x3   :  { %28 = vperm.xlu0 %107, %v25_v3   ;;  %v102_v9 = vld [vmem:[%s153_s0] sm:$0xff] }
   0x4   :  { %v53_v4 = vpack.c.b16 %v48_v2, %v48_v2  ;;  %v15_v10 = vld [vmem:[%s155_s1] sm:$0xf] }
   0x6   :  { %v64_v5 = vsel %vm62_vm0, %v53_v4, 0 }
   0x7   :  { %69 = vmatpush.bf16.msra.mxu0 %v64_v5 }
   0xb   :  { %70 = vmatpush.bf16.msra.mxu0 %v105_v6 }
   0xf   :  { %71 = vmatpush.bf16.msra.mxu0 %v104_v7 }
  0x13   :  { %72 = vmatpush.bf16.msra.mxu0 %v103_v8 }
  0x17   :  { %73 = vmatpush.bf16.msra.mxu0 %v102_v9 }
  0x1a   :  { %101 = vmatmul.msk.bf16.vlgmr.msra.gmra.mxu0 %vm58_vm1, %v15_v10 }
  0x75   :  { %v29_v11 = vpop.permute.xlu0 %28 }
  0x97   :  { %v75_v12 = vpop.f32.mrf.mxu0 }
  0x98   :  { %v76_v13 = vadd.f32 %v75_v12, %v29_v11 }
  0x9a   :  { %v79_v14 = vmax.f32 %v76_v13, 0.0 }
  0x9c   :  { %80 = vst [vmem:[%s156_s3] sm:$0xff] %v79_v14 }
  0x9f   :  { %v77_v15 = vpop.f32.mrf.mxu0 }

// kernel: urresnet_forward.28
= control target key start
LH: loop header
LB: loop body
LE: loop exit
PB: predicated region body
PF: predicated region fallthrough
CT: control target
= control target key end

     0   :  { %v129_v1 = vmov 0   ;;  %vm74_vm0 = vcmask 1043456   ;;  %vm70_vm1 = vcmask 588800   ;;  %vm94_vm2 = vcmask 261120   ;;  %s180_s0 = inlined_call_operand.vmem [shape: bf16[72,32], index: 0, kind: input, shape index: {}]   ;;  %s181_s2 = inlined_call_operand.vmem [shape: f32[16,1], index: 2, kind: input, shape index: {}]   ;;  %s182_s1 = inlined_call_operand.vmem [shape: bf16[16,72], index: 1, kind: input, shape index: {}]   ;;  %s183_s3 = inlined_call_operand.vmem [shape: f32[16,32], index: 3, kind: output, shape index: {}]  }
   0x1   :  { %v25_v0 = vld [vmem:[%s180_s0 + $0x20] sm:$0xf]  ;;  %128 = vset.pattern.permute.xlu0 %v129_v1  ;;  %v126_v6 = vld [vmem:[%s180_s0 + $0x18] sm:$0xff]  ;;  %v27_v7 = vld [vmem:[%s181_s2 + $0x8] sm:$0xff] }
   0x2   :  { %v60_v2 = vunpack.c.l.b16 %v25_v0  ;;  %v26_v3 = vld [vmem:[%s181_s2] sm:$0xff]  ;;  %v125_v8 = vld [vmem:[%s180_s0 + $0x10] sm:$0xff]  ;;  %v124_v9 = vld [vmem:[%s180_s0 + $0x8] sm:$0xff] }
   0x3   :  { %30 = vperm.xlu0 %128, %v26_v3   ;;  %v123_v10 = vld [vmem:[%s180_s0] sm:$0xff] }
   0x4   :  { %v65_v4 = vpack.c.b16 %v60_v2, %v60_v2  ;;  %v122_v11 = vld [vmem:[%s182_s1] sm:$0xff] }
   0x6   :  { %v76_v5 = vsel %vm74_vm0, %v65_v4, 0 }
   0x7   :  { %81 = vmatpush.bf16.msra.mxu0 %v76_v5 }
   0xb   :  { %82 = vmatpush.bf16.msra.mxu0 %v126_v6  ;;  %35 = vperm.xlu0 %128, %v27_v7  }
   0xf   :  { %83 = vmatpush.bf16.msra.mxu0 %v125_v8 }
  0x13   :  { %84 = vmatpush.bf16.msra.mxu0 %v124_v9 }
  0x17   :  { %85 = vmatpush.bf16.msra.mxu0 %v123_v10 }
  0x1a   :  { %121 = vmatmul.msk.bf16.vlgmr.msra.gmra.mxu0 %vm70_vm1, %v122_v11 }
  0x75   :  { %v31_v12 = vpop.permute.xlu0 %30 }
  0x7d   :  { %v36_v16 = vpop.permute.xlu0 %35 }
  0x97   :  { %v87_v13 = vpop.f32.mrf.mxu0 }
  0x98   :  { %v88_v14 = vadd.f32 %v87_v13, %v31_v12 }
  0x9a   :  { %v92_v15 = vmax.f32 %v88_v14, 0.0 }
  0x9c   :  { %95 = vst.msk [vmem:[%s183_s3] sm:$0xff] %vm94_vm2, %v92_v15 }
  0x9f   :  { %v89_v17 = vpop.f32.mrf.mxu0 }
  0xa0   :  { %v90_v18 = vadd.f32 %v89_v17, %v36_v16 }
  0xa2   :  { %v93_v19 = vmax.f32 %v90_v18, 0.0 }
  0xa4   :  { %96 = vst.msk [vmem:[%s183_s3 + $0x8] sm:$0xff] %vm94_vm2, %v93_v19 }

// kernel: urresnet_forward.29
= control target key start
LH: loop header
LB: loop body
LE: loop exit
PB: predicated region body
PF: predicated region fallthrough
CT: control target
= control target key end

     0   :  { %vm39_vm0 = vcmask 1043456   ;;  %v72_v1 = vmov 0   ;;  %vm35_vm1 = vcmask 64512   ;;  %vm57_vm2 = vcmask 261120   ;;  %s111_s0 = inlined_call_operand.vmem [shape: bf16[8,32], index: 0, kind: input, shape index: {}]   ;;  %s112_s1 = inlined_call_operand.vmem [shape: bf16[16,8], index: 1, kind: input, shape index: {}]   ;;  %s113_s2 = inlined_call_operand.vmem [shape: f32[16,1], index: 2, kind: input, shape index: {}]   ;;  %s114_s3 = inlined_call_operand.vmem [shape: f32[16,32], index: 3, kind: output, shape index: {}]  }
   0x1   :  { %v17_v0 = vld [vmem:[%s111_s0] sm:$0xf]  ;;  %71 = vset.pattern.permute.xlu0 %v72_v1  ;;  %v19_v5 = vld [vmem:[%s113_s2 + $0x8] sm:$0xff] }
   0x2   :  { %v18_v2 = vld [vmem:[%s113_s2] sm:$0xff]  ;;  %v41_v3 = vsel %vm39_vm0, %v17_v0, 0 }
   0x3   :  { %v69_v4 = vld [vmem:[%s112_s1] sm:$0xff]  ;;  %22 = vperm.xlu0 %71, %v18_v2   ;;  %50 = vmatpush.bf16.msra.mxu0 %v41_v3 }
   0x6   :  { %68 = vmatmul.msk.bf16.vlgmr.msra.gmra.mxu0 %vm35_vm1, %v69_v4 }
   0xb   :  { %27 = vperm.xlu0 %71, %v19_v5  }
  0x75   :  { %v23_v6 = vpop.permute.xlu0 %22 }
  0x7d   :  { %v28_v9 = vpop.permute.xlu0 %27 }
  0x83   :  { %v52_v7 = vpop.f32.mrf.mxu0 }
  0x84   :  { %v53_v8 = vadd.f32 %v52_v7, %v23_v6 }
  0x86   :  { %58 = vst.msk [vmem:[%s114_s3] sm:$0xff] %vm57_vm2, %v53_v8 }
  0x8b   :  { %v54_v10 = vpop.f32.mrf.mxu0 }
  0x8c   :  { %v55_v11 = vadd.f32 %v54_v10, %v28_v9 }
  0x8e   :  { %59 = vst.msk [vmem:[%s114_s3 + $0x8] sm:$0xff] %vm57_vm2, %v55_v11 }

// kernel: urresnet_forward.31
= control target key start
LH: loop header
LB: loop body
LE: loop exit
PB: predicated region body
PF: predicated region fallthrough
CT: control target
= control target key end

     0   :  { %v209_v4 = vmov 0   ;;  %vm110_vm0 = vcmask 130048   ;;  %vm144_vm1 = vcmask 261120   ;;  %s281_s0 = inlined_call_operand.vmem [shape: bf16[144,32], index: 0, kind: input, shape index: {}]   ;;  %s282_s1 = inlined_call_operand.vmem [shape: bf16[16,144], index: 1, kind: input, shape index: {}]   ;;  %s283_s2 = inlined_call_operand.vmem [shape: f32[16,1], index: 2, kind: input, shape index: {}]   ;;  %s284_s3 = inlined_call_operand.vmem [shape: f32[16,32], index: 3, kind: output, shape index: {}]  }
   0x1   :  { %v205_v0 = vld [vmem:[%s281_s0 + $0x38] sm:$0xff]  ;;  %v204_v1 = vld [vmem:[%s281_s0 + $0x30] sm:$0xff]  ;;  %v206_v2 = vld [vmem:[%s281_s0 + $0x40] sm:$0xff]  ;;  %208 = vset.pattern.permute.xlu0 %v209_v4 }
   0x2   :  { %114 = vmatpush.bf16.msra.mxu0 %v205_v0  ;;  %v196_v3 = vld [vmem:[%s282_s1 + $0x4] sm:$0xf]  ;;  %v155_v5 = vld [vmem:[%s282_s1 + $0x8] sm:$0xf0]  ;;  %135 = vmatpush.bf16.msra.mxu1 %v206_v2  ;;  %v201_v11 = vld [vmem:[%s281_s0 + $0x18] sm:$0xff] }
   0x3   :  { %v158_v6 = vor.u32 %v196_v3, %v155_v5  ;;  %v35_v7 = vld [vmem:[%s283_s2] sm:$0xff]  ;;  %v203_v8 = vld [vmem:[%s281_s0 + $0x28] sm:$0xff]  ;;  %v200_v12 = vld [vmem:[%s281_s0 + $0x10] sm:$0xff] }
   0x4   :  { %39 = vperm.xlu0 %208, %v35_v7   ;;  %v202_v9 = vld [vmem:[%s281_s0 + $0x20] sm:$0xff]  ;;  %v36_v10 = vld [vmem:[%s283_s2 + $0x8] sm:$0xff] }
   0x5   :  { %195 = vmatmul.msk.bf16.vlgmr.msra.gmra.mxu1 %vm110_vm0, %v158_v6  ;;  %v199_v13 = vld [vmem:[%s281_s0 + $0x8] sm:$0xff]  ;;  %v198_v14 = vld [vmem:[%s281_s0] sm:$0xff] }
   0x6   :  { %115 = vmatpush.bf16.msra.mxu0 %v204_v1  ;;  %v153_v15 = vld [vmem:[%s282_s1] sm:$0xf]  ;;  %v197_v16 = vld [vmem:[%s282_s1 + $0x4] sm:$0xf0] }
   0x7   :  { %v154_v17 = vor.u32 %v197_v16, %v153_v15 }
   0xa   :  { %116 = vmatpush.bf16.msra.mxu0 %v203_v8 }
   0xc   :  { %44 = vperm.xlu0 %208, %v36_v10  }
   0xe   :  { %117 = vmatpush.bf16.msra.mxu0 %v202_v9 }
  0x12   :  { %118 = vmatpush.bf16.msra.mxu0 %v201_v11 }
  0x16   :  { %119 = vmatpush.bf16.msra.mxu0 %v200_v12 }
  0x1a   :  { %120 = vmatpush.bf16.msra.mxu0 %v199_v13 }
  0x1e   :  { %121 = vmatpush.bf16.msra.mxu0 %v198_v14 }
  0x21   :  { %122 = vmatmul.bf16.vlgmr.msra.gmra.mxu0 %v154_v17 }
  0x76   :  { %v40_v18 = vpop.permute.xlu0 %39 }
  0x7e   :  { %v45_v24 = vpop.permute.xlu0 %44 }
  0x82   :  { %v137_v19 = vpop.f32.mrf.mxu1 }
  0x8a   :  { %v139_v27 = vpop.f32.mrf.mxu1 }
  0x9e   :  { %v123_v20 = vpop.f32.mrf.mxu0 }
  0x9f   :  { %v124_v21 = vadd.f32 %v123_v20, %v40_v18 }
  0xa1   :  { %v138_v22 = vadd.f32 %v137_v19, %v124_v21 }
  0xa3   :  { %v142_v23 = vmax.f32 %v138_v22, 0.0 }
  0xa5   :  { %145 = vst.msk [vmem:[%s284_s3] sm:$0xff] %vm144_vm1, %v142_v23 }
  0xa6   :  { %v125_v25 = vpop.f32.mrf.mxu0 }
  0xa7   :  { %v126_v26 = vadd.f32 %v125_v25, %v45_v24 }
  0xa9   :  { %v140_v28 = vadd.f32 %v139_v27, %v126_v26 }
  0xab   :  { %v143_v29 = vmax.f32 %v140_v28, 0.0 }
  0xad   :  { %146 = vst.msk [vmem:[%s284_s3 + $0x8] sm:$0xff] %vm144_vm1, %v143_v29 }

// kernel: urresnet_forward.30
= control target key start
LH: loop header
LB: loop body
LE: loop exit
PB: predicated region body
PF: predicated region fallthrough
CT: control target
= control target key end

     0   :  { %v216_v4 = vmov 0   ;;  %vm113_vm0 = vcmask 130048   ;;  %vm151_vm1 = vcmask 261120   ;;  %s299_s0 = inlined_call_operand.vmem [shape: bf16[144,32], index: 0, kind: input, shape index: {}]   ;;  %s300_s1 = inlined_call_operand.vmem [shape: bf16[16,144], index: 1, kind: input, shape index: {}]   ;;  %s301_s2 = inlined_call_operand.vmem [shape: f32[16,1], index: 2, kind: input, shape index: {}]   ;;  %s302_s3 = inlined_call_operand.vmem [shape: f32[16,32], index: 3, kind: input, shape index: {}]   ;;  %s303_s4 = inlined_call_operand.vmem [shape: f32[16,32], index: 4, kind: output, shape index: {}]  }
   0x1   :  { %v212_v0 = vld [vmem:[%s299_s0 + $0x38] sm:$0xff]  ;;  %v211_v1 = vld [vmem:[%s299_s0 + $0x30] sm:$0xff]  ;;  %v213_v2 = vld [vmem:[%s299_s0 + $0x40] sm:$0xff]  ;;  %215 = vset.pattern.permute.xlu0 %v216_v4 }
   0x2   :  { %117 = vmatpush.bf16.msra.mxu0 %v212_v0  ;;  %v203_v3 = vld [vmem:[%s300_s1 + $0x4] sm:$0xf]  ;;  %v162_v5 = vld [vmem:[%s300_s1 + $0x8] sm:$0xf0]  ;;  %138 = vmatpush.bf16.msra.mxu1 %v213_v2  ;;  %v208_v11 = vld [vmem:[%s299_s0 + $0x18] sm:$0xff] }
   0x3   :  { %v165_v6 = vor.u32 %v203_v3, %v162_v5  ;;  %v38_v7 = vld [vmem:[%s301_s2] sm:$0xff]  ;;  %v210_v8 = vld [vmem:[%s299_s0 + $0x28] sm:$0xff]  ;;  %v207_v12 = vld [vmem:[%s299_s0 + $0x10] sm:$0xff] }
   0x4   :  { %42 = vperm.xlu0 %215, %v38_v7   ;;  %v209_v9 = vld [vmem:[%s299_s0 + $0x20] sm:$0xff]  ;;  %v39_v10 = vld [vmem:[%s301_s2 + $0x8] sm:$0xff] }
   0x5   :  { %202 = vmatmul.msk.bf16.vlgmr.msra.gmra.mxu1 %vm113_vm0, %v165_v6  ;;  %v206_v13 = vld [vmem:[%s299_s0 + $0x8] sm:$0xff]  ;;  %v205_v14 = vld [vmem:[%s299_s0] sm:$0xff] }
   0x6   :  { %118 = vmatpush.bf16.msra.mxu0 %v211_v1  ;;  %v160_v15 = vld [vmem:[%s300_s1] sm:$0xf]  ;;  %v204_v16 = vld [vmem:[%s300_s1 + $0x4] sm:$0xf0] }
   0x7   :  { %v161_v17 = vor.u32 %v204_v16, %v160_v15  ;;  %v145_v22 = vld [vmem:[%s302_s3] sm:$0xff]  ;;  %v146_v30 = vld [vmem:[%s302_s3 + $0x8] sm:$0xff] }
   0xa   :  { %119 = vmatpush.bf16.msra.mxu0 %v210_v8 }
   0xc   :  { %47 = vperm.xlu0 %215, %v39_v10  }
   0xe   :  { %120 = vmatpush.bf16.msra.mxu0 %v209_v9 }
  0x12   :  { %121 = vmatpush.bf16.msra.mxu0 %v208_v11 }
  0x16   :  { %122 = vmatpush.bf16.msra.mxu0 %v207_v12 }
  0x1a   :  { %123 = vmatpush.bf16.msra.mxu0 %v206_v13 }
  0x1e   :  { %124 = vmatpush.bf16.msra.mxu0 %v205_v14 }
  0x21   :  { %125 = vmatmul.bf16.vlgmr.msra.gmra.mxu0 %v161_v17 }
  0x76   :  { %v43_v18 = vpop.permute.xlu0 %42 }
  0x7e   :  { %v48_v26 = vpop.permute.xlu0 %47 }
  0x82   :  { %v140_v19 = vpop.f32.mrf.mxu1 }
  0x8a   :  { %v142_v29 = vpop.f32.mrf.mxu1 }
  0x9e   :  { %v126_v20 = vpop.f32.mrf.mxu0 }
  0x9f   :  { %v127_v21 = vadd.f32 %v126_v20, %v43_v18 }
  0xa1   :  { %v141_v23 = vadd.f32 %v140_v19, %v127_v21 }
  0xa3   :  { %v147_v24 = vadd.f32 %v145_v22, %v141_v23 }
  0xa5   :  { %v149_v25 = vmax.f32 %v147_v24, 0.0 }
  0xa6   :  { %v128_v27 = vpop.f32.mrf.mxu0 }
  0xa7   :  { %152 = vst.msk [vmem:[%s303_s4] sm:$0xff] %vm151_vm1, %v149_v25  ;;  %v129_v28 = vadd.f32 %v128_v27, %v48_v26 }
  0xa9   :  { %v143_v31 = vadd.f32 %v142_v29, %v129_v28 }
  0xab   :  { %v148_v32 = vadd.f32 %v146_v30, %v143_v31 }
  0xad   :  { %v150_v33 = vmax.f32 %v148_v32, 0.0 }
  0xaf   :  { %153 = vst.msk [vmem:[%s303_s4 + $0x8] sm:$0xff] %vm151_vm1, %v150_v33 }

// kernel: urresnet_forward.33
= control target key start
LH: loop header
LB: loop body
LE: loop exit
PB: predicated region body
PF: predicated region fallthrough
CT: control target
= control target key end

     0   :  { %v269_v6 = vmov 0   ;;  %vm133_vm0 = vcmask 130048   ;;  %vm182_vm1 = vcmask 64512   ;;  %s371_s0 = inlined_call_operand.vmem [shape: bf16[144,8], index: 0, kind: input, shape index: {}]   ;;  %s372_s1 = inlined_call_operand.vmem [shape: bf16[32,144], index: 1, kind: input, shape index: {}]   ;;  %s373_s2 = inlined_call_operand.vmem [shape: f32[32,1], index: 2, kind: input, shape index: {}]   ;;  %s374_s3 = inlined_call_operand.vmem [shape: f32[32,8], index: 3, kind: output, shape index: {}]  }
   0x1   :  { %v256_v0 = vld [vmem:[%s371_s0 + $0x38] sm:$0xff]  ;;  %v257_v1 = vld [vmem:[%s371_s0 + $0x40] sm:$0xff]  ;;  %v255_v3 = vld [vmem:[%s371_s0 + $0x30] sm:$0xff]  ;;  %268 = vset.pattern.permute.xlu1 %v269_v6  ;;  %267 = vset.pattern.permute.xlu0 %v269_v6 }
   0x2   :  { %v245_v2 = vld [vmem:[%s372_s1 + $0x4] sm:$0xf]  ;;  %140 = vmatpush.bf16.msra.mxu0 %v256_v0  ;;  %258 = vmatpush.bf16.msra.mxu2 %v256_v0  ;;  %v195_v4 = vld [vmem:[%s372_s1 + $0x8] sm:$0xf0]  ;;  %v39_v7 = vld [vmem:[%s373_s2 + $0x10] sm:$0xff] }
   0x3   :  { %166 = vmatpush.bf16.msra.mxu1 %v257_v1  ;;  %v198_v5 = vor.u32 %v245_v2, %v195_v4  ;;  %v254_v8 = vld [vmem:[%s371_s0 + $0x28] sm:$0xff]  ;;  %v37_v9 = vld [vmem:[%s373_s2] sm:$0xff]  ;;  %53 = vperm.xlu1 %268, %v39_v7   ;;  %v40_v11 = vld [vmem:[%s373_s2 + $0x18] sm:$0xff] }
   0x4   :  { %43 = vperm.xlu0 %267, %v37_v9   ;;  %v253_v10 = vld [vmem:[%s371_s0 + $0x20] sm:$0xff]  ;;  %v38_v12 = vld [vmem:[%s373_s2 + $0x8] sm:$0xff]  ;;  %v252_v13 = vld [vmem:[%s371_s0 + $0x18] sm:$0xff] }
   0x5   :  { %v247_v14 = vld [vmem:[%s372_s1 + $0x14] sm:$0xf]  ;;  %v203_v15 = vld [vmem:[%s372_s1 + $0x18] sm:$0xf0]  ;;  %v250_v18 = vld [vmem:[%s371_s0 + $0x8] sm:$0xff] }
   0x6   :  { %141 = vmatpush.bf16.msra.mxu0 %v255_v3  ;;  %259 = vmatpush.bf16.msra.mxu2 %v255_v3  ;;  %v251_v16 = vld [vmem:[%s371_s0 + $0x10] sm:$0xff]  ;;  %v206_v17 = vor.u32 %v247_v14, %v203_v15  ;;  %v249_v19 = vld [vmem:[%s371_s0] sm:$0xff]  ;;  %v246_v21 = vld [vmem:[%s372_s1 + $0x4] sm:$0xf0] }
   0x7   :  { %243 = vmatmul.msk.bf16.vlgmr.msra.gmra.mxu1 %vm133_vm0, %v198_v5  ;;  %v193_v20 = vld [vmem:[%s372_s1] sm:$0xf]  ;;  %v201_v22 = vld [vmem:[%s372_s1 + $0x10] sm:$0xf]  ;;  %v248_v23 = vld [vmem:[%s372_s1 + $0x14] sm:$0xf0] }
   0x8   :  { %v194_v24 = vor.u32 %v246_v21, %v193_v20  ;;  %v202_v25 = vor.u32 %v248_v23, %v201_v22 }
   0xa   :  { %142 = vmatpush.bf16.msra.mxu0 %v254_v8  ;;  %260 = vmatpush.bf16.msra.mxu2 %v254_v8 }
   0xb   :  { %58 = vperm.xlu1 %268, %v40_v11  }
   0xc   :  { %48 = vperm.xlu0 %267, %v38_v12  }
   0xe   :  { %143 = vmatpush.bf16.msra.mxu0 %v253_v10  ;;  %261 = vmatpush.bf16.msra.mxu2 %v253_v10 }
  0x12   :  { %144 = vmatpush.bf16.msra.mxu0 %v252_v13  ;;  %262 = vmatpush.bf16.msra.mxu2 %v252_v13 }
  0x16   :  { %145 = vmatpush.bf16.msra.mxu0 %v251_v16  ;;  %263 = vmatpush.bf16.msra.mxu2 %v251_v16 }
  0x17   :  { %244 = vmatmul.msk.bf16.gmra.mxu1 %vm133_vm0, %v206_v17 }
  0x1a   :  { %146 = vmatpush.bf16.msra.mxu0 %v250_v18  ;;  %264 = vmatpush.bf16.msra.mxu2 %v250_v18 }
  0x1e   :  { %147 = vmatpush.bf16.msra.mxu0 %v249_v19  ;;  %265 = vmatpush.bf16.msra.mxu2 %v249_v19 }
  0x21   :  { %148 = vmatmul.bf16.vlgmr.msra.gmra.mxu0 %v194_v24  ;;  %153 = vmatmul.bf16.vlgmr.msra.gmra.mxu2 %v202_v25 }
  0x75   :  { %v54_v32 = vpop.permute.xlu1 %53 }
  0x76   :  { %v44_v28 = vpop.permute.xlu0 %43 }
  0x7d   :  { %v59_v44 = vpop.permute.xlu1 %58 }
  0x7e   :  { %v49_v37 = vpop.permute.xlu0 %48 }
  0x84   :  { %v168_v26 = vpop.f32.mrf.mxu1 }
  0x8c   :  { %v170_v27 = vpop.f32.mrf.mxu1 }
  0x94   :  { %v173_v34 = vpop.f32.mrf.mxu1 }
  0x9c   :  { %v175_v47 = vpop.f32.mrf.mxu1 }
  0x9e   :  { %v149_v29 = vpop.f32.mrf.mxu0 }
  0x9f   :  { %v150_v30 = vadd.f32 %v149_v29, %v44_v28 }
  0xa1   :  { %v169_v31 = vadd.f32 %v168_v26, %v150_v30 }
  0xa3   :  { %v178_v33 = vmax.f32 %v169_v31, 0.0 }
  0xa4   :  { %v154_v35 = vpop.f32.mrf.mxu2 }
  0xa5   :  { %183 = vst.msk [vmem:[%s374_s3] sm:$0xff] %vm182_vm1, %v178_v33  ;;  %v155_v36 = vadd.f32 %v154_v35, %v54_v32 }
  0xa6   :  { %v151_v38 = vpop.f32.mrf.mxu0 }
  0xa7   :  { %v174_v39 = vadd.f32 %v173_v34, %v155_v36  ;;  %v152_v40 = vadd.f32 %v151_v38, %v49_v37 }
  0xa9   :  { %v180_v41 = vmax.f32 %v174_v39, 0.0  ;;  %v171_v42 = vadd.f32 %v170_v27, %v152_v40 }
  0xab   :  { %185 = vst.msk [vmem:[%s374_s3 + $0x10] sm:$0xff] %vm182_vm1, %v180_v41  ;;  %v179_v43 = vmax.f32 %v171_v42, 0.0 }
  0xac   :  { %v156_v45 = vpop.f32.mrf.mxu2 }
  0xad   :  { %184 = vst.msk [vmem:[%s374_s3 + $0x8] sm:$0xff] %vm182_vm1, %v179_v43  ;;  %v157_v46 = vadd.f32 %v156_v45, %v59_v44 }
  0xaf   :  { %v176_v48 = vadd.f32 %v175_v47, %v157_v46 }
  0xb1   :  { %v181_v49 = vmax.f32 %v176_v48, 0.0 }
  0xb3   :  { %186 = vst.msk [vmem:[%s374_s3 + $0x18] sm:$0xff] %vm182_vm1, %v181_v49 }

// kernel: urresnet_forward.34
= control target key start
LH: loop header
LB: loop body
LE: loop exit
PB: predicated region body
PF: predicated region fallthrough
CT: control target
= control target key end

     0   :  { %v117_v2 = vmov 0   ;;  %vm61_vm0 = vcmask 130048   ;;  %vm87_vm1 = vcmask 64512   ;;  %s171_s0 = inlined_call_operand.vmem [shape: bf16[16,8], index: 0, kind: input, shape index: {}]   ;;  %s172_s1 = inlined_call_operand.vmem [shape: bf16[32,16], index: 1, kind: input, shape index: {}]   ;;  %s173_s2 = inlined_call_operand.vmem [shape: f32[32,1], index: 2, kind: input, shape index: {}]   ;;  %s174_s3 = inlined_call_operand.vmem [shape: f32[32,8], index: 3, kind: output, shape index: {}]  }
   0x1   :  { %v112_v0 = vld [vmem:[%s171_s0] sm:$0xff]  ;;  %116 = vset.pattern.permute.xlu1 %v117_v2  ;;  %115 = vset.pattern.permute.xlu0 %v117_v2  ;;  %v111_v3 = vld [vmem:[%s172_s1 + $0x8] sm:$0xff]  ;;  %v23_v4 = vld [vmem:[%s173_s2 + $0x10] sm:$0xff] }
   0x2   :  { %v110_v1 = vld [vmem:[%s172_s1] sm:$0xff]  ;;  %75 = vmatpush.bf16.msra.mxu0 %v112_v0  ;;  %113 = vmatpush.bf16.msra.mxu1 %v112_v0  ;;  %v24_v6 = vld [vmem:[%s173_s2 + $0x18] sm:$0xff]  ;;  %v22_v7 = vld [vmem:[%s173_s2 + $0x8] sm:$0xff] }
   0x3   :  { %v21_v5 = vld [vmem:[%s173_s2] sm:$0xff]  ;;  %37 = vperm.xlu1 %116, %v23_v4  }
   0x4   :  { %27 = vperm.xlu0 %115, %v21_v5  }
   0x5   :  { %108 = vmatmul.msk.bf16.vlgmr.msra.gmra.mxu0 %vm61_vm0, %v110_v1  ;;  %109 = vmatmul.msk.bf16.vlgmr.msra.gmra.mxu1 %vm61_vm0, %v111_v3 }
   0xb   :  { %42 = vperm.xlu1 %116, %v24_v6  }
   0xc   :  { %32 = vperm.xlu0 %115, %v22_v7  }
  0x75   :  { %v38_v8 = vpop.permute.xlu1 %37 }
  0x76   :  { %v28_v9 = vpop.permute.xlu0 %27 }
  0x7d   :  { %v43_v14 = vpop.permute.xlu1 %42 }
  0x7e   :  { %v33_v15 = vpop.permute.xlu0 %32 }
  0x82   :  { %v77_v10 = vpop.f32.mrf.mxu0  ;;  %v82_v11 = vpop.f32.mrf.mxu1 }
  0x83   :  { %v78_v12 = vadd.f32 %v77_v10, %v28_v9  ;;  %v83_v13 = vadd.f32 %v82_v11, %v38_v8 }
  0x85   :  { %88 = vst.msk [vmem:[%s174_s3] sm:$0xff] %vm87_vm1, %v78_v12 }
  0x86   :  { %90 = vst.msk [vmem:[%s174_s3 + $0x10] sm:$0xff] %vm87_vm1, %v83_v13 }
  0x8a   :  { %v79_v16 = vpop.f32.mrf.mxu0  ;;  %v84_v17 = vpop.f32.mrf.mxu1 }
  0x8b   :  { %v80_v18 = vadd.f32 %v79_v16, %v33_v15  ;;  %v85_v19 = vadd.f32 %v84_v17, %v43_v14 }
  0x8d   :  { %89 = vst.msk [vmem:[%s174_s3 + $0x8] sm:$0xff] %vm87_vm1, %v80_v18 }
  0x8e   :  { %91 = vst.msk [vmem:[%s174_s3 + $0x18] sm:$0xff] %vm87_vm1, %v85_v19 }

// kernel: urresnet_forward.35
= control target key start
LH: loop header
LB: loop body
LE: loop exit
PB: predicated region body
PF: predicated region fallthrough
CT: control target
= control target key end

     0   :  { %v442_v5 = vmov 0   ;;  %vm224_vm0 = vcmask 261120   ;;  %vm300_vm1 = vcmask 64512   ;;  %s600_s0 = inlined_call_operand.vmem [shape: bf16[288,8], index: 0, kind: input, shape index: {}]   ;;  %s601_s1 = inlined_call_operand.vmem [shape: bf16[32,288], index: 1, kind: input, shape index: {}]   ;;  %s602_s2 = inlined_call_operand.vmem [shape: f32[32,1], index: 2, kind: input, shape index: {}]   ;;  %s603_s3 = inlined_call_operand.vmem [shape: f32[32,8], index: 3, kind: input, shape index: {}]   ;;  %s604_s4 = inlined_call_operand.vmem [shape: f32[32,8], index: 4, kind: output, shape index: {}]  }
   0x1   :  { %v420_v0 = vld [vmem:[%s600_s0 + $0x38] sm:$0xff]  ;;  %v419_v2 = vld [vmem:[%s600_s0 + $0x30] sm:$0xff]  ;;  %v430_v3 = vld [vmem:[%s600_s0 + $0x88] sm:$0xff]  ;;  %440 = vset.pattern.permute.xlu0 %v442_v5  ;;  %441 = vset.pattern.permute.xlu1 %v442_v5 }
   0x2   :  { %v428_v1 = vld [vmem:[%s600_s0 + $0x78] sm:$0xff]  ;;  %231 = vmatpush.bf16.msra.mxu0 %v420_v0  ;;  %431 = vmatpush.bf16.msra.mxu3 %v420_v0  ;;  %v427_v4 = vld [vmem:[%s600_s0 + $0x70] sm:$0xff]  ;;  %v429_v6 = vld [vmem:[%s600_s0 + $0x80] sm:$0xff] }
   0x3   :  { %250 = vmatpush.bf16.msra.mxu1 %v428_v1  ;;  %275 = vmatpush.bf16.msra.mxu2 %v430_v3  ;;  %v319_v7 = vld [vmem:[%s601_s1 + $0x8] sm:$0xf]  ;;  %v409_v8 = vld [vmem:[%s601_s1 + $0x10] sm:$0xf0]  ;;  %v62_v12 = vld [vmem:[%s602_s2] sm:$0xff] }
   0x4   :  { %v418_v9 = vld [vmem:[%s600_s0 + $0x28] sm:$0xff]  ;;  %v320_v11 = vor.u32 %v409_v8, %v319_v7  ;;  %v417_v13 = vld [vmem:[%s600_s0 + $0x20] sm:$0xff]  ;;  %68 = vperm.xlu0 %440, %v62_v12   ;;  %v416_v15 = vld [vmem:[%s600_s0 + $0x18] sm:$0xff] }
   0x5   :  { %v426_v10 = vld [vmem:[%s600_s0 + $0x68] sm:$0xff]  ;;  %v425_v14 = vld [vmem:[%s600_s0 + $0x60] sm:$0xff]  ;;  %v424_v16 = vld [vmem:[%s600_s0 + $0x58] sm:$0xff] }
   0x6   :  { %232 = vmatpush.bf16.msra.mxu0 %v419_v2  ;;  %432 = vmatpush.bf16.msra.mxu3 %v419_v2  ;;  %v415_v17 = vld [vmem:[%s600_s0 + $0x10] sm:$0xff]  ;;  %v63_v19 = vld [vmem:[%s602_s2 + $0x8] sm:$0xff]  ;;  %v331_v21 = vld [vmem:[%s601_s1 + $0x20] sm:$0xf] }
   0x7   :  { %251 = vmatpush.bf16.msra.mxu1 %v427_v4  ;;  %276 = vmatpush.bf16.msra.mxu2 %v429_v6  ;;  %v64_v18 = vld [vmem:[%s602_s2 + $0x10] sm:$0xff]  ;;  %v412_v22 = vld [vmem:[%s601_s1 + $0x28] sm:$0xf0]  ;;  %v413_v26 = vld [vmem:[%s600_s0] sm:$0xff] }
   0x8   :  { %v423_v20 = vld [vmem:[%s600_s0 + $0x50] sm:$0xff]  ;;  %78 = vperm.xlu1 %441, %v64_v18   ;;  %v414_v23 = vld [vmem:[%s600_s0 + $0x8] sm:$0xff]  ;;  %v332_v25 = vor.u32 %v412_v22, %v331_v21  ;;  %v311_v27 = vld [vmem:[%s601_s1] sm:$0xf] }
   0x9   :  { %v422_v24 = vld [vmem:[%s600_s0 + $0x48] sm:$0xff]  ;;  %v65_v28 = vld [vmem:[%s602_s2 + $0x18] sm:$0xff]  ;;  %v411_v31 = vld [vmem:[%s601_s1 + $0x20] sm:$0xf0] }
   0xa   :  { %233 = vmatpush.bf16.msra.mxu0 %v418_v9  ;;  %433 = vmatpush.bf16.msra.mxu3 %v418_v9  ;;  %v408_v29 = vld [vmem:[%s601_s1 + $0x8] sm:$0xf0]  ;;  %v323_v30 = vld [vmem:[%s601_s1 + $0x18] sm:$0xf]  ;;  %v421_v32 = vld [vmem:[%s600_s0 + $0x40] sm:$0xff] }
   0xb   :  { %252 = vmatpush.bf16.msra.mxu1 %v426_v10  ;;  %405 = vmatmul.msk.bf16.vlgmr.msra.gmra.mxu2 %vm224_vm0, %v320_v11  ;;  %v407_v33 = vld [vmem:[%s601_s1 + $0x4] sm:$0xf]  ;;  %v313_v34 = vld [vmem:[%s601_s1 + $0xc] sm:$0xf0]  ;;  %v312_v35 = vor.u32 %v408_v29, %v311_v27  ;;  %v324_v36 = vor.u32 %v411_v31, %v323_v30  ;;  %v410_v38 = vld [vmem:[%s601_s1 + $0x1c] sm:$0xf] }
   0xc   :  { %73 = vperm.xlu0 %440, %v63_v19   ;;  %v316_v37 = vor.u32 %v407_v33, %v313_v34  ;;  %v325_v39 = vld [vmem:[%s601_s1 + $0x24] sm:$0xf0]  ;;  %v288_v47 = vld [vmem:[%s603_s3] sm:$0xff]  ;;  %v290_v3 = vld [vmem:[%s603_s3 + $0x10] sm:$0xff] }
   0xd   :  { %v328_v40 = vor.u32 %v410_v38, %v325_v39  ;;  %v289_v59 = vld [vmem:[%s603_s3 + $0x8] sm:$0xff] }
   0xe   :  { %234 = vmatpush.bf16.msra.mxu0 %v417_v13  ;;  %434 = vmatpush.bf16.msra.mxu3 %v417_v13  ;;  %v291_v13 = vld [vmem:[%s603_s3 + $0x18] sm:$0xff] }
   0xf   :  { %253 = vmatpush.bf16.msra.mxu1 %v425_v14 }
  0x10   :  { %83 = vperm.xlu1 %441, %v65_v28  }
  0x12   :  { %235 = vmatpush.bf16.msra.mxu0 %v416_v15  ;;  %435 = vmatpush.bf16.msra.mxu3 %v416_v15 }
  0x13   :  { %254 = vmatpush.bf16.msra.mxu1 %v424_v16 }
  0x16   :  { %236 = vmatpush.bf16.msra.mxu0 %v415_v17  ;;  %436 = vmatpush.bf16.msra.mxu3 %v415_v17 }
  0x17   :  { %255 = vmatpush.bf16.msra.mxu1 %v423_v20 }
  0x1a   :  { %237 = vmatpush.bf16.msra.mxu0 %v414_v23  ;;  %437 = vmatpush.bf16.msra.mxu3 %v414_v23 }
  0x1b   :  { %256 = vmatpush.bf16.msra.mxu1 %v422_v24  ;;  %406 = vmatmul.msk.bf16.gmra.mxu2 %vm224_vm0, %v332_v25 }
  0x1e   :  { %238 = vmatpush.bf16.msra.mxu0 %v413_v26  ;;  %438 = vmatpush.bf16.msra.mxu3 %v413_v26 }
  0x1f   :  { %257 = vmatpush.bf16.msra.mxu1 %v421_v32 }
  0x21   :  { %239 = vmatmul.bf16.vlgmr.msra.gmra.mxu0 %v312_v35  ;;  %244 = vmatmul.bf16.vlgmr.msra.gmra.mxu3 %v324_v36 }
  0x22   :  { %258 = vmatmul.bf16.vlgmr.msra.gmra.mxu1 %v316_v37 }
  0x32   :  { %263 = vmatmul.bf16.gmra.mxu1 %v328_v40 }
  0x76   :  { %v69_v41 = vpop.permute.xlu0 %68 }
  0x7a   :  { %v79_v56 = vpop.permute.xlu1 %78 }
  0x7e   :  { %v74_v49 = vpop.permute.xlu0 %73 }
  0x82   :  { %v84_v5 = vpop.permute.xlu1 %83 }
  0x8e   :  { %v278_v42 = vpop.f32.mrf.mxu2 }
  0x96   :  { %v280_v51 = vpop.f32.mrf.mxu2 }
  0x9e   :  { %v240_v43 = vpop.f32.mrf.mxu0  ;;  %v283_v0 = vpop.f32.mrf.mxu2 }
  0x9f   :  { %v241_v44 = vadd.f32 %v240_v43, %v69_v41  ;;  %v259_v45 = vpop.f32.mrf.mxu1 }
  0xa1   :  { %v260_v46 = vadd.f32 %v259_v45, %v241_v44 }
  0xa3   :  { %v279_v48 = vadd.f32 %v278_v42, %v260_v46 }
  0xa4   :  { %v245_v57 = vpop.f32.mrf.mxu3 }
  0xa5   :  { %v292_v50 = vadd.f32 %v288_v47, %v279_v48  ;;  %v246_v61 = vadd.f32 %v245_v57, %v79_v56 }
  0xa6   :  { %v242_v52 = vpop.f32.mrf.mxu0  ;;  %v285_v12 = vpop.f32.mrf.mxu2 }
  0xa7   :  { %v296_v53 = vmax.f32 %v292_v50, 0.0  ;;  %v243_v54 = vadd.f32 %v242_v52, %v74_v49  ;;  %v261_v55 = vpop.f32.mrf.mxu1 }
  0xa9   :  { %301 = vst.msk [vmem:[%s604_s4] sm:$0xff] %vm300_vm1, %v296_v53  ;;  %v262_v58 = vadd.f32 %v261_v55, %v243_v54 }
  0xab   :  { %v281_v60 = vadd.f32 %v280_v51, %v262_v58 }
  0xac   :  { %v247_v6 = vpop.f32.mrf.mxu3 }
  0xad   :  { %v293_v62 = vadd.f32 %v289_v59, %v281_v60  ;;  %v248_v8 = vadd.f32 %v247_v6, %v84_v5 }
  0xaf   :  { %v297_v63 = vmax.f32 %v293_v62, 0.0  ;;  %v264_v1 = vpop.f32.mrf.mxu1 }
  0xb0   :  { %v265_v2 = vadd.f32 %v264_v1, %v246_v61 }
  0xb1   :  { %302 = vst.msk [vmem:[%s604_s4 + $0x8] sm:$0xff] %vm300_vm1, %v297_v63 }
  0xb2   :  { %v284_v4 = vadd.f32 %v283_v0, %v265_v2 }
  0xb4   :  { %v294_v7 = vadd.f32 %v290_v3, %v284_v4 }
  0xb6   :  { %v298_v9 = vmax.f32 %v294_v7, 0.0 }
  0xb7   :  { %v266_v10 = vpop.f32.mrf.mxu1 }
  0xb8   :  { %303 = vst.msk [vmem:[%s604_s4 + $0x10] sm:$0xff] %vm300_vm1, %v298_v9  ;;  %v267_v11 = vadd.f32 %v266_v10, %v248_v8 }
  0xba   :  { %v286_v14 = vadd.f32 %v285_v12, %v267_v11 }
  0xbc   :  { %v295_v15 = vadd.f32 %v291_v13, %v286_v14 }
  0xbe   :  { %v299_v16 = vmax.f32 %v295_v15, 0.0 }
  0xc0   :  { %304 = vst.msk [vmem:[%s604_s4 + $0x18] sm:$0xff] %vm300_vm1, %v299_v16 }

// kernel: urresnet_forward.36
= control target key start
LH: loop header
LB: loop body
LE: loop exit
PB: predicated region body
PF: predicated region fallthrough
CT: control target
= control target key end

     0   :  { %v431_v5 = vmov 0   ;;  %vm221_vm0 = vcmask 261120   ;;  %vm289_vm1 = vcmask 64512   ;;  %s572_s0 = inlined_call_operand.vmem [shape: bf16[288,8], index: 0, kind: input, shape index: {}]   ;;  %s573_s1 = inlined_call_operand.vmem [shape: bf16[32,288], index: 1, kind: input, shape index: {}]   ;;  %s574_s2 = inlined_call_operand.vmem [shape: f32[32,1], index: 2, kind: input, shape index: {}]   ;;  %s575_s3 = inlined_call_operand.vmem [shape: f32[32,8], index: 3, kind: output, shape index: {}]  }
   0x1   :  { %v409_v0 = vld [vmem:[%s572_s0 + $0x38] sm:$0xff]  ;;  %v408_v2 = vld [vmem:[%s572_s0 + $0x30] sm:$0xff]  ;;  %v419_v3 = vld [vmem:[%s572_s0 + $0x88] sm:$0xff]  ;;  %429 = vset.pattern.permute.xlu0 %v431_v5  ;;  %430 = vset.pattern.permute.xlu1 %v431_v5 }
   0x2   :  { %v417_v1 = vld [vmem:[%s572_s0 + $0x78] sm:$0xff]  ;;  %228 = vmatpush.bf16.msra.mxu0 %v409_v0  ;;  %420 = vmatpush.bf16.msra.mxu3 %v409_v0  ;;  %v416_v4 = vld [vmem:[%s572_s0 + $0x70] sm:$0xff]  ;;  %v418_v6 = vld [vmem:[%s572_s0 + $0x80] sm:$0xff] }
   0x3   :  { %247 = vmatpush.bf16.msra.mxu1 %v417_v1  ;;  %272 = vmatpush.bf16.msra.mxu2 %v419_v3  ;;  %v308_v7 = vld [vmem:[%s573_s1 + $0x8] sm:$0xf]  ;;  %v398_v8 = vld [vmem:[%s573_s1 + $0x10] sm:$0xf0]  ;;  %v59_v12 = vld [vmem:[%s574_s2] sm:$0xff] }
   0x4   :  { %v407_v9 = vld [vmem:[%s572_s0 + $0x28] sm:$0xff]  ;;  %v309_v11 = vor.u32 %v398_v8, %v308_v7  ;;  %v406_v13 = vld [vmem:[%s572_s0 + $0x20] sm:$0xff]  ;;  %65 = vperm.xlu0 %429, %v59_v12   ;;  %v405_v15 = vld [vmem:[%s572_s0 + $0x18] sm:$0xff] }
   0x5   :  { %v415_v10 = vld [vmem:[%s572_s0 + $0x68] sm:$0xff]  ;;  %v414_v14 = vld [vmem:[%s572_s0 + $0x60] sm:$0xff]  ;;  %v413_v16 = vld [vmem:[%s572_s0 + $0x58] sm:$0xff] }
   0x6   :  { %229 = vmatpush.bf16.msra.mxu0 %v408_v2  ;;  %421 = vmatpush.bf16.msra.mxu3 %v408_v2  ;;  %v404_v17 = vld [vmem:[%s572_s0 + $0x10] sm:$0xff]  ;;  %v60_v19 = vld [vmem:[%s574_s2 + $0x8] sm:$0xff]  ;;  %v320_v21 = vld [vmem:[%s573_s1 + $0x20] sm:$0xf] }
   0x7   :  { %248 = vmatpush.bf16.msra.mxu1 %v416_v4  ;;  %273 = vmatpush.bf16.msra.mxu2 %v418_v6  ;;  %v61_v18 = vld [vmem:[%s574_s2 + $0x10] sm:$0xff]  ;;  %v401_v22 = vld [vmem:[%s573_s1 + $0x28] sm:$0xf0]  ;;  %v402_v26 = vld [vmem:[%s572_s0] sm:$0xff] }
   0x8   :  { %v412_v20 = vld [vmem:[%s572_s0 + $0x50] sm:$0xff]  ;;  %75 = vperm.xlu1 %430, %v61_v18   ;;  %v403_v23 = vld [vmem:[%s572_s0 + $0x8] sm:$0xff]  ;;  %v321_v25 = vor.u32 %v401_v22, %v320_v21  ;;  %v300_v27 = vld [vmem:[%s573_s1] sm:$0xf] }
   0x9   :  { %v411_v24 = vld [vmem:[%s572_s0 + $0x48] sm:$0xff]  ;;  %v62_v28 = vld [vmem:[%s574_s2 + $0x18] sm:$0xff]  ;;  %v400_v31 = vld [vmem:[%s573_s1 + $0x20] sm:$0xf0] }
   0xa   :  { %230 = vmatpush.bf16.msra.mxu0 %v407_v9  ;;  %422 = vmatpush.bf16.msra.mxu3 %v407_v9  ;;  %v397_v29 = vld [vmem:[%s573_s1 + $0x8] sm:$0xf0]  ;;  %v312_v30 = vld [vmem:[%s573_s1 + $0x18] sm:$0xf]  ;;  %v410_v32 = vld [vmem:[%s572_s0 + $0x40] sm:$0xff] }
   0xb   :  { %249 = vmatpush.bf16.msra.mxu1 %v415_v10  ;;  %394 = vmatmul.msk.bf16.vlgmr.msra.gmra.mxu2 %vm221_vm0, %v309_v11  ;;  %v396_v33 = vld [vmem:[%s573_s1 + $0x4] sm:$0xf]  ;;  %v302_v34 = vld [vmem:[%s573_s1 + $0xc] sm:$0xf0]  ;;  %v301_v35 = vor.u32 %v397_v29, %v300_v27  ;;  %v313_v36 = vor.u32 %v400_v31, %v312_v30  ;;  %v399_v38 = vld [vmem:[%s573_s1 + $0x1c] sm:$0xf] }
   0xc   :  { %70 = vperm.xlu0 %429, %v60_v19   ;;  %v305_v37 = vor.u32 %v396_v33, %v302_v34  ;;  %v314_v39 = vld [vmem:[%s573_s1 + $0x24] sm:$0xf0] }
   0xd   :  { %v317_v40 = vor.u32 %v399_v38, %v314_v39 }
   0xe   :  { %231 = vmatpush.bf16.msra.mxu0 %v406_v13  ;;  %423 = vmatpush.bf16.msra.mxu3 %v406_v13 }
   0xf   :  { %250 = vmatpush.bf16.msra.mxu1 %v414_v14 }
  0x10   :  { %80 = vperm.xlu1 %430, %v62_v28  }
  0x12   :  { %232 = vmatpush.bf16.msra.mxu0 %v405_v15  ;;  %424 = vmatpush.bf16.msra.mxu3 %v405_v15 }
  0x13   :  { %251 = vmatpush.bf16.msra.mxu1 %v413_v16 }
  0x16   :  { %233 = vmatpush.bf16.msra.mxu0 %v404_v17  ;;  %425 = vmatpush.bf16.msra.mxu3 %v404_v17 }
  0x17   :  { %252 = vmatpush.bf16.msra.mxu1 %v412_v20 }
  0x1a   :  { %234 = vmatpush.bf16.msra.mxu0 %v403_v23  ;;  %426 = vmatpush.bf16.msra.mxu3 %v403_v23 }
  0x1b   :  { %253 = vmatpush.bf16.msra.mxu1 %v411_v24  ;;  %395 = vmatmul.msk.bf16.gmra.mxu2 %vm221_vm0, %v321_v25 }
  0x1e   :  { %235 = vmatpush.bf16.msra.mxu0 %v402_v26  ;;  %427 = vmatpush.bf16.msra.mxu3 %v402_v26 }
  0x1f   :  { %254 = vmatpush.bf16.msra.mxu1 %v410_v32 }
  0x21   :  { %236 = vmatmul.bf16.vlgmr.msra.gmra.mxu0 %v301_v35  ;;  %241 = vmatmul.bf16.vlgmr.msra.gmra.mxu3 %v313_v36 }
  0x22   :  { %255 = vmatmul.bf16.vlgmr.msra.gmra.mxu1 %v305_v37 }
  0x32   :  { %260 = vmatmul.bf16.gmra.mxu1 %v317_v40 }
  0x76   :  { %v66_v41 = vpop.permute.xlu0 %65 }
  0x7a   :  { %v76_v54 = vpop.permute.xlu1 %75 }
  0x7e   :  { %v71_v48 = vpop.permute.xlu0 %70 }
  0x82   :  { %v81_v0 = vpop.permute.xlu1 %80 }
  0x8e   :  { %v275_v42 = vpop.f32.mrf.mxu2 }
  0x96   :  { %v277_v50 = vpop.f32.mrf.mxu2 }
  0x9e   :  { %v237_v43 = vpop.f32.mrf.mxu0  ;;  %v280_v60 = vpop.f32.mrf.mxu2 }
  0x9f   :  { %v238_v44 = vadd.f32 %v237_v43, %v66_v41  ;;  %v256_v45 = vpop.f32.mrf.mxu1 }
  0xa1   :  { %v257_v46 = vadd.f32 %v256_v45, %v238_v44 }
  0xa3   :  { %v276_v47 = vadd.f32 %v275_v42, %v257_v46 }
  0xa4   :  { %v242_v55 = vpop.f32.mrf.mxu3 }
  0xa5   :  { %v285_v49 = vmax.f32 %v276_v47, 0.0  ;;  %v243_v58 = vadd.f32 %v242_v55, %v76_v54 }
  0xa6   :  { %v239_v51 = vpop.f32.mrf.mxu0  ;;  %v282_v6 = vpop.f32.mrf.mxu2 }
  0xa7   :  { %290 = vst.msk [vmem:[%s575_s3] sm:$0xff] %vm289_vm1, %v285_v49  ;;  %v240_v52 = vadd.f32 %v239_v51, %v71_v48  ;;  %v258_v53 = vpop.f32.mrf.mxu1 }
  0xa9   :  { %v259_v56 = vadd.f32 %v258_v53, %v240_v52 }
  0xab   :  { %v278_v57 = vadd.f32 %v277_v50, %v259_v56 }
  0xac   :  { %v244_v1 = vpop.f32.mrf.mxu3 }
  0xad   :  { %v286_v59 = vmax.f32 %v278_v57, 0.0  ;;  %v245_v3 = vadd.f32 %v244_v1, %v81_v0 }
  0xaf   :  { %291 = vst.msk [vmem:[%s575_s3 + $0x8] sm:$0xff] %vm289_vm1, %v286_v59  ;;  %v261_v61 = vpop.f32.mrf.mxu1 }
  0xb0   :  { %v262_v62 = vadd.f32 %v261_v61, %v243_v58 }
  0xb2   :  { %v281_v63 = vadd.f32 %v280_v60, %v262_v62 }
  0xb4   :  { %v287_v2 = vmax.f32 %v281_v63, 0.0 }
  0xb6   :  { %292 = vst.msk [vmem:[%s575_s3 + $0x10] sm:$0xff] %vm289_vm1, %v287_v2 }
  0xb7   :  { %v263_v4 = vpop.f32.mrf.mxu1 }
  0xb8   :  { %v264_v5 = vadd.f32 %v263_v4, %v245_v3 }
  0xba   :  { %v283_v7 = vadd.f32 %v282_v6, %v264_v5 }
  0xbc   :  { %v288_v8 = vmax.f32 %v283_v7, 0.0 }
  0xbe   :  { %293 = vst.msk [vmem:[%s575_s3 + $0x18] sm:$0xff] %vm289_vm1, %v288_v8 }

// kernel: urresnet_forward.38
= control target key start
LH: loop header
LB: loop body
LE: loop exit
PB: predicated region body
PF: predicated region fallthrough
CT: control target
= control target key end

     0   :  { %vm283_vm0 = vcmask 261120   ;;  %v578_v15 = vmov 0   ;;  %vm391_vm1 = vcmask 15360   ;;  %s805_s0 = inlined_call_operand.vmem [shape: bf16[288,2], index: 0, kind: input, shape index: {}]   ;;  %s806_s1 = inlined_call_operand.vmem [shape: bf16[64,288], index: 1, kind: input, shape index: {}]   ;;  %s807_s2 = inlined_call_operand.vmem [shape: f32[64,1], index: 2, kind: input, shape index: {}]   ;;  %s808_s3 = inlined_call_operand.vmem [shape: f32[64,2], index: 3, kind: output, shape index: {}]  }
   0x1   :  { %v547_v0 = vld [vmem:[%s805_s0 + $0x38] sm:$0xff]  ;;  %v557_v2 = vld [vmem:[%s805_s0 + $0x88] sm:$0xff]  ;;  %v546_v3 = vld [vmem:[%s805_s0 + $0x30] sm:$0xff]  ;;  %576 = vset.pattern.permute.xlu1 %v578_v15  ;;  %575 = vset.pattern.permute.xlu0 %v578_v15 }
   0x2   :  { %v605_v1 = vld [vmem:[%s805_s0 + $0x78] sm:$0xff]  ;;  %296 = vmatpush.bf16.msra.mxu0 %v547_v0  ;;  %558 = vmatpush.bf16.msra.mxu3 %v547_v0  ;;  %v617_v4 = vld [vmem:[%s805_s0 + $0x70] sm:$0xff]  ;;  %v556_v5 = vld [vmem:[%s805_s0 + $0x80] sm:$0xff] }
   0x3   :  { %566 = vmatpush.bf16.msra.mxu1 %v605_v1  ;;  %360 = vmatpush.bf16.msra.mxu2 %v557_v2  ;;  %v414_v6 = vld [vmem:[%s806_s1 + $0x8] sm:$0xf]  ;;  %v530_v7 = vld [vmem:[%s806_s1 + $0x10] sm:$0xf0]  ;;  %v544_v11 = vld [vmem:[%s805_s0 + $0x20] sm:$0xff] }
   0x4   :  { %v545_v8 = vld [vmem:[%s805_s0 + $0x28] sm:$0xff]  ;;  %v415_v10 = vor.u32 %v530_v7, %v414_v6  ;;  %v645_v12 = vld [vmem:[%s805_s0 + $0x60] sm:$0xff]  ;;  %v543_v13 = vld [vmem:[%s805_s0 + $0x18] sm:$0xff]  ;;  %577 = vset.pattern.permute.xlu2 %v578_v15 }
   0x5   :  { %v635_v9 = vld [vmem:[%s805_s0 + $0x68] sm:$0xff]  ;;  %v654_v14 = vld [vmem:[%s805_s0 + $0x58] sm:$0xff]  ;;  %v542_v16 = vld [vmem:[%s805_s0 + $0x10] sm:$0xff] }
   0x6   :  { %297 = vmatpush.bf16.msra.mxu0 %v546_v3  ;;  %559 = vmatpush.bf16.msra.mxu3 %v546_v3  ;;  %v69_v17 = vld [vmem:[%s807_s2 + $0x10] sm:$0xff]  ;;  %v426_v19 = vld [vmem:[%s806_s1 + $0x20] sm:$0xf]  ;;  %v533_v20 = vld [vmem:[%s806_s1 + $0x28] sm:$0xf0] }
   0x7   :  { %567 = vmatpush.bf16.msra.mxu1 %v617_v4  ;;  %361 = vmatpush.bf16.msra.mxu2 %v556_v5  ;;  %v550_v18 = vld [vmem:[%s805_s0 + $0x50] sm:$0xff]  ;;  %v541_v21 = vld [vmem:[%s805_s0 + $0x8] sm:$0xff]  ;;  %v427_v23 = vor.u32 %v533_v20, %v426_v19  ;;  %v67_v24 = vld [vmem:[%s807_s2] sm:$0xff] }
   0x8   :  { %87 = vperm.xlu1 %576, %v69_v17   ;;  %v549_v22 = vld [vmem:[%s805_s0 + $0x48] sm:$0xff]  ;;  %77 = vperm.xlu0 %575, %v67_v24   ;;  %v540_v25 = vld [vmem:[%s805_s0] sm:$0xff]  ;;  %v418_v26 = vld [vmem:[%s806_s1 + $0x18] sm:$0xf] }
   0x9   :  { %v70_v27 = vld [vmem:[%s807_s2 + $0x18] sm:$0xff]  ;;  %v532_v28 = vld [vmem:[%s806_s1 + $0x20] sm:$0xf0]  ;;  %v406_v29 = vld [vmem:[%s806_s1] sm:$0xf] }
   0xa   :  { %298 = vmatpush.bf16.msra.mxu0 %v545_v8  ;;  %560 = vmatpush.bf16.msra.mxu3 %v545_v8  ;;  %v529_v30 = vld [vmem:[%s806_s1 + $0x8] sm:$0xf0]  ;;  %v548_v31 = vld [vmem:[%s805_s0 + $0x40] sm:$0xff]  ;;  %v531_v32 = vld [vmem:[%s806_s1 + $0x1c] sm:$0xf]  ;;  %v419_v34 = vor.u32 %v532_v28, %v418_v26 }
   0xb   :  { %568 = vmatpush.bf16.msra.mxu1 %v635_v9  ;;  %524 = vmatmul.msk.bf16.vlgmr.msra.gmra.mxu2 %vm283_vm0, %v415_v10  ;;  %v420_v33 = vld [vmem:[%s806_s1 + $0x24] sm:$0xf0]  ;;  %v407_v35 = vor.u32 %v529_v30, %v406_v29  ;;  %v74_v38 = vld [vmem:[%s807_s2 + $0x38] sm:$0xff]  ;;  %v71_v39 = vld [vmem:[%s807_s2 + $0x20] sm:$0xff] }
   0xc   :  { %v423_v36 = vor.u32 %v531_v32, %v420_v33  ;;  %v68_v37 = vld [vmem:[%s807_s2 + $0x8] sm:$0xff]  ;;  %v438_v40 = vld [vmem:[%s806_s1 + $0x38] sm:$0xf]  ;;  %v536_v41 = vld [vmem:[%s806_s1 + $0x40] sm:$0xf0]  ;;  %97 = vperm.xlu2 %577, %v71_v39  }
   0xd   :  { %v439_v42 = vor.u32 %v536_v41, %v438_v40  ;;  %v73_v43 = vld [vmem:[%s807_s2 + $0x30] sm:$0xff]  ;;  %v72_v44 = vld [vmem:[%s807_s2 + $0x28] sm:$0xff]  ;;  %v535_v46 = vld [vmem:[%s806_s1 + $0x38] sm:$0xf0] }
   0xe   :  { %299 = vmatpush.bf16.msra.mxu0 %v544_v11  ;;  %561 = vmatpush.bf16.msra.mxu3 %v544_v11  ;;  %v430_v45 = vld [vmem:[%s806_s1 + $0x30] sm:$0xf]  ;;  %v534_v47 = vld [vmem:[%s806_s1 + $0x34] sm:$0xf]  ;;  %v432_v48 = vld [vmem:[%s806_s1 + $0x3c] sm:$0xf0] }
   0xf   :  { %569 = vmatpush.bf16.msra.mxu1 %v645_v12  ;;  %v431_v49 = vor.u32 %v535_v46, %v430_v45  ;;  %v435_v50 = vor.u32 %v534_v47, %v432_v48  ;;  %v450_v51 = vld [vmem:[%s806_s1 + $0x50] sm:$0xf]  ;;  %v539_v52 = vld [vmem:[%s806_s1 + $0x58] sm:$0xf0]  ;;  %v528_v54 = vld [vmem:[%s806_s1 + $0x4] sm:$0xf] }
  0x10   :  { %92 = vperm.xlu1 %576, %v70_v27   ;;  %82 = vperm.xlu0 %575, %v68_v37   ;;  %v451_v53 = vor.u32 %v539_v52, %v450_v51  ;;  %v408_v55 = vld [vmem:[%s806_s1 + $0xc] sm:$0xf0]  ;;  %v442_v57 = vld [vmem:[%s806_s1 + $0x48] sm:$0xf]  ;;  %v538_v58 = vld [vmem:[%s806_s1 + $0x50] sm:$0xf0] }
  0x11   :  { %v411_v56 = vor.u32 %v528_v54, %v408_v55  ;;  %v537_v59 = vld [vmem:[%s806_s1 + $0x4c] sm:$0xf]  ;;  %v444_v60 = vld [vmem:[%s806_s1 + $0x54] sm:$0xf0]  ;;  %v443_v61 = vor.u32 %v538_v58, %v442_v57 }
  0x12   :  { %300 = vmatpush.bf16.msra.mxu0 %v543_v13  ;;  %562 = vmatpush.bf16.msra.mxu3 %v543_v13  ;;  %v447_v62 = vor.u32 %v537_v59, %v444_v60 }
  0x13   :  { %570 = vmatpush.bf16.msra.mxu1 %v654_v14 }
  0x14   :  { %102 = vperm.xlu2 %577, %v72_v44  }
  0x16   :  { %301 = vmatpush.bf16.msra.mxu0 %v542_v16  ;;  %563 = vmatpush.bf16.msra.mxu3 %v542_v16 }
  0x17   :  { %571 = vmatpush.bf16.msra.mxu1 %v550_v18 }
  0x18   :  { %112 = vperm.xlu1 %576, %v74_v38   ;;  %107 = vperm.xlu0 %575, %v73_v43  }
  0x1a   :  { %302 = vmatpush.bf16.msra.mxu0 %v541_v21  ;;  %564 = vmatpush.bf16.msra.mxu3 %v541_v21 }
  0x1b   :  { %572 = vmatpush.bf16.msra.mxu1 %v549_v22  ;;  %525 = vmatmul.msk.bf16.gmra.mxu2 %vm283_vm0, %v427_v23 }
  0x1e   :  { %303 = vmatpush.bf16.msra.mxu0 %v540_v25  ;;  %565 = vmatpush.bf16.msra.mxu3 %v540_v25 }
  0x1f   :  { %573 = vmatpush.bf16.msra.mxu1 %v548_v31 }
  0x21   :  { %309 = vmatmul.bf16.vlgmr.msra.gmra.mxu3 %v419_v34  ;;  %304 = vmatmul.bf16.vlgmr.msra.gmra.mxu0 %v407_v35 }
  0x22   :  { %325 = vmatpush.bf16.msrb.mxu0 %v605_v1  ;;  %338 = vmatmul.bf16.vlgmr.msra.gmra.mxu1 %v423_v36 }
  0x26   :  { %326 = vmatpush.bf16.msrb.mxu0 %v617_v4 }
  0x2a   :  { %327 = vmatpush.bf16.msrb.mxu0 %v635_v9 }
  0x2b   :  { %526 = vmatmul.msk.bf16.gmra.mxu2 %vm283_vm0, %v439_v42 }
  0x2e   :  { %328 = vmatpush.bf16.msrb.mxu0 %v645_v12 }
  0x31   :  { %314 = vmatmul.bf16.gmra.mxu3 %v431_v49 }
  0x32   :  { %329 = vmatpush.bf16.msrb.mxu0 %v654_v14  ;;  %343 = vmatmul.bf16.gmra.mxu1 %v435_v50 }
  0x36   :  { %330 = vmatpush.bf16.msrb.mxu0 %v550_v18 }
  0x3a   :  { %331 = vmatpush.bf16.msrb.mxu0 %v549_v22 }
  0x3b   :  { %527 = vmatmul.msk.bf16.gmra.mxu2 %vm283_vm0, %v451_v53 }
  0x3e   :  { %332 = vmatpush.bf16.msrb.mxu0 %v548_v31 }
  0x41   :  { %333 = vmatmul.bf16.vlgmr.msrb.gmra.mxu0 %v411_v56  ;;  %319 = vmatmul.bf16.gmra.mxu3 %v443_v61 }
  0x42   :  { %348 = vmatmul.bf16.gmra.mxu1 %v447_v62 }
  0x66   :  { %v98_v18 = vpop.permute.xlu2 %97 }
  0x6e   :  { %v103_v30 = vpop.permute.xlu2 %102 }
  0x7a   :  { %v88_v3 = vpop.permute.xlu1 %87  ;;  %v78_v15 = vpop.permute.xlu0 %77 }
  0x82   :  { %v93_v11 = vpop.permute.xlu1 %92  ;;  %v83_v26 = vpop.permute.xlu0 %82 }
  0x8a   :  { %v108_v42 = vpop.permute.xlu0 %107  ;;  %v113_v55 = vpop.permute.xlu1 %112 }
  0x8e   :  { %v363_v63 = vpop.f32.mrf.mxu2 }
  0x96   :  { %v365_v0 = vpop.f32.mrf.mxu2 }
  0x9e   :  { %v368_v1 = vpop.f32.mrf.mxu2  ;;  %v305_v8 = vpop.f32.mrf.mxu0 }
  0x9f   :  { %v339_v2 = vpop.f32.mrf.mxu1  ;;  %v306_v28 = vadd.f32 %v305_v8, %v78_v15 }
  0xa4   :  { %v310_v4 = vpop.f32.mrf.mxu3 }
  0xa5   :  { %v311_v5 = vadd.f32 %v310_v4, %v88_v3 }
  0xa6   :  { %v370_v9 = vpop.f32.mrf.mxu2  ;;  %v307_v20 = vpop.f32.mrf.mxu0 }
  0xa7   :  { %v340_v6 = vadd.f32 %v339_v2, %v311_v5  ;;  %v341_v7 = vpop.f32.mrf.mxu1  ;;  %v308_v41 = vadd.f32 %v307_v20, %v83_v26 }
  0xa9   :  { %v369_v10 = vadd.f32 %v368_v1, %v340_v6 }
  0xab   :  { %v385_v12 = vmax.f32 %v369_v10, 0.0 }
  0xac   :  { %v312_v13 = vpop.f32.mrf.mxu3 }
  0xad   :  { %394 = vst.msk [vmem:[%s808_s3 + $0x10] sm:$0xff] %vm391_vm1, %v385_v12  ;;  %v313_v14 = vadd.f32 %v312_v13, %v93_v11 }
  0xae   :  { %v373_v21 = vpop.f32.mrf.mxu2 }
  0xaf   :  { %v342_v16 = vadd.f32 %v341_v7, %v313_v14  ;;  %v344_v17 = vpop.f32.mrf.mxu1 }
  0xb1   :  { %v371_v19 = vadd.f32 %v370_v9, %v342_v16 }
  0xb3   :  { %v386_v22 = vmax.f32 %v371_v19, 0.0 }
  0xb4   :  { %v315_v23 = vpop.f32.mrf.mxu3 }
  0xb5   :  { %395 = vst.msk [vmem:[%s808_s3 + $0x18] sm:$0xff] %vm391_vm1, %v386_v22  ;;  %v316_v24 = vadd.f32 %v315_v23, %v98_v18 }
  0xb6   :  { %v375_v33 = vpop.f32.mrf.mxu2 }
  0xb7   :  { %v345_v25 = vadd.f32 %v344_v17, %v316_v24  ;;  %v346_v29 = vpop.f32.mrf.mxu1 }
  0xb9   :  { %v374_v27 = vadd.f32 %v373_v21, %v345_v25 }
  0xbb   :  { %v387_v31 = vmax.f32 %v374_v27, 0.0 }
  0xbc   :  { %v317_v35 = vpop.f32.mrf.mxu3 }
  0xbd   :  { %396 = vst.msk [vmem:[%s808_s3 + $0x20] sm:$0xff] %vm391_vm1, %v387_v31  ;;  %v318_v36 = vadd.f32 %v317_v35, %v103_v30 }
  0xbe   :  { %v334_v32 = vpop.f32.mrf.mxu0  ;;  %v378_v49 = vpop.f32.mrf.mxu2 }
  0xbf   :  { %v335_v34 = vadd.f32 %v334_v32, %v306_v28  ;;  %v347_v38 = vadd.f32 %v346_v29, %v318_v36  ;;  %v349_v45 = vpop.f32.mrf.mxu1 }
  0xc1   :  { %v364_v37 = vadd.f32 %v363_v63, %v335_v34  ;;  %v376_v40 = vadd.f32 %v375_v33, %v347_v38 }
  0xc3   :  { %v383_v39 = vmax.f32 %v364_v37, 0.0  ;;  %v388_v43 = vmax.f32 %v376_v40, 0.0 }
  0xc4   :  { %v320_v47 = vpop.f32.mrf.mxu3 }
  0xc5   :  { %392 = vst.msk [vmem:[%s808_s3] sm:$0xff] %vm391_vm1, %v383_v39  ;;  %v321_v48 = vadd.f32 %v320_v47, %v108_v42 }
  0xc6   :  { %v336_v44 = vpop.f32.mrf.mxu0  ;;  %397 = vst.msk [vmem:[%s808_s3 + $0x28] sm:$0xff] %vm391_vm1, %v388_v43  ;;  %v380_v60 = vpop.f32.mrf.mxu2 }
  0xc7   :  { %v337_v46 = vadd.f32 %v336_v44, %v308_v41  ;;  %v350_v51 = vadd.f32 %v349_v45, %v321_v48  ;;  %v351_v58 = vpop.f32.mrf.mxu1 }
  0xc9   :  { %v366_v50 = vadd.f32 %v365_v0, %v337_v46  ;;  %v379_v53 = vadd.f32 %v378_v49, %v350_v51 }
  0xcb   :  { %v384_v52 = vmax.f32 %v366_v50, 0.0  ;;  %v389_v54 = vmax.f32 %v379_v53, 0.0 }
  0xcc   :  { %v322_v56 = vpop.f32.mrf.mxu3 }
  0xcd   :  { %393 = vst.msk [vmem:[%s808_s3 + $0x8] sm:$0xff] %vm391_vm1, %v384_v52  ;;  %v323_v57 = vadd.f32 %v322_v56, %v113_v55 }
  0xce   :  { %398 = vst.msk [vmem:[%s808_s3 + $0x30] sm:$0xff] %vm391_vm1, %v389_v54 }
  0xcf   :  { %v352_v59 = vadd.f32 %v351_v58, %v323_v57 }
  0xd1   :  { %v381_v61 = vadd.f32 %v380_v60, %v352_v59 }
  0xd3   :  { %v390_v62 = vmax.f32 %v381_v61, 0.0 }
  0xd5   :  { %399 = vst.msk [vmem:[%s808_s3 + $0x38] sm:$0xff] %vm391_vm1, %v390_v62 }

// kernel: urresnet_forward.39
= control target key start
LH: loop header
LB: loop body
LE: loop exit
PB: predicated region body
PF: predicated region fallthrough
CT: control target
= control target key end

     0   :  { %v206_v0 = vmov 0   ;;  %vm107_vm0 = vcmask 261120   ;;  %vm149_vm1 = vcmask 15360   ;;  %s301_s2 = inlined_call_operand.vmem [shape: f32[64,1], index: 2, kind: input, shape index: {}]   ;;  %s302_s0 = inlined_call_operand.vmem [shape: bf16[32,2], index: 0, kind: input, shape index: {}]   ;;  %s303_s1 = inlined_call_operand.vmem [shape: bf16[64,32], index: 1, kind: input, shape index: {}]   ;;  %s304_s3 = inlined_call_operand.vmem [shape: f32[64,2], index: 3, kind: output, shape index: {}]  }
   0x1   :  { %204 = vset.pattern.permute.xlu1 %v206_v0  ;;  %203 = vset.pattern.permute.xlu0 %v206_v0  ;;  %v29_v1 = vld [vmem:[%s301_s2 + $0x10] sm:$0xff]  ;;  %v27_v2 = vld [vmem:[%s301_s2] sm:$0xff]  ;;  %v195_v3 = vld [vmem:[%s302_s0 + $0x8] sm:$0xff] }
   0x2   :  { %47 = vperm.xlu1 %204, %v29_v1   ;;  %37 = vperm.xlu0 %203, %v27_v2   ;;  %v194_v4 = vld [vmem:[%s302_s0] sm:$0xff]  ;;  %v191_v7 = vld [vmem:[%s303_s1 + $0x8] sm:$0xff]  ;;  %v192_v8 = vld [vmem:[%s303_s1 + $0x10] sm:$0xff] }
   0x3   :  { %126 = vmatpush.bf16.msra.mxu0 %v195_v3  ;;  %196 = vmatpush.bf16.msra.mxu1 %v195_v3  ;;  %v31_v5 = vld [vmem:[%s301_s2 + $0x20] sm:$0xff]  ;;  %v193_v9 = vld [vmem:[%s303_s1 + $0x18] sm:$0xff]  ;;  %v28_v11 = vld [vmem:[%s301_s2 + $0x8] sm:$0xff] }
   0x4   :  { %197 = vmatpush.bf16.msra.mxu2 %v195_v3  ;;  %198 = vmatpush.bf16.msra.mxu3 %v195_v3  ;;  %v190_v6 = vld [vmem:[%s303_s1] sm:$0xff]  ;;  %v30_v10 = vld [vmem:[%s301_s2 + $0x18] sm:$0xff]  ;;  %v32_v12 = vld [vmem:[%s301_s2 + $0x28] sm:$0xff] }
   0x5   :  { %205 = vset.pattern.permute.xlu2 %v206_v0  ;;  %v34_v13 = vld [vmem:[%s301_s2 + $0x38] sm:$0xff]  ;;  %v33_v14 = vld [vmem:[%s301_s2 + $0x30] sm:$0xff] }
   0x6   :  { %57 = vperm.xlu2 %205, %v31_v5  }
   0x7   :  { %127 = vmatpush.bf16.msra.mxu0 %v194_v4  ;;  %199 = vmatpush.bf16.msra.mxu1 %v194_v4 }
   0x8   :  { %200 = vmatpush.bf16.msra.mxu2 %v194_v4  ;;  %201 = vmatpush.bf16.msra.mxu3 %v194_v4 }
   0xa   :  { %186 = vmatmul.msk.bf16.vlgmr.msra.gmra.mxu0 %vm107_vm0, %v190_v6  ;;  %187 = vmatmul.msk.bf16.vlgmr.msra.gmra.mxu1 %vm107_vm0, %v191_v7 }
   0xb   :  { %188 = vmatmul.msk.bf16.vlgmr.msra.gmra.mxu2 %vm107_vm0, %v192_v8  ;;  %189 = vmatmul.msk.bf16.vlgmr.msra.gmra.mxu3 %vm107_vm0, %v193_v9 }
   0xc   :  { %52 = vperm.xlu1 %204, %v30_v10   ;;  %42 = vperm.xlu0 %203, %v28_v11  }
   0xe   :  { %62 = vperm.xlu2 %205, %v32_v12  }
  0x14   :  { %72 = vperm.xlu1 %204, %v34_v13   ;;  %67 = vperm.xlu0 %203, %v33_v14  }
  0x60   :  { %v58_v23 = vpop.permute.xlu2 %57 }
  0x68   :  { %v63_v34 = vpop.permute.xlu2 %62 }
  0x74   :  { %v38_v15 = vpop.permute.xlu0 %37  ;;  %v48_v16 = vpop.permute.xlu1 %47 }
  0x7e   :  { %v43_v17 = vpop.permute.xlu0 %42  ;;  %v53_v22 = vpop.permute.xlu1 %52 }
  0x86   :  { %v68_v24 = vpop.permute.xlu0 %67  ;;  %v73_v33 = vpop.permute.xlu1 %72 }
  0x87   :  { %v129_v18 = vpop.f32.mrf.mxu0  ;;  %v134_v19 = vpop.f32.mrf.mxu1 }
  0x88   :  { %v130_v20 = vadd.f32 %v129_v18, %v38_v15  ;;  %v135_v21 = vadd.f32 %v134_v19, %v48_v16 }
  0x8a   :  { %150 = vst.msk [vmem:[%s304_s3] sm:$0xff] %vm149_vm1, %v130_v20 }
  0x8b   :  { %152 = vst.msk [vmem:[%s304_s3 + $0x10] sm:$0xff] %vm149_vm1, %v135_v21 }
  0x8e   :  { %v139_v25 = vpop.f32.mrf.mxu2  ;;  %v144_v26 = vpop.f32.mrf.mxu3 }
  0x8f   :  { %v140_v27 = vadd.f32 %v139_v25, %v58_v23  ;;  %v145_v28 = vadd.f32 %v144_v26, %v68_v24  ;;  %v131_v29 = vpop.f32.mrf.mxu0  ;;  %v136_v30 = vpop.f32.mrf.mxu1 }
  0x90   :  { %v132_v31 = vadd.f32 %v131_v29, %v43_v17  ;;  %v137_v32 = vadd.f32 %v136_v30, %v53_v22 }
  0x91   :  { %154 = vst.msk [vmem:[%s304_s3 + $0x20] sm:$0xff] %vm149_vm1, %v140_v27 }
  0x92   :  { %156 = vst.msk [vmem:[%s304_s3 + $0x30] sm:$0xff] %vm149_vm1, %v145_v28 }
  0x93   :  { %151 = vst.msk [vmem:[%s304_s3 + $0x8] sm:$0xff] %vm149_vm1, %v132_v31 }
  0x94   :  { %153 = vst.msk [vmem:[%s304_s3 + $0x18] sm:$0xff] %vm149_vm1, %v137_v32 }
  0x96   :  { %v141_v35 = vpop.f32.mrf.mxu2  ;;  %v146_v36 = vpop.f32.mrf.mxu3 }
  0x97   :  { %v142_v37 = vadd.f32 %v141_v35, %v63_v34  ;;  %v147_v38 = vadd.f32 %v146_v36, %v73_v33 }
  0x99   :  { %155 = vst.msk [vmem:[%s304_s3 + $0x28] sm:$0xff] %vm149_vm1, %v142_v37 }
  0x9a   :  { %157 = vst.msk [vmem:[%s304_s3 + $0x38] sm:$0xff] %vm149_vm1, %v147_v38 }

// kernel: urresnet_forward.41
= control target key start
LH: loop header
LB: loop body
LE: loop exit
PB: predicated region body
PF: predicated region fallthrough
CT: control target
= control target key end

     0   :  { %v958_v6 = vmov 0   ;;  %vm475_vm0 = vcmask 523264   ;;  %vm641_vm1 = vcmask 15360   ;;  %s1273_s0 = inlined_call_operand.vmem [shape: bf16[576,2], index: 0, kind: input, shape index: {}]   ;;  %s1274_s2 = inlined_call_operand.vmem [shape: f32[64,1], index: 2, kind: input, shape index: {}]   ;;  %s1275_s1 = inlined_call_operand.vmem [shape: bf16[64,576], index: 1, kind: input, shape index: {}]   ;;  %s1276_s3 = inlined_call_operand.vmem [shape: f32[64,2], index: 3, kind: output, shape index: {}]  }
   0x1   :  { %v909_v0 = vld [vmem:[%s1273_s0 + $0x38] sm:$0xff]  ;;  %v908_v1 = vld [vmem:[%s1273_s0 + $0x30] sm:$0xff]  ;;  %v907_v4 = vld [vmem:[%s1273_s0 + $0x28] sm:$0xff]  ;;  %956 = vset.pattern.permute.xlu1 %v958_v6  ;;  %955 = vset.pattern.permute.xlu0 %v958_v6 }
   0x2   :  { %938 = vmatpush.bf16.msra.mxu1 %v909_v0  ;;  %939 = vmatpush.bf16.msra.mxu2 %v909_v0  ;;  %v933_v2 = vld [vmem:[%s1273_s0 + $0xf8] sm:$0xff]  ;;  %v932_v3 = vld [vmem:[%s1273_s0 + $0xf0] sm:$0xff]  ;;  %v931_v5 = vld [vmem:[%s1273_s0 + $0xe8] sm:$0xff] }
   0x3   :  { %488 = vmatpush.bf16.msra.mxu0 %v909_v0  ;;  %575 = vmatpush.bf16.msra.mxu3 %v933_v2  ;;  %v906_v7 = vld [vmem:[%s1273_s0 + $0x20] sm:$0xff]  ;;  %v113_v8 = vld [vmem:[%s1274_s2 + $0x10] sm:$0xff]  ;;  %v905_v11 = vld [vmem:[%s1273_s0 + $0x18] sm:$0xff] }
   0x4   :  { %957 = vset.pattern.permute.xlu2 %v958_v6  ;;  %v930_v9 = vld [vmem:[%s1273_s0 + $0xe0] sm:$0xff]  ;;  %131 = vperm.xlu1 %956, %v113_v8   ;;  %v929_v12 = vld [vmem:[%s1273_s0 + $0xd8] sm:$0xff]  ;;  %v904_v13 = vld [vmem:[%s1273_s0 + $0x10] sm:$0xff] }
   0x5   :  { %v111_v10 = vld [vmem:[%s1274_s2] sm:$0xff]  ;;  %v114_v14 = vld [vmem:[%s1274_s2 + $0x18] sm:$0xff]  ;;  %v928_v15 = vld [vmem:[%s1273_s0 + $0xd0] sm:$0xff] }
   0x6   :  { %940 = vmatpush.bf16.msra.mxu1 %v908_v1  ;;  %941 = vmatpush.bf16.msra.mxu2 %v908_v1  ;;  %v112_v16 = vld [vmem:[%s1274_s2 + $0x8] sm:$0xff]  ;;  %v902_v19 = vld [vmem:[%s1273_s0] sm:$0xff]  ;;  %v889_v21 = vld [vmem:[%s1275_s1 + $0x38] sm:$0xf0] }
   0x7   :  { %489 = vmatpush.bf16.msra.mxu0 %v908_v1  ;;  %576 = vmatpush.bf16.msra.mxu3 %v932_v3  ;;  %v903_v17 = vld [vmem:[%s1273_s0 + $0x8] sm:$0xff]  ;;  %v716_v22 = vld [vmem:[%s1275_s1 + $0x78] sm:$0xf]  ;;  %v656_v26 = vld [vmem:[%s1275_s1] sm:$0xf] }
   0x8   :  { %121 = vperm.xlu0 %955, %v111_v10   ;;  %v927_v18 = vld [vmem:[%s1273_s0 + $0xc8] sm:$0xff]  ;;  %v925_v24 = vld [vmem:[%s1273_s0 + $0xb8] sm:$0xff]  ;;  %v926_v27 = vld [vmem:[%s1273_s0 + $0xc0] sm:$0xff] }
   0x9   :  { %v676_v20 = vld [vmem:[%s1275_s1 + $0x28] sm:$0xf]  ;;  %v899_v23 = vld [vmem:[%s1275_s1 + $0x88] sm:$0xf0]  ;;  %v917_v25 = vld [vmem:[%s1273_s0 + $0x78] sm:$0xff] }
   0xa   :  { %942 = vmatpush.bf16.msra.mxu1 %v907_v4  ;;  %943 = vmatpush.bf16.msra.mxu2 %v907_v4  ;;  %v677_v28 = vor.u32 %v889_v21, %v676_v20  ;;  %v717_v29 = vor.u32 %v899_v23, %v716_v22  ;;  %v884_v30 = vld [vmem:[%s1275_s1 + $0x10] sm:$0xf0]  ;;  %v883_v31 = vld [vmem:[%s1275_s1 + $0xc] sm:$0xf]  ;;  %v666_v32 = vld [vmem:[%s1275_s1 + $0x1c] sm:$0xf0] }
   0xb   :  { %490 = vmatpush.bf16.msra.mxu0 %v907_v4  ;;  %577 = vmatpush.bf16.msra.mxu3 %v931_v5  ;;  %v937_v33 = vld [vmem:[%s1273_s0 + $0x118] sm:$0xff]  ;;  %v924_v34 = vld [vmem:[%s1273_s0 + $0xb0] sm:$0xff]  ;;  %v657_v37 = vor.u32 %v884_v30, %v656_v26  ;;  %v669_v38 = vor.u32 %v883_v31, %v666_v32  ;;  %v923_v41 = vld [vmem:[%s1273_s0 + $0xa8] sm:$0xff] }
   0xc   :  { %136 = vperm.xlu1 %956, %v114_v14   ;;  %v916_v35 = vld [vmem:[%s1273_s0 + $0x70] sm:$0xff]  ;;  %v118_v36 = vld [vmem:[%s1274_s2 + $0x38] sm:$0xff]  ;;  %v915_v42 = vld [vmem:[%s1273_s0 + $0x68] sm:$0xff] }
   0xd   :  { %v936_v39 = vld [vmem:[%s1273_s0 + $0x110] sm:$0xff]  ;;  %v935_v43 = vld [vmem:[%s1273_s0 + $0x108] sm:$0xff]  ;;  %v922_v44 = vld [vmem:[%s1273_s0 + $0xa0] sm:$0xff] }
   0xe   :  { %944 = vmatpush.bf16.msra.mxu1 %v906_v7  ;;  %945 = vmatpush.bf16.msra.mxu2 %v906_v7  ;;  %v117_v40 = vld [vmem:[%s1274_s2 + $0x30] sm:$0xff]  ;;  %v914_v45 = vld [vmem:[%s1273_s0 + $0x60] sm:$0xff]  ;;  %v921_v49 = vld [vmem:[%s1273_s0 + $0x98] sm:$0xff] }
   0xf   :  { %491 = vmatpush.bf16.msra.mxu0 %v906_v7  ;;  %578 = vmatpush.bf16.msra.mxu3 %v930_v9  ;;  %v696_v46 = vld [vmem:[%s1275_s1 + $0x50] sm:$0xf]  ;;  %v894_v47 = vld [vmem:[%s1275_s1 + $0x60] sm:$0xf0]  ;;  %v913_v50 = vld [vmem:[%s1273_s0 + $0x58] sm:$0xff] }
  0x10   :  { %126 = vperm.xlu0 %955, %v112_v16   ;;  %v934_v48 = vld [vmem:[%s1273_s0 + $0x100] sm:$0xff]  ;;  %v672_v51 = vld [vmem:[%s1275_s1 + $0x10] sm:$0xf]  ;;  %v697_v52 = vor.u32 %v894_v47, %v696_v46  ;;  %v888_v54 = vld [vmem:[%s1275_s1 + $0x34] sm:$0xf] }
  0x11   :  { %v886_v53 = vld [vmem:[%s1275_s1 + $0x20] sm:$0xf0]  ;;  %v686_v55 = vld [vmem:[%s1275_s1 + $0x44] sm:$0xf0]  ;;  %v920_v56 = vld [vmem:[%s1273_s0 + $0x90] sm:$0xff] }
  0x12   :  { %946 = vmatpush.bf16.msra.mxu1 %v905_v11  ;;  %947 = vmatpush.bf16.msra.mxu2 %v905_v11  ;;  %v912_v57 = vld [vmem:[%s1273_s0 + $0x50] sm:$0xff]  ;;  %v673_v58 = vor.u32 %v886_v53, %v672_v51  ;;  %v689_v59 = vor.u32 %v888_v54, %v686_v55  ;;  %v115_v60 = vld [vmem:[%s1274_s2 + $0x20] sm:$0xff]  ;;  %v919_v61 = vld [vmem:[%s1273_s0 + $0x88] sm:$0xff] }
  0x13   :  { %492 = vmatpush.bf16.msra.mxu0 %v905_v11  ;;  %579 = vmatpush.bf16.msra.mxu3 %v929_v12  ;;  %v911_v62 = vld [vmem:[%s1273_s0 + $0x48] sm:$0xff]  ;;  %v918_v63 = vld [vmem:[%s1273_s0 + $0x80] sm:$0xff]  ;;  %v885_v2 = vld [vmem:[%s1275_s1 + $0x18] sm:$0xf0] }
  0x14   :  { %156 = vperm.xlu1 %956, %v118_v36   ;;  %141 = vperm.xlu2 %957, %v115_v60   ;;  %v910_v0 = vld [vmem:[%s1273_s0 + $0x40] sm:$0xff]  ;;  %v664_v1 = vld [vmem:[%s1275_s1 + $0x8] sm:$0xf]  ;;  %v658_v6 = vld [vmem:[%s1275_s1 + $0x14] sm:$0xf0] }
  0x15   :  { %v116_v3 = vld [vmem:[%s1274_s2 + $0x28] sm:$0xff]  ;;  %v665_v4 = vor.u32 %v885_v2, %v664_v1  ;;  %v882_v5 = vld [vmem:[%s1275_s1 + $0x4] sm:$0xf]  ;;  %v692_v7 = vld [vmem:[%s1275_s1 + $0x38] sm:$0xf] }
  0x16   :  { %948 = vmatpush.bf16.msra.mxu1 %v904_v13  ;;  %949 = vmatpush.bf16.msra.mxu2 %v904_v13  ;;  %v661_v8 = vor.u32 %v882_v5, %v658_v6  ;;  %v891_v9 = vld [vmem:[%s1275_s1 + $0x48] sm:$0xf0]  ;;  %v893_v10 = vld [vmem:[%s1275_s1 + $0x5c] sm:$0xf]  ;;  %v706_v11 = vld [vmem:[%s1275_s1 + $0x6c] sm:$0xf0] }
  0x17   :  { %493 = vmatpush.bf16.msra.mxu0 %v904_v13  ;;  %580 = vmatpush.bf16.msra.mxu3 %v928_v15  ;;  %v693_v12 = vor.u32 %v891_v9, %v692_v7  ;;  %v709_v13 = vor.u32 %v893_v10, %v706_v11  ;;  %v684_v14 = vld [vmem:[%s1275_s1 + $0x30] sm:$0xf]  ;;  %v890_v15 = vld [vmem:[%s1275_s1 + $0x40] sm:$0xf0]  ;;  %v896_v21 = vld [vmem:[%s1275_s1 + $0x70] sm:$0xf0] }
  0x18   :  { %151 = vperm.xlu0 %955, %v117_v40   ;;  %v685_v16 = vor.u32 %v890_v15, %v684_v14  ;;  %v898_v22 = vld [vmem:[%s1275_s1 + $0x84] sm:$0xf]  ;;  %v726_v23 = vld [vmem:[%s1275_s1 + $0x94] sm:$0xf0]  ;;  %v698_v30 = vld [vmem:[%s1275_s1 + $0x64] sm:$0xf0] }
  0x19   :  { %v704_v26 = vld [vmem:[%s1275_s1 + $0x58] sm:$0xf]  ;;  %v732_v32 = vld [vmem:[%s1275_s1 + $0x88] sm:$0xf]  ;;  %v900_v36 = vld [vmem:[%s1275_s1 + $0x90] sm:$0xf0] }
  0x1a   :  { %950 = vmatpush.bf16.msra.mxu1 %v903_v17  ;;  %951 = vmatpush.bf16.msra.mxu2 %v903_v17 }
  0x1b   :  { %494 = vmatpush.bf16.msra.mxu0 %v903_v17  ;;  %581 = vmatpush.bf16.msra.mxu3 %v927_v18  ;;  %v887_v17 = vld [vmem:[%s1275_s1 + $0x2c] sm:$0xf]  ;;  %v678_v18 = vld [vmem:[%s1275_s1 + $0x3c] sm:$0xf0] }
  0x1c   :  { %146 = vperm.xlu2 %957, %v116_v3   ;;  %v681_v20 = vor.u32 %v887_v17, %v678_v18 }
  0x1e   :  { %952 = vmatpush.bf16.msra.mxu1 %v902_v19  ;;  %953 = vmatpush.bf16.msra.mxu2 %v902_v19 }
  0x1f   :  { %495 = vmatpush.bf16.msra.mxu0 %v902_v19  ;;  %582 = vmatpush.bf16.msra.mxu3 %v926_v27  ;;  %v712_v19 = vld [vmem:[%s1275_s1 + $0x60] sm:$0xf]  ;;  %v895_v27 = vld [vmem:[%s1275_s1 + $0x68] sm:$0xf0] }
  0x21   :  { %501 = vmatmul.bf16.vlgmr.msra.gmra.mxu1 %v677_v28  ;;  %511 = vmatmul.bf16.vlgmr.msra.gmra.mxu2 %v717_v29  ;;  %v705_v28 = vor.u32 %v895_v27, %v704_v26  ;;  %v892_v29 = vld [vmem:[%s1275_s1 + $0x54] sm:$0xf] }
  0x22   :  { %546 = vmatpush.bf16.msrb.mxu2 %v925_v24  ;;  %517 = vmatpush.bf16.msrb.mxu1 %v917_v25  ;;  %v713_v24 = vor.u32 %v896_v21, %v712_v19  ;;  %v729_v25 = vor.u32 %v898_v22, %v726_v23  ;;  %v701_v31 = vor.u32 %v892_v29, %v698_v30 }
  0x23   :  { %608 = vmatpush.bf16.msrb.mxu0 %v937_v33  ;;  %583 = vmatmul.bf16.vlgmr.msra.gmra.mxu3 %v669_v38  ;;  %v901_v33 = vld [vmem:[%s1275_s1 + $0x98] sm:$0xf0] }
  0x24   :  { %496 = vmatmul.bf16.vlgmr.msra.gmra.mxu0 %v657_v37  ;;  %v897_v38 = vld [vmem:[%s1275_s1 + $0x7c] sm:$0xf] }
  0x26   :  { %547 = vmatpush.bf16.msrb.mxu2 %v924_v34  ;;  %518 = vmatpush.bf16.msrb.mxu1 %v916_v35  ;;  %v733_v34 = vor.u32 %v901_v33, %v732_v32  ;;  %v724_v35 = vld [vmem:[%s1275_s1 + $0x80] sm:$0xf] }
  0x27   :  { %609 = vmatpush.bf16.msrb.mxu0 %v936_v39  ;;  %v725_v37 = vor.u32 %v900_v36, %v724_v35  ;;  %v718_v39 = vld [vmem:[%s1275_s1 + $0x8c] sm:$0xf0] }
  0x28   :  { %v721_v40 = vor.u32 %v897_v38, %v718_v39 }
  0x2a   :  { %548 = vmatpush.bf16.msrb.mxu2 %v923_v41  ;;  %519 = vmatpush.bf16.msrb.mxu1 %v915_v42 }
  0x2b   :  { %610 = vmatpush.bf16.msrb.mxu0 %v935_v43 }
  0x2e   :  { %549 = vmatpush.bf16.msrb.mxu2 %v922_v44  ;;  %520 = vmatpush.bf16.msrb.mxu1 %v914_v45 }
  0x2f   :  { %611 = vmatpush.bf16.msrb.mxu0 %v934_v48 }
  0x31   :  { %506 = vmatmul.bf16.gmra.mxu1 %v697_v52 }
  0x32   :  { %550 = vmatpush.bf16.msrb.mxu2 %v921_v49  ;;  %521 = vmatpush.bf16.msrb.mxu1 %v913_v50 }
  0x33   :  { %588 = vmatmul.bf16.gmra.mxu3 %v689_v59 }
  0x34   :  { %878 = vmatmul.msk.bf16.vlgmr.msrb.gmra.mxu0 %vm475_vm0, %v673_v58 }
  0x36   :  { %551 = vmatpush.bf16.msrb.mxu2 %v920_v56  ;;  %522 = vmatpush.bf16.msrb.mxu1 %v912_v57 }
  0x3a   :  { %552 = vmatpush.bf16.msrb.mxu2 %v919_v61  ;;  %523 = vmatpush.bf16.msrb.mxu1 %v911_v62 }
  0x3e   :  { %553 = vmatpush.bf16.msrb.mxu2 %v918_v63  ;;  %524 = vmatpush.bf16.msrb.mxu1 %v910_v0 }
  0x41   :  { %554 = vmatmul.bf16.vlgmr.msrb.gmra.mxu2 %v665_v4  ;;  %525 = vmatmul.bf16.vlgmr.msrb.gmra.mxu1 %v661_v8 }
  0x43   :  { %593 = vmatmul.bf16.gmra.mxu3 %v709_v13 }
  0x44   :  { %879 = vmatmul.msk.bf16.gmra.mxu0 %vm475_vm0, %v693_v12 }
  0x51   :  { %559 = vmatmul.bf16.gmra.mxu2 %v685_v16  ;;  %530 = vmatmul.bf16.gmra.mxu1 %v681_v20 }
  0x53   :  { %598 = vmatmul.bf16.gmra.mxu3 %v729_v25 }
  0x54   :  { %880 = vmatmul.msk.bf16.gmra.mxu0 %vm475_vm0, %v713_v24 }
  0x61   :  { %564 = vmatmul.bf16.gmra.mxu2 %v705_v28  ;;  %535 = vmatmul.bf16.gmra.mxu1 %v701_v31 }
  0x64   :  { %881 = vmatmul.msk.bf16.gmra.mxu0 %vm475_vm0, %v733_v34 }
  0x6e   :  { %v142_v23 = vpop.permute.xlu2 %141 }
  0x71   :  { %569 = vmatmul.bf16.gmra.mxu2 %v725_v37  ;;  %540 = vmatmul.bf16.gmra.mxu1 %v721_v40 }
  0x76   :  { %v132_v1 = vpop.permute.xlu1 %131  ;;  %v147_v36 = vpop.permute.xlu2 %146 }
  0x7a   :  { %v122_v51 = vpop.permute.xlu0 %121 }
  0x7e   :  { %v137_v14 = vpop.permute.xlu1 %136 }
  0x82   :  { %v127_v59 = vpop.permute.xlu0 %126 }
  0x9e   :  { %v502_v41 = vpop.f32.mrf.mxu1 }
  0x9f   :  { %v503_v8 = vadd.f32 %v502_v41, %v132_v1 }
  0xa1   :  { %v497_v42 = vpop.f32.mrf.mxu0 }
  0xa2   :  { %v498_v52 = vadd.f32 %v497_v42, %v122_v51 }
  0xa4   :  { %v1235_v46 = vpop.f32.mrf.mxu2 }
  0xa6   :  { %v504_v43 = vpop.f32.mrf.mxu1  ;;  %v584_v47 = vpop.f32.mrf.mxu3 }
  0xa7   :  { %v505_v18 = vadd.f32 %v504_v43, %v137_v14 }
  0xa9   :  { %v499_v44 = vpop.f32.mrf.mxu0 }
  0xaa   :  { %v500_v61 = vadd.f32 %v499_v44, %v127_v59  ;;  %v157_v59 = vpop.permute.xlu1 %156 }
  0xac   :  { %v1237_v50 = vpop.f32.mrf.mxu2 }
  0xae   :  { %v507_v45 = vpop.f32.mrf.mxu1  ;;  %v586_v55 = vpop.f32.mrf.mxu3 }
  0xaf   :  { %v508_v28 = vadd.f32 %v507_v45, %v142_v23 }
  0xb1   :  { %v613_v49 = vpop.f32.mrf.mxu0 }
  0xb6   :  { %v509_v48 = vpop.f32.mrf.mxu1  ;;  %v589_v4 = vpop.f32.mrf.mxu3 }
  0xb7   :  { %v510_v39 = vadd.f32 %v509_v48, %v147_v36 }
  0xb9   :  { %v615_v57 = vpop.f32.mrf.mxu0 }
  0xbe   :  { %v526_v53 = vpop.f32.mrf.mxu1  ;;  %v591_v16 = vpop.f32.mrf.mxu3 }
  0xbf   :  { %v527_v54 = vadd.f32 %v526_v53, %v498_v52 }
  0xc1   :  { %v618_v6 = vpop.f32.mrf.mxu0 }
  0xc4   :  { %v555_v56 = vpop.f32.mrf.mxu2 }
  0xc5   :  { %v556_v58 = vadd.f32 %v555_v56, %v527_v54 }
  0xc6   :  { %v528_v63 = vpop.f32.mrf.mxu1  ;;  %v594_v29 = vpop.f32.mrf.mxu3 }
  0xc7   :  { %v585_v60 = vadd.f32 %v584_v47, %v556_v58  ;;  %v529_v0 = vadd.f32 %v528_v63, %v500_v61  ;;  %v515_v63 = vadd.f32 %v1237_v50, %v157_v59 }
  0xc9   :  { %v614_v62 = vadd.f32 %v613_v49, %v585_v60  ;;  %v620_v19 = vpop.f32.mrf.mxu0  ;;  %v152_v49 = vpop.permute.xlu0 %151 }
  0xca   :  { %v513_v53 = vadd.f32 %v1235_v46, %v152_v49 }
  0xcb   :  { %v633_v2 = vmax.f32 %v614_v62, 0.0 }
  0xcc   :  { %v557_v3 = vpop.f32.mrf.mxu2 }
  0xcd   :  { %642 = vst.msk [vmem:[%s1276_s3] sm:$0xff] %vm641_vm1, %v633_v2  ;;  %v558_v5 = vadd.f32 %v557_v3, %v529_v0 }
  0xce   :  { %v531_v10 = vpop.f32.mrf.mxu1  ;;  %v596_v42 = vpop.f32.mrf.mxu3 }
  0xcf   :  { %v587_v7 = vadd.f32 %v586_v55, %v558_v5  ;;  %v532_v11 = vadd.f32 %v531_v10, %v503_v8 }
  0xd1   :  { %v616_v9 = vadd.f32 %v615_v57, %v587_v7  ;;  %v623_v32 = vpop.f32.mrf.mxu0 }
  0xd3   :  { %v634_v12 = vmax.f32 %v616_v9, 0.0 }
  0xd4   :  { %v560_v13 = vpop.f32.mrf.mxu2 }
  0xd5   :  { %643 = vst.msk [vmem:[%s1276_s3 + $0x8] sm:$0xff] %vm641_vm1, %v634_v12  ;;  %v561_v15 = vadd.f32 %v560_v13, %v532_v11 }
  0xd6   :  { %v533_v21 = vpop.f32.mrf.mxu1  ;;  %v599_v57 = vpop.f32.mrf.mxu3 }
  0xd7   :  { %v590_v17 = vadd.f32 %v589_v4, %v561_v15  ;;  %v534_v22 = vadd.f32 %v533_v21, %v505_v18 }
  0xd9   :  { %v619_v20 = vadd.f32 %v618_v6, %v590_v17  ;;  %v625_v45 = vpop.f32.mrf.mxu0 }
  0xdb   :  { %v635_v24 = vmax.f32 %v619_v20, 0.0 }
  0xdc   :  { %v562_v25 = vpop.f32.mrf.mxu2 }
  0xdd   :  { %644 = vst.msk [vmem:[%s1276_s3 + $0x10] sm:$0xff] %vm641_vm1, %v635_v24  ;;  %v563_v26 = vadd.f32 %v562_v25, %v534_v22 }
  0xde   :  { %v536_v31 = vpop.f32.mrf.mxu1  ;;  %v601_v5 = vpop.f32.mrf.mxu3 }
  0xdf   :  { %v592_v27 = vadd.f32 %v591_v16, %v563_v26  ;;  %v537_v33 = vadd.f32 %v536_v31, %v508_v28 }
  0xe1   :  { %v621_v30 = vadd.f32 %v620_v19, %v592_v27  ;;  %v628_v61 = vpop.f32.mrf.mxu0 }
  0xe3   :  { %v636_v34 = vmax.f32 %v621_v30, 0.0 }
  0xe4   :  { %v565_v35 = vpop.f32.mrf.mxu2 }
  0xe5   :  { %645 = vst.msk [vmem:[%s1276_s3 + $0x18] sm:$0xff] %vm641_vm1, %v636_v34  ;;  %v566_v37 = vadd.f32 %v565_v35, %v537_v33 }
  0xe6   :  { %v538_v41 = vpop.f32.mrf.mxu1 }
  0xe7   :  { %v595_v38 = vadd.f32 %v594_v29, %v566_v37  ;;  %v539_v43 = vadd.f32 %v538_v41, %v510_v39 }
  0xe9   :  { %v624_v40 = vadd.f32 %v623_v32, %v595_v38  ;;  %v630_v7 = vpop.f32.mrf.mxu0 }
  0xeb   :  { %v637_v44 = vmax.f32 %v624_v40, 0.0 }
  0xec   :  { %v567_v47 = vpop.f32.mrf.mxu2 }
  0xed   :  { %646 = vst.msk [vmem:[%s1276_s3 + $0x20] sm:$0xff] %vm641_vm1, %v637_v44  ;;  %v568_v51 = vadd.f32 %v567_v47, %v539_v43 }
  0xee   :  { %v541_v55 = vpop.f32.mrf.mxu1 }
  0xef   :  { %v597_v52 = vadd.f32 %v596_v42, %v568_v51  ;;  %v542_v48 = vadd.f32 %v541_v55, %v513_v53 }
  0xf1   :  { %v626_v54 = vadd.f32 %v625_v45, %v597_v52 }
  0xf3   :  { %v638_v56 = vmax.f32 %v626_v54, 0.0 }
  0xf4   :  { %v570_v58 = vpop.f32.mrf.mxu2 }
  0xf5   :  { %647 = vst.msk [vmem:[%s1276_s3 + $0x28] sm:$0xff] %vm641_vm1, %v638_v56  ;;  %v571_v60 = vadd.f32 %v570_v58, %v542_v48 }
  0xf6   :  { %v543_v1 = vpop.f32.mrf.mxu1 }
  0xf7   :  { %v600_v62 = vadd.f32 %v599_v57, %v571_v60  ;;  %v544_v46 = vadd.f32 %v543_v1, %v515_v63 }
  0xf9   :  { %v629_v0 = vadd.f32 %v628_v61, %v600_v62 }
  0xfb   :  { %v639_v2 = vmax.f32 %v629_v0, 0.0 }
  0xfc   :  { %v572_v3 = vpop.f32.mrf.mxu2 }
  0xfd   :  { %648 = vst.msk [vmem:[%s1276_s3 + $0x30] sm:$0xff] %vm641_vm1, %v639_v2  ;;  %v573_v4 = vadd.f32 %v572_v3, %v544_v46 }
  0xff   :  { %v602_v6 = vadd.f32 %v601_v5, %v573_v4 }
 0x101   :  { %v631_v8 = vadd.f32 %v630_v7, %v602_v6 }
 0x103   :  { %v640_v9 = vmax.f32 %v631_v8, 0.0 }
 0x105   :  { %649 = vst.msk [vmem:[%s1276_s3 + $0x38] sm:$0xff] %vm641_vm1, %v640_v9 }

// kernel: urresnet_forward.40
= control target key start
LH: loop header
LB: loop body
LE: loop exit
PB: predicated region body
PF: predicated region fallthrough
CT: control target
= control target key end

     0   :  { %v977_v6 = vmov 0   ;;  %vm478_vm0 = vcmask 523264   ;;  %vm660_vm1 = vcmask 15360   ;;  %s1324_s0 = inlined_call_operand.vmem [shape: bf16[576,2], index: 0, kind: input, shape index: {}]   ;;  %s1325_s2 = inlined_call_operand.vmem [shape: f32[64,1], index: 2, kind: input, shape index: {}]   ;;  %s1326_s1 = inlined_call_operand.vmem [shape: bf16[64,576], index: 1, kind: input, shape index: {}]   ;;  %s1327_s3 = inlined_call_operand.vmem [shape: f32[64,2], index: 3, kind: input, shape index: {}]   ;;  %s1328_s4 = inlined_call_operand.vmem [shape: f32[64,2], index: 4, kind: output, shape index: {}]  }
   0x1   :  { %v928_v0 = vld [vmem:[%s1324_s0 + $0x38] sm:$0xff]  ;;  %v927_v1 = vld [vmem:[%s1324_s0 + $0x30] sm:$0xff]  ;;  %v926_v4 = vld [vmem:[%s1324_s0 + $0x28] sm:$0xff]  ;;  %975 = vset.pattern.permute.xlu1 %v977_v6  ;;  %974 = vset.pattern.permute.xlu0 %v977_v6 }
   0x2   :  { %957 = vmatpush.bf16.msra.mxu1 %v928_v0  ;;  %958 = vmatpush.bf16.msra.mxu2 %v928_v0  ;;  %v952_v2 = vld [vmem:[%s1324_s0 + $0xf8] sm:$0xff]  ;;  %v951_v3 = vld [vmem:[%s1324_s0 + $0xf0] sm:$0xff]  ;;  %v950_v5 = vld [vmem:[%s1324_s0 + $0xe8] sm:$0xff] }
   0x3   :  { %491 = vmatpush.bf16.msra.mxu0 %v928_v0  ;;  %578 = vmatpush.bf16.msra.mxu3 %v952_v2  ;;  %v925_v7 = vld [vmem:[%s1324_s0 + $0x20] sm:$0xff]  ;;  %v116_v8 = vld [vmem:[%s1325_s2 + $0x10] sm:$0xff]  ;;  %v924_v11 = vld [vmem:[%s1324_s0 + $0x18] sm:$0xff] }
   0x4   :  { %976 = vset.pattern.permute.xlu2 %v977_v6  ;;  %v949_v9 = vld [vmem:[%s1324_s0 + $0xe0] sm:$0xff]  ;;  %134 = vperm.xlu1 %975, %v116_v8   ;;  %v948_v12 = vld [vmem:[%s1324_s0 + $0xd8] sm:$0xff]  ;;  %v923_v13 = vld [vmem:[%s1324_s0 + $0x10] sm:$0xff] }
   0x5   :  { %v114_v10 = vld [vmem:[%s1325_s2] sm:$0xff]  ;;  %v117_v14 = vld [vmem:[%s1325_s2 + $0x18] sm:$0xff]  ;;  %v947_v15 = vld [vmem:[%s1324_s0 + $0xd0] sm:$0xff] }
   0x6   :  { %959 = vmatpush.bf16.msra.mxu1 %v927_v1  ;;  %960 = vmatpush.bf16.msra.mxu2 %v927_v1  ;;  %v115_v16 = vld [vmem:[%s1325_s2 + $0x8] sm:$0xff]  ;;  %v921_v19 = vld [vmem:[%s1324_s0] sm:$0xff]  ;;  %v908_v21 = vld [vmem:[%s1326_s1 + $0x38] sm:$0xf0] }
   0x7   :  { %492 = vmatpush.bf16.msra.mxu0 %v927_v1  ;;  %579 = vmatpush.bf16.msra.mxu3 %v951_v3  ;;  %v922_v17 = vld [vmem:[%s1324_s0 + $0x8] sm:$0xff]  ;;  %v735_v22 = vld [vmem:[%s1326_s1 + $0x78] sm:$0xf]  ;;  %v675_v26 = vld [vmem:[%s1326_s1] sm:$0xf] }
   0x8   :  { %124 = vperm.xlu0 %974, %v114_v10   ;;  %v946_v18 = vld [vmem:[%s1324_s0 + $0xc8] sm:$0xff]  ;;  %v944_v24 = vld [vmem:[%s1324_s0 + $0xb8] sm:$0xff]  ;;  %v945_v27 = vld [vmem:[%s1324_s0 + $0xc0] sm:$0xff] }
   0x9   :  { %v695_v20 = vld [vmem:[%s1326_s1 + $0x28] sm:$0xf]  ;;  %v918_v23 = vld [vmem:[%s1326_s1 + $0x88] sm:$0xf0]  ;;  %v936_v25 = vld [vmem:[%s1324_s0 + $0x78] sm:$0xff] }
   0xa   :  { %961 = vmatpush.bf16.msra.mxu1 %v926_v4  ;;  %962 = vmatpush.bf16.msra.mxu2 %v926_v4  ;;  %v696_v28 = vor.u32 %v908_v21, %v695_v20  ;;  %v736_v29 = vor.u32 %v918_v23, %v735_v22  ;;  %v903_v30 = vld [vmem:[%s1326_s1 + $0x10] sm:$0xf0]  ;;  %v902_v31 = vld [vmem:[%s1326_s1 + $0xc] sm:$0xf]  ;;  %v685_v32 = vld [vmem:[%s1326_s1 + $0x1c] sm:$0xf0] }
   0xb   :  { %493 = vmatpush.bf16.msra.mxu0 %v926_v4  ;;  %580 = vmatpush.bf16.msra.mxu3 %v950_v5  ;;  %v956_v33 = vld [vmem:[%s1324_s0 + $0x118] sm:$0xff]  ;;  %v943_v34 = vld [vmem:[%s1324_s0 + $0xb0] sm:$0xff]  ;;  %v676_v37 = vor.u32 %v903_v30, %v675_v26  ;;  %v688_v38 = vor.u32 %v902_v31, %v685_v32  ;;  %v942_v41 = vld [vmem:[%s1324_s0 + $0xa8] sm:$0xff] }
   0xc   :  { %139 = vperm.xlu1 %975, %v117_v14   ;;  %v935_v35 = vld [vmem:[%s1324_s0 + $0x70] sm:$0xff]  ;;  %v121_v36 = vld [vmem:[%s1325_s2 + $0x38] sm:$0xff]  ;;  %v934_v42 = vld [vmem:[%s1324_s0 + $0x68] sm:$0xff] }
   0xd   :  { %v955_v39 = vld [vmem:[%s1324_s0 + $0x110] sm:$0xff]  ;;  %v954_v43 = vld [vmem:[%s1324_s0 + $0x108] sm:$0xff]  ;;  %v941_v44 = vld [vmem:[%s1324_s0 + $0xa0] sm:$0xff] }
   0xe   :  { %963 = vmatpush.bf16.msra.mxu1 %v925_v7  ;;  %964 = vmatpush.bf16.msra.mxu2 %v925_v7  ;;  %v120_v40 = vld [vmem:[%s1325_s2 + $0x30] sm:$0xff]  ;;  %v933_v45 = vld [vmem:[%s1324_s0 + $0x60] sm:$0xff]  ;;  %v940_v49 = vld [vmem:[%s1324_s0 + $0x98] sm:$0xff] }
   0xf   :  { %494 = vmatpush.bf16.msra.mxu0 %v925_v7  ;;  %581 = vmatpush.bf16.msra.mxu3 %v949_v9  ;;  %v715_v46 = vld [vmem:[%s1326_s1 + $0x50] sm:$0xf]  ;;  %v913_v47 = vld [vmem:[%s1326_s1 + $0x60] sm:$0xf0]  ;;  %v932_v50 = vld [vmem:[%s1324_s0 + $0x58] sm:$0xff] }
  0x10   :  { %129 = vperm.xlu0 %974, %v115_v16   ;;  %v953_v48 = vld [vmem:[%s1324_s0 + $0x100] sm:$0xff]  ;;  %v691_v51 = vld [vmem:[%s1326_s1 + $0x10] sm:$0xf]  ;;  %v716_v52 = vor.u32 %v913_v47, %v715_v46  ;;  %v907_v54 = vld [vmem:[%s1326_s1 + $0x34] sm:$0xf] }
  0x11   :  { %v905_v53 = vld [vmem:[%s1326_s1 + $0x20] sm:$0xf0]  ;;  %v705_v55 = vld [vmem:[%s1326_s1 + $0x44] sm:$0xf0]  ;;  %v939_v56 = vld [vmem:[%s1324_s0 + $0x90] sm:$0xff] }
  0x12   :  { %965 = vmatpush.bf16.msra.mxu1 %v924_v11  ;;  %966 = vmatpush.bf16.msra.mxu2 %v924_v11  ;;  %v931_v57 = vld [vmem:[%s1324_s0 + $0x50] sm:$0xff]  ;;  %v692_v58 = vor.u32 %v905_v53, %v691_v51  ;;  %v708_v59 = vor.u32 %v907_v54, %v705_v55  ;;  %v118_v60 = vld [vmem:[%s1325_s2 + $0x20] sm:$0xff]  ;;  %v938_v61 = vld [vmem:[%s1324_s0 + $0x88] sm:$0xff] }
  0x13   :  { %495 = vmatpush.bf16.msra.mxu0 %v924_v11  ;;  %582 = vmatpush.bf16.msra.mxu3 %v948_v12  ;;  %v930_v62 = vld [vmem:[%s1324_s0 + $0x48] sm:$0xff]  ;;  %v937_v63 = vld [vmem:[%s1324_s0 + $0x80] sm:$0xff]  ;;  %v904_v2 = vld [vmem:[%s1326_s1 + $0x18] sm:$0xf0] }
  0x14   :  { %159 = vperm.xlu1 %975, %v121_v36   ;;  %144 = vperm.xlu2 %976, %v118_v60   ;;  %v929_v0 = vld [vmem:[%s1324_s0 + $0x40] sm:$0xff]  ;;  %v683_v1 = vld [vmem:[%s1326_s1 + $0x8] sm:$0xf]  ;;  %v677_v6 = vld [vmem:[%s1326_s1 + $0x14] sm:$0xf0] }
  0x15   :  { %v119_v3 = vld [vmem:[%s1325_s2 + $0x28] sm:$0xff]  ;;  %v684_v4 = vor.u32 %v904_v2, %v683_v1  ;;  %v901_v5 = vld [vmem:[%s1326_s1 + $0x4] sm:$0xf]  ;;  %v711_v7 = vld [vmem:[%s1326_s1 + $0x38] sm:$0xf] }
  0x16   :  { %967 = vmatpush.bf16.msra.mxu1 %v923_v13  ;;  %968 = vmatpush.bf16.msra.mxu2 %v923_v13  ;;  %v680_v8 = vor.u32 %v901_v5, %v677_v6  ;;  %v910_v9 = vld [vmem:[%s1326_s1 + $0x48] sm:$0xf0]  ;;  %v912_v10 = vld [vmem:[%s1326_s1 + $0x5c] sm:$0xf]  ;;  %v725_v11 = vld [vmem:[%s1326_s1 + $0x6c] sm:$0xf0] }
  0x17   :  { %496 = vmatpush.bf16.msra.mxu0 %v923_v13  ;;  %583 = vmatpush.bf16.msra.mxu3 %v947_v15  ;;  %v712_v12 = vor.u32 %v910_v9, %v711_v7  ;;  %v728_v13 = vor.u32 %v912_v10, %v725_v11  ;;  %v703_v14 = vld [vmem:[%s1326_s1 + $0x30] sm:$0xf]  ;;  %v909_v15 = vld [vmem:[%s1326_s1 + $0x40] sm:$0xf0]  ;;  %v915_v21 = vld [vmem:[%s1326_s1 + $0x70] sm:$0xf0] }
  0x18   :  { %154 = vperm.xlu0 %974, %v120_v40   ;;  %v704_v16 = vor.u32 %v909_v15, %v703_v14  ;;  %v917_v22 = vld [vmem:[%s1326_s1 + $0x84] sm:$0xf]  ;;  %v745_v23 = vld [vmem:[%s1326_s1 + $0x94] sm:$0xf0]  ;;  %v717_v30 = vld [vmem:[%s1326_s1 + $0x64] sm:$0xf0] }
  0x19   :  { %v723_v26 = vld [vmem:[%s1326_s1 + $0x58] sm:$0xf]  ;;  %v751_v32 = vld [vmem:[%s1326_s1 + $0x88] sm:$0xf]  ;;  %v919_v36 = vld [vmem:[%s1326_s1 + $0x90] sm:$0xf0] }
  0x1a   :  { %969 = vmatpush.bf16.msra.mxu1 %v922_v17  ;;  %970 = vmatpush.bf16.msra.mxu2 %v922_v17  ;;  %v637_v11 = vld [vmem:[%s1327_s3 + $0x8] sm:$0xff] }
  0x1b   :  { %497 = vmatpush.bf16.msra.mxu0 %v922_v17  ;;  %584 = vmatpush.bf16.msra.mxu3 %v946_v18  ;;  %v906_v17 = vld [vmem:[%s1326_s1 + $0x2c] sm:$0xf]  ;;  %v697_v18 = vld [vmem:[%s1326_s1 + $0x3c] sm:$0xf0] }
  0x1c   :  { %149 = vperm.xlu2 %976, %v119_v3   ;;  %v700_v20 = vor.u32 %v906_v17, %v697_v18 }
  0x1e   :  { %971 = vmatpush.bf16.msra.mxu1 %v921_v19  ;;  %972 = vmatpush.bf16.msra.mxu2 %v921_v19 }
  0x1f   :  { %498 = vmatpush.bf16.msra.mxu0 %v921_v19  ;;  %585 = vmatpush.bf16.msra.mxu3 %v945_v27  ;;  %v731_v19 = vld [vmem:[%s1326_s1 + $0x60] sm:$0xf]  ;;  %v914_v27 = vld [vmem:[%s1326_s1 + $0x68] sm:$0xf0] }
  0x21   :  { %504 = vmatmul.bf16.vlgmr.msra.gmra.mxu1 %v696_v28  ;;  %514 = vmatmul.bf16.vlgmr.msra.gmra.mxu2 %v736_v29  ;;  %v724_v28 = vor.u32 %v914_v27, %v723_v26  ;;  %v911_v29 = vld [vmem:[%s1326_s1 + $0x54] sm:$0xf] }
  0x22   :  { %549 = vmatpush.bf16.msrb.mxu2 %v944_v24  ;;  %520 = vmatpush.bf16.msrb.mxu1 %v936_v25  ;;  %v732_v24 = vor.u32 %v915_v21, %v731_v19  ;;  %v748_v25 = vor.u32 %v917_v22, %v745_v23  ;;  %v720_v31 = vor.u32 %v911_v29, %v717_v30  ;;  %v638_v23 = vld [vmem:[%s1327_s3 + $0x10] sm:$0xff] }
  0x23   :  { %611 = vmatpush.bf16.msrb.mxu0 %v956_v33  ;;  %586 = vmatmul.bf16.vlgmr.msra.gmra.mxu3 %v688_v38  ;;  %v920_v33 = vld [vmem:[%s1326_s1 + $0x98] sm:$0xf0] }
  0x24   :  { %499 = vmatmul.bf16.vlgmr.msra.gmra.mxu0 %v676_v37  ;;  %v916_v38 = vld [vmem:[%s1326_s1 + $0x7c] sm:$0xf] }
  0x26   :  { %550 = vmatpush.bf16.msrb.mxu2 %v943_v34  ;;  %521 = vmatpush.bf16.msrb.mxu1 %v935_v35  ;;  %v752_v34 = vor.u32 %v920_v33, %v751_v32  ;;  %v743_v35 = vld [vmem:[%s1326_s1 + $0x80] sm:$0xf] }
  0x27   :  { %612 = vmatpush.bf16.msrb.mxu0 %v955_v39  ;;  %v744_v37 = vor.u32 %v919_v36, %v743_v35  ;;  %v737_v39 = vld [vmem:[%s1326_s1 + $0x8c] sm:$0xf0]  ;;  %v639_v35 = vld [vmem:[%s1327_s3 + $0x18] sm:$0xff] }
  0x28   :  { %v740_v40 = vor.u32 %v916_v38, %v737_v39 }
  0x2a   :  { %551 = vmatpush.bf16.msrb.mxu2 %v942_v41  ;;  %522 = vmatpush.bf16.msrb.mxu1 %v934_v42 }
  0x2b   :  { %613 = vmatpush.bf16.msrb.mxu0 %v954_v43 }
  0x2e   :  { %552 = vmatpush.bf16.msrb.mxu2 %v941_v44  ;;  %523 = vmatpush.bf16.msrb.mxu1 %v933_v45 }
  0x2f   :  { %614 = vmatpush.bf16.msrb.mxu0 %v953_v48 }
  0x31   :  { %509 = vmatmul.bf16.gmra.mxu1 %v716_v52 }
  0x32   :  { %553 = vmatpush.bf16.msrb.mxu2 %v940_v49  ;;  %524 = vmatpush.bf16.msrb.mxu1 %v932_v50 }
  0x33   :  { %591 = vmatmul.bf16.gmra.mxu3 %v708_v59 }
  0x34   :  { %897 = vmatmul.msk.bf16.vlgmr.msrb.gmra.mxu0 %vm478_vm0, %v692_v58 }
  0x36   :  { %554 = vmatpush.bf16.msrb.mxu2 %v939_v56  ;;  %525 = vmatpush.bf16.msrb.mxu1 %v931_v57 }
  0x3a   :  { %555 = vmatpush.bf16.msrb.mxu2 %v938_v61  ;;  %526 = vmatpush.bf16.msrb.mxu1 %v930_v62  ;;  %v636_v62 = vld [vmem:[%s1327_s3] sm:$0xff] }
  0x3e   :  { %556 = vmatpush.bf16.msrb.mxu2 %v937_v63  ;;  %527 = vmatpush.bf16.msrb.mxu1 %v929_v0 }
  0x41   :  { %557 = vmatmul.bf16.vlgmr.msrb.gmra.mxu2 %v684_v4  ;;  %528 = vmatmul.bf16.vlgmr.msrb.gmra.mxu1 %v680_v8 }
  0x43   :  { %596 = vmatmul.bf16.gmra.mxu3 %v728_v13 }
  0x44   :  { %898 = vmatmul.msk.bf16.gmra.mxu0 %vm478_vm0, %v712_v12 }
  0x51   :  { %562 = vmatmul.bf16.gmra.mxu2 %v704_v16  ;;  %533 = vmatmul.bf16.gmra.mxu1 %v700_v20 }
  0x53   :  { %601 = vmatmul.bf16.gmra.mxu3 %v748_v25 }
  0x54   :  { %899 = vmatmul.msk.bf16.gmra.mxu0 %vm478_vm0, %v732_v24 }
  0x61   :  { %567 = vmatmul.bf16.gmra.mxu2 %v724_v28  ;;  %538 = vmatmul.bf16.gmra.mxu1 %v720_v31 }
  0x64   :  { %900 = vmatmul.msk.bf16.gmra.mxu0 %vm478_vm0, %v752_v34 }
  0x6e   :  { %v145_v28 = vpop.permute.xlu2 %144 }
  0x71   :  { %572 = vmatmul.bf16.gmra.mxu2 %v744_v37  ;;  %543 = vmatmul.bf16.gmra.mxu1 %v740_v40 }
  0x76   :  { %v135_v2 = vpop.permute.xlu1 %134 }
  0x7a   :  { %v125_v51 = vpop.permute.xlu0 %124 }
  0x7e   :  { %v140_v17 = vpop.permute.xlu1 %139 }
  0x82   :  { %v130_v59 = vpop.permute.xlu0 %129 }
  0x9e   :  { %v505_v41 = vpop.f32.mrf.mxu1 }
  0x9f   :  { %v506_v10 = vadd.f32 %v505_v41, %v135_v2 }
  0xa1   :  { %v500_v42 = vpop.f32.mrf.mxu0 }
  0xa2   :  { %v501_v52 = vadd.f32 %v500_v42, %v125_v51  ;;  %v640_v51 = vld [vmem:[%s1327_s3 + $0x20] sm:$0xff] }
  0xa4   :  { %v1259_v46 = vpop.f32.mrf.mxu2 }
  0xa6   :  { %v507_v43 = vpop.f32.mrf.mxu1  ;;  %v587_v47 = vpop.f32.mrf.mxu3 }
  0xa7   :  { %v508_v22 = vadd.f32 %v507_v43, %v140_v17  ;;  %v150_v43 = vpop.permute.xlu2 %149 }
  0xa9   :  { %v502_v44 = vpop.f32.mrf.mxu0 }
  0xaa   :  { %v503_v61 = vadd.f32 %v502_v44, %v130_v59  ;;  %v155_v59 = vpop.permute.xlu0 %154 }
  0xac   :  { %v1263_v50 = vpop.f32.mrf.mxu2 }
  0xae   :  { %v510_v45 = vpop.f32.mrf.mxu1  ;;  %v589_v55 = vpop.f32.mrf.mxu3 }
  0xaf   :  { %v511_v34 = vadd.f32 %v510_v45, %v145_v28 }
  0xb1   :  { %v616_v49 = vpop.f32.mrf.mxu0 }
  0xb6   :  { %v1261_v48 = vpop.f32.mrf.mxu1  ;;  %v592_v5 = vpop.f32.mrf.mxu3 }
  0xb9   :  { %v618_v57 = vpop.f32.mrf.mxu0 }
  0xbe   :  { %v529_v53 = vpop.f32.mrf.mxu1  ;;  %v594_v20 = vpop.f32.mrf.mxu3 }
  0xbf   :  { %v530_v54 = vadd.f32 %v529_v53, %v501_v52 }
  0xc1   :  { %v621_v8 = vpop.f32.mrf.mxu0 }
  0xc4   :  { %v558_v56 = vpop.f32.mrf.mxu2 }
  0xc5   :  { %v559_v58 = vadd.f32 %v558_v56, %v530_v54 }
  0xc6   :  { %v531_v0 = vpop.f32.mrf.mxu1  ;;  %v597_v36 = vpop.f32.mrf.mxu3 }
  0xc7   :  { %v588_v60 = vadd.f32 %v587_v47, %v559_v58  ;;  %v532_v1 = vadd.f32 %v531_v0, %v503_v61 }
  0xc9   :  { %v617_v63 = vadd.f32 %v616_v49, %v588_v60  ;;  %v623_v24 = vpop.f32.mrf.mxu0  ;;  %v513_v49 = vadd.f32 %v1261_v48, %v150_v43 }
  0xcb   :  { %v644_v3 = vadd.f32 %v636_v62, %v617_v63  ;;  %v516_v62 = vadd.f32 %v1259_v46, %v155_v59  ;;  %v641_v63 = vld [vmem:[%s1327_s3 + $0x28] sm:$0xff] }
  0xcc   :  { %v560_v4 = vpop.f32.mrf.mxu2 }
  0xcd   :  { %v652_v6 = vmax.f32 %v644_v3, 0.0  ;;  %v561_v7 = vadd.f32 %v560_v4, %v532_v1 }
  0xce   :  { %v534_v13 = vpop.f32.mrf.mxu1  ;;  %v599_v54 = vpop.f32.mrf.mxu3 }
  0xcf   :  { %661 = vst.msk [vmem:[%s1328_s4] sm:$0xff] %vm660_vm1, %v652_v6  ;;  %v590_v9 = vadd.f32 %v589_v55, %v561_v7  ;;  %v535_v14 = vadd.f32 %v534_v13, %v506_v10  ;;  %v160_v6 = vpop.permute.xlu1 %159 }
  0xd0   :  { %v518_v10 = vadd.f32 %v1263_v50, %v160_v6  ;;  %v643_v50 = vld [vmem:[%s1327_s3 + $0x38] sm:$0xff] }
  0xd1   :  { %v619_v12 = vadd.f32 %v618_v57, %v590_v9  ;;  %v626_v39 = vpop.f32.mrf.mxu0 }
  0xd3   :  { %v645_v15 = vadd.f32 %v637_v11, %v619_v12  ;;  %v642_v11 = vld [vmem:[%s1327_s3 + $0x30] sm:$0xff] }
  0xd4   :  { %v563_v16 = vpop.f32.mrf.mxu2 }
  0xd5   :  { %v653_v18 = vmax.f32 %v645_v15, 0.0  ;;  %v564_v19 = vadd.f32 %v563_v16, %v535_v14 }
  0xd6   :  { %v536_v26 = vpop.f32.mrf.mxu1  ;;  %v602_v4 = vpop.f32.mrf.mxu3 }
  0xd7   :  { %662 = vst.msk [vmem:[%s1328_s4 + $0x8] sm:$0xff] %vm660_vm1, %v653_v18  ;;  %v593_v21 = vadd.f32 %v592_v5, %v564_v19  ;;  %v537_v27 = vadd.f32 %v536_v26, %v508_v22 }
  0xd9   :  { %v622_v25 = vadd.f32 %v621_v8, %v593_v21  ;;  %v628_v57 = vpop.f32.mrf.mxu0 }
  0xdb   :  { %v646_v29 = vadd.f32 %v638_v23, %v622_v25 }
  0xdc   :  { %v565_v30 = vpop.f32.mrf.mxu2 }
  0xdd   :  { %v654_v31 = vmax.f32 %v646_v29, 0.0  ;;  %v566_v32 = vadd.f32 %v565_v30, %v537_v27 }
  0xde   :  { %v539_v38 = vpop.f32.mrf.mxu1  ;;  %v604_v19 = vpop.f32.mrf.mxu3 }
  0xdf   :  { %663 = vst.msk [vmem:[%s1328_s4 + $0x10] sm:$0xff] %vm660_vm1, %v654_v31  ;;  %v595_v33 = vadd.f32 %v594_v20, %v566_v32  ;;  %v540_v40 = vadd.f32 %v539_v38, %v511_v34 }
  0xe1   :  { %v624_v37 = vadd.f32 %v623_v24, %v595_v33  ;;  %v631_v9 = vpop.f32.mrf.mxu0 }
  0xe3   :  { %v647_v41 = vadd.f32 %v639_v35, %v624_v37 }
  0xe4   :  { %v568_v42 = vpop.f32.mrf.mxu2 }
  0xe5   :  { %v655_v44 = vmax.f32 %v647_v41, 0.0  ;;  %v569_v47 = vadd.f32 %v568_v42, %v540_v40 }
  0xe6   :  { %v541_v53 = vpop.f32.mrf.mxu1 }
  0xe7   :  { %664 = vst.msk [vmem:[%s1328_s4 + $0x18] sm:$0xff] %vm660_vm1, %v655_v44  ;;  %v598_v45 = vadd.f32 %v597_v36, %v569_v47  ;;  %v542_v55 = vadd.f32 %v541_v53, %v513_v49 }
  0xe9   :  { %v627_v52 = vadd.f32 %v626_v39, %v598_v45  ;;  %v633_v21 = vpop.f32.mrf.mxu0 }
  0xeb   :  { %v648_v56 = vadd.f32 %v640_v51, %v627_v52 }
  0xec   :  { %v570_v58 = vpop.f32.mrf.mxu2 }
  0xed   :  { %v656_v60 = vmax.f32 %v648_v56, 0.0  ;;  %v571_v61 = vadd.f32 %v570_v58, %v542_v55 }
  0xee   :  { %v544_v1 = vpop.f32.mrf.mxu1 }
  0xef   :  { %665 = vst.msk [vmem:[%s1328_s4 + $0x20] sm:$0xff] %vm660_vm1, %v656_v60  ;;  %v600_v48 = vadd.f32 %v599_v54, %v571_v61  ;;  %v545_v2 = vadd.f32 %v544_v1, %v516_v62 }
  0xf1   :  { %v629_v0 = vadd.f32 %v628_v57, %v600_v48 }
  0xf3   :  { %v649_v3 = vadd.f32 %v641_v63, %v629_v0 }
  0xf4   :  { %v573_v5 = vpop.f32.mrf.mxu2 }
  0xf5   :  { %v657_v7 = vmax.f32 %v649_v3, 0.0  ;;  %v574_v8 = vadd.f32 %v573_v5, %v545_v2 }
  0xf6   :  { %v546_v13 = vpop.f32.mrf.mxu1 }
  0xf7   :  { %666 = vst.msk [vmem:[%s1328_s4 + $0x28] sm:$0xff] %vm660_vm1, %v657_v7  ;;  %v603_v46 = vadd.f32 %v602_v4, %v574_v8  ;;  %v547_v14 = vadd.f32 %v546_v13, %v518_v10 }
  0xf9   :  { %v632_v12 = vadd.f32 %v631_v9, %v603_v46 }
  0xfb   :  { %v650_v15 = vadd.f32 %v642_v11, %v632_v12 }
  0xfc   :  { %v575_v16 = vpop.f32.mrf.mxu2 }
  0xfd   :  { %v658_v17 = vmax.f32 %v650_v15, 0.0  ;;  %v576_v18 = vadd.f32 %v575_v16, %v547_v14 }
  0xff   :  { %667 = vst.msk [vmem:[%s1328_s4 + $0x30] sm:$0xff] %vm660_vm1, %v658_v17  ;;  %v605_v20 = vadd.f32 %v604_v19, %v576_v18 }
 0x101   :  { %v634_v22 = vadd.f32 %v633_v21, %v605_v20 }
 0x103   :  { %v651_v23 = vadd.f32 %v643_v50, %v634_v22 }
 0x105   :  { %v659_v24 = vmax.f32 %v651_v23, 0.0 }
 0x107   :  { %668 = vst.msk [vmem:[%s1328_s4 + $0x38] sm:$0xff] %vm660_vm1, %v659_v24 }

// kernel: urresnet_forward.43
= control target key start
LH: loop header
LB: loop body
LE: loop exit
PB: predicated region body
PF: predicated region fallthrough
CT: control target
= control target key end

     0   :  { %v546_v0 = vmov 0   ;;  %v392_v52 = vlaneseq  ;;  %vm458_vm0 = vcmask 1041409   ;;  %vm460_vm1 = vcmask 1042434   ;;  %s915_s0 = inlined_call_operand.vmem [shape: f32[64,2,1], index: 0, kind: input, shape index: {}]   ;;  %s916_s1 = inlined_call_operand.vmem [shape: f32[64,2], index: 1, kind: output, shape index: {}]  }
   0x1   :  { %545 = vset.pattern.permute.xlu2 %v546_v0  ;;  %544 = vset.pattern.permute.xlu1 %v546_v0  ;;  %v12_v1 = vld [vmem:[%s915_s0 + $0x8] sm:$0x3]  ;;  %v10_v2 = vld [vmem:[%s915_s0 + $0x4] sm:$0x3]  ;;  %v8_v3 = vld [vmem:[%s915_s0] sm:$0x3] }
   0x2   :  { %543 = vset.pattern.permute.xlu0 %v546_v0  ;;  %213 = vperm.xlu2 %545, %v12_v1   ;;  %v13_v4 = vld [vmem:[%s915_s0 + $0xa] sm:$0x3]  ;;  %v11_v5 = vld [vmem:[%s915_s0 + $0x6] sm:$0x3]  ;;  %v9_v6 = vld [vmem:[%s915_s0 + $0x2] sm:$0x3] }
   0x3   :  { %207 = vperm.xlu1 %544, %v10_v2   ;;  %201 = vperm.xlu0 %543, %v8_v3   ;;  %v16_v7 = vld [vmem:[%s915_s0 + $0x10] sm:$0x3]  ;;  %v15_v8 = vld [vmem:[%s915_s0 + $0xe] sm:$0x3]  ;;  %v14_v9 = vld [vmem:[%s915_s0 + $0xc] sm:$0x3] }
   0x4   :  { %v19_v10 = vld [vmem:[%s915_s0 + $0x16] sm:$0x3]  ;;  %v18_v11 = vld [vmem:[%s915_s0 + $0x14] sm:$0x3]  ;;  %v17_v12 = vld [vmem:[%s915_s0 + $0x12] sm:$0x3] }
   0x5   :  { %v22_v13 = vld [vmem:[%s915_s0 + $0x1c] sm:$0x3]  ;;  %v21_v14 = vld [vmem:[%s915_s0 + $0x1a] sm:$0x3]  ;;  %v20_v15 = vld [vmem:[%s915_s0 + $0x18] sm:$0x3] }
   0x6   :  { %v25_v16 = vld [vmem:[%s915_s0 + $0x22] sm:$0x3]  ;;  %v24_v17 = vld [vmem:[%s915_s0 + $0x20] sm:$0x3]  ;;  %v23_v18 = vld [vmem:[%s915_s0 + $0x1e] sm:$0x3] }
   0x7   :  { %v28_v19 = vld [vmem:[%s915_s0 + $0x28] sm:$0x3]  ;;  %v27_v20 = vld [vmem:[%s915_s0 + $0x26] sm:$0x3]  ;;  %v26_v21 = vld [vmem:[%s915_s0 + $0x24] sm:$0x3] }
   0x8   :  { %v31_v22 = vld [vmem:[%s915_s0 + $0x2e] sm:$0x3]  ;;  %v30_v23 = vld [vmem:[%s915_s0 + $0x2c] sm:$0x3]  ;;  %v29_v24 = vld [vmem:[%s915_s0 + $0x2a] sm:$0x3] }
   0x9   :  { %v34_v25 = vld [vmem:[%s915_s0 + $0x34] sm:$0x3]  ;;  %v33_v26 = vld [vmem:[%s915_s0 + $0x32] sm:$0x3]  ;;  %v32_v27 = vld [vmem:[%s915_s0 + $0x30] sm:$0x3] }
   0xa   :  { %216 = vperm.xlu2 %545, %v13_v4   ;;  %v37_v28 = vld [vmem:[%s915_s0 + $0x3a] sm:$0x3]  ;;  %v36_v29 = vld [vmem:[%s915_s0 + $0x38] sm:$0x3]  ;;  %v35_v30 = vld [vmem:[%s915_s0 + $0x36] sm:$0x3] }
   0xb   :  { %210 = vperm.xlu1 %544, %v11_v5   ;;  %204 = vperm.xlu0 %543, %v9_v6   ;;  %v40_v31 = vld [vmem:[%s915_s0 + $0x40] sm:$0x3]  ;;  %v39_v32 = vld [vmem:[%s915_s0 + $0x3e] sm:$0x3]  ;;  %v38_v33 = vld [vmem:[%s915_s0 + $0x3c] sm:$0x3] }
   0xc   :  { %v43_v34 = vld [vmem:[%s915_s0 + $0x46] sm:$0x3]  ;;  %v42_v35 = vld [vmem:[%s915_s0 + $0x44] sm:$0x3]  ;;  %v41_v36 = vld [vmem:[%s915_s0 + $0x42] sm:$0x3] }
   0xd   :  { %v46_v38 = vld [vmem:[%s915_s0 + $0x4c] sm:$0x3]  ;;  %v45_v39 = vld [vmem:[%s915_s0 + $0x4a] sm:$0x3]  ;;  %v44_v40 = vld [vmem:[%s915_s0 + $0x48] sm:$0x3] }
   0xe   :  { %v49_v42 = vld [vmem:[%s915_s0 + $0x52] sm:$0x3]  ;;  %v48_v43 = vld [vmem:[%s915_s0 + $0x50] sm:$0x3]  ;;  %v47_v44 = vld [vmem:[%s915_s0 + $0x4e] sm:$0x3] }
   0xf   :  { %v52_v46 = vld [vmem:[%s915_s0 + $0x58] sm:$0x3]  ;;  %v51_v47 = vld [vmem:[%s915_s0 + $0x56] sm:$0x3]  ;;  %v50_v48 = vld [vmem:[%s915_s0 + $0x54] sm:$0x3] }
  0x10   :  { %v55_v53 = vld [vmem:[%s915_s0 + $0x5e] sm:$0x3]  ;;  %v54_v54 = vld [vmem:[%s915_s0 + $0x5c] sm:$0x3]  ;;  %v53_v55 = vld [vmem:[%s915_s0 + $0x5a] sm:$0x3] }
  0x11   :  { %v705_v56 = vand.u32 127, %v392_v52  ;;  %vm462_vm2 = vcmask 1043459   ;;  %v58_v63 = vld [vmem:[%s915_s0 + $0x64] sm:$0x3]  ;;  %v57_v2 = vld [vmem:[%s915_s0 + $0x62] sm:$0x3] }
  0x12   :  { %225 = vperm.xlu2 %545, %v16_v7   ;;  %v56_v3 = vld [vmem:[%s915_s0 + $0x60] sm:$0x3]  ;;  %vm464_vm3 = vcmask 1044484   ;;  %vm466_vm4 = vcmask 1045509   ;;  %vm468_vm5 = vcmask 1046534   ;;  %vm470_vm6 = vcmask 1047559  }
  0x13   :  { %222 = vperm.xlu1 %544, %v15_v8   ;;  %219 = vperm.xlu0 %543, %v14_v9   ;;  %vm529_vm7 = vcmask 15360  }
  0x1a   :  { %234 = vperm.xlu2 %545, %v19_v10  }
  0x1b   :  { %231 = vperm.xlu1 %544, %v18_v11   ;;  %228 = vperm.xlu0 %543, %v17_v12  }
  0x22   :  { %243 = vperm.xlu2 %545, %v22_v13  }
  0x23   :  { %240 = vperm.xlu1 %544, %v21_v14   ;;  %237 = vperm.xlu0 %543, %v20_v15   ;;  %v61_v15 = vld [vmem:[%s915_s0 + $0x6a] sm:$0x3] }
  0x2a   :  { %252 = vperm.xlu2 %545, %v25_v16  }
  0x2b   :  { %249 = vperm.xlu1 %544, %v24_v17   ;;  %246 = vperm.xlu0 %543, %v23_v18   ;;  %v60_v17 = vld [vmem:[%s915_s0 + $0x68] sm:$0x3]  ;;  %v59_v18 = vld [vmem:[%s915_s0 + $0x66] sm:$0x3] }
  0x32   :  { %261 = vperm.xlu2 %545, %v28_v19  }
  0x33   :  { %258 = vperm.xlu1 %544, %v27_v20   ;;  %255 = vperm.xlu0 %543, %v26_v21  }
  0x3a   :  { %270 = vperm.xlu2 %545, %v31_v22  }
  0x3b   :  { %267 = vperm.xlu1 %544, %v30_v23   ;;  %264 = vperm.xlu0 %543, %v29_v24   ;;  %v64_v24 = vld [vmem:[%s915_s0 + $0x70] sm:$0x3] }
  0x42   :  { %279 = vperm.xlu2 %545, %v34_v25  }
  0x43   :  { %276 = vperm.xlu1 %544, %v33_v26   ;;  %273 = vperm.xlu0 %543, %v32_v27   ;;  %v63_v26 = vld [vmem:[%s915_s0 + $0x6e] sm:$0x3]  ;;  %v62_v27 = vld [vmem:[%s915_s0 + $0x6c] sm:$0x3] }
  0x4a   :  { %288 = vperm.xlu2 %545, %v37_v28  }
  0x4b   :  { %285 = vperm.xlu1 %544, %v36_v29   ;;  %282 = vperm.xlu0 %543, %v35_v30  }
  0x52   :  { %297 = vperm.xlu2 %545, %v40_v31  }
  0x53   :  { %294 = vperm.xlu1 %544, %v39_v32   ;;  %291 = vperm.xlu0 %543, %v38_v33  }
  0x5a   :  { %306 = vperm.xlu2 %545, %v43_v34  }
  0x5b   :  { %303 = vperm.xlu1 %544, %v42_v35   ;;  %300 = vperm.xlu0 %543, %v41_v36   ;;  %v67_v35 = vld [vmem:[%s915_s0 + $0x76] sm:$0x3] }
  0x5c   :  { %v214_v37 = vpop.permute.xlu2 %213 }
  0x5d   :  { %v398_v5 = vperm.slane %v214_v37, %v705_v56 }
  0x62   :  { %315 = vperm.xlu2 %545, %v46_v38  }
  0x63   :  { %312 = vperm.xlu1 %544, %v45_v39   ;;  %309 = vperm.xlu0 %543, %v44_v40   ;;  %v66_v39 = vld [vmem:[%s915_s0 + $0x74] sm:$0x3]  ;;  %v65_v40 = vld [vmem:[%s915_s0 + $0x72] sm:$0x3] }
  0x64   :  { %v217_v41 = vpop.permute.xlu2 %216 }
  0x65   :  { %v399_v9 = vperm.slane %v217_v41, %v705_v56 }
  0x6a   :  { %324 = vperm.xlu2 %545, %v49_v42  }
  0x6b   :  { %321 = vperm.xlu1 %544, %v48_v43   ;;  %318 = vperm.xlu0 %543, %v47_v44  }
  0x6c   :  { %v683_v45 = vpop.permute.xlu2 %225 }
  0x6d   :  { %v402_v25 = vperm.slane %v683_v45, %v705_v56 }
  0x72   :  { %333 = vperm.xlu2 %545, %v52_v46  }
  0x73   :  { %330 = vperm.xlu1 %544, %v51_v47   ;;  %327 = vperm.xlu0 %543, %v50_v48   ;;  %v70_v48 = vld [vmem:[%s915_s0 + $0x7c] sm:$0x3] }
  0x74   :  { %v694_v49 = vpop.permute.xlu2 %234 }
  0x75   :  { %v208_v50 = vpop.permute.xlu1 %207  ;;  %v202_v51 = vpop.permute.xlu0 %201  ;;  %v405_v33 = vperm.slane %v694_v49, %v705_v56 }
  0x76   :  { %v394_v60 = vperm.slane %v202_v51, %v705_v56  ;;  %v396_v62 = vperm.slane %v208_v50, %v705_v56  ;;  %v69_v50 = vld [vmem:[%s915_s0 + $0x7a] sm:$0x3]  ;;  %v68_v51 = vld [vmem:[%s915_s0 + $0x78] sm:$0x3] }
  0x7a   :  { %342 = vperm.xlu2 %545, %v55_v53  }
  0x7b   :  { %339 = vperm.xlu1 %544, %v54_v54   ;;  %336 = vperm.xlu0 %543, %v53_v55  }
  0x7c   :  { %v707_v57 = vpop.permute.xlu2 %243 }
  0x7d   :  { %v211_v58 = vpop.permute.xlu1 %210  ;;  %v205_v59 = vpop.permute.xlu0 %204  ;;  %v408_v43 = vperm.slane %v707_v57, %v705_v56 }
  0x7e   :  { %v395_v61 = vperm.slane %v205_v59, %v705_v56  ;;  %v397_v0 = vperm.slane %v211_v58, %v705_v56 }
  0x80   :  { %v459_v1 = vsel %vm458_vm0, %v395_v61, %v394_v60  ;;  %v71_v61 = vld [vmem:[%s915_s0 + $0x7e] sm:$0x3] }
  0x81   :  { %v461_v4 = vsel %vm460_vm1, %v396_v62, %v459_v1 }
  0x82   :  { %v463_v6 = vsel %vm462_vm2, %v397_v0, %v461_v4  ;;  %351 = vperm.xlu2 %545, %v58_v63  }
  0x83   :  { %348 = vperm.xlu1 %544, %v57_v2   ;;  %345 = vperm.xlu0 %543, %v56_v3   ;;  %v465_v8 = vsel %vm464_vm3, %v398_v5, %v463_v6 }
  0x84   :  { %v726_v7 = vpop.permute.xlu2 %252  ;;  %v467_v14 = vsel %vm466_vm4, %v399_v9, %v465_v8 }
  0x85   :  { %v223_v10 = vpop.permute.xlu1 %222  ;;  %v220_v11 = vpop.permute.xlu0 %219  ;;  %v411_v57 = vperm.slane %v726_v7, %v705_v56 }
  0x86   :  { %v401_v12 = vperm.slane %v223_v10, %v705_v56  ;;  %v400_v13 = vperm.slane %v220_v11, %v705_v56 }
  0x88   :  { %v469_v16 = vsel %vm468_vm5, %v400_v13, %v467_v14 }
  0x89   :  { %v471_v19 = vsel %vm470_vm6, %v401_v12, %v469_v16 }
  0x8a   :  { %530 = vst.msk [vmem:[%s916_s1] sm:$0xff] %vm529_vm7, %v471_v19  ;;  %360 = vperm.xlu2 %545, %v61_v15  }
  0x8b   :  { %357 = vperm.xlu1 %544, %v60_v17   ;;  %354 = vperm.xlu0 %543, %v59_v18  }
  0x8c   :  { %v262_v22 = vpop.permute.xlu2 %261 }
  0x8d   :  { %v232_v20 = vpop.permute.xlu1 %231  ;;  %v229_v21 = vpop.permute.xlu0 %228  ;;  %v414_v1 = vperm.slane %v262_v22, %v705_v56 }
  0x8e   :  { %v403_v23 = vperm.slane %v229_v21, %v705_v56  ;;  %v404_v28 = vperm.slane %v232_v20, %v705_v56 }
  0x90   :  { %v472_v29 = vsel %vm458_vm0, %v403_v23, %v402_v25 }
  0x91   :  { %v473_v30 = vsel %vm460_vm1, %v404_v28, %v472_v29 }
  0x92   :  { %369 = vperm.xlu2 %545, %v64_v24   ;;  %v474_v38 = vsel %vm462_vm2, %v405_v33, %v473_v30 }
  0x93   :  { %366 = vperm.xlu1 %544, %v63_v26   ;;  %363 = vperm.xlu0 %543, %v62_v27  }
  0x94   :  { %v271_v36 = vpop.permute.xlu2 %270 }
  0x95   :  { %v241_v31 = vpop.permute.xlu1 %240  ;;  %v238_v32 = vpop.permute.xlu0 %237  ;;  %v417_v7 = vperm.slane %v271_v36, %v705_v56 }
  0x96   :  { %v406_v34 = vperm.slane %v238_v32, %v705_v56  ;;  %v407_v37 = vperm.slane %v241_v31, %v705_v56 }
  0x98   :  { %v475_v41 = vsel %vm464_vm3, %v406_v34, %v474_v38 }
  0x99   :  { %v476_v42 = vsel %vm466_vm4, %v407_v37, %v475_v41 }
  0x9a   :  { %378 = vperm.xlu2 %545, %v67_v35   ;;  %v477_v47 = vsel %vm468_vm5, %v408_v43, %v476_v42 }
  0x9b   :  { %375 = vperm.xlu1 %544, %v66_v39   ;;  %372 = vperm.xlu0 %543, %v65_v40  }
  0x9c   :  { %v280_v52 = vpop.permute.xlu2 %279 }
  0x9d   :  { %v250_v44 = vpop.permute.xlu1 %249  ;;  %v247_v45 = vpop.permute.xlu0 %246  ;;  %v420_v19 = vperm.slane %v280_v52, %v705_v56 }
  0x9e   :  { %v409_v46 = vperm.slane %v247_v45, %v705_v56  ;;  %v410_v53 = vperm.slane %v250_v44, %v705_v56 }
  0xa0   :  { %v478_v49 = vsel %vm470_vm6, %v409_v46, %v477_v47  ;;  %v479_v59 = vsel %vm458_vm0, %v411_v57, %v410_v53 }
  0xa1   :  { %531 = vst.msk [vmem:[%s916_s1 + $0x8] sm:$0xff] %vm529_vm7, %v478_v49 }
  0xa2   :  { %387 = vperm.xlu2 %545, %v70_v48  }
  0xa3   :  { %384 = vperm.xlu1 %544, %v69_v50   ;;  %381 = vperm.xlu0 %543, %v68_v51  }
  0xa4   :  { %v289_v63 = vpop.permute.xlu2 %288 }
  0xa5   :  { %v259_v54 = vpop.permute.xlu1 %258  ;;  %v256_v55 = vpop.permute.xlu0 %255  ;;  %v423_v26 = vperm.slane %v289_v63, %v705_v56 }
  0xa6   :  { %v412_v58 = vperm.slane %v256_v55, %v705_v56  ;;  %v413_v60 = vperm.slane %v259_v54, %v705_v56 }
  0xa8   :  { %v480_v62 = vsel %vm460_vm1, %v412_v58, %v479_v59 }
  0xa9   :  { %v481_v0 = vsel %vm462_vm2, %v413_v60, %v480_v62 }
  0xaa   :  { %v482_v6 = vsel %vm464_vm3, %v414_v1, %v481_v0 }
  0xab   :  { %390 = vperm.xlu0 %543, %v71_v61  }
  0xac   :  { %v298_v13 = vpop.permute.xlu2 %297 }
  0xad   :  { %v268_v2 = vpop.permute.xlu1 %267  ;;  %v265_v3 = vpop.permute.xlu0 %264  ;;  %v426_v38 = vperm.slane %v298_v13, %v705_v56 }
  0xae   :  { %v416_v4 = vperm.slane %v268_v2, %v705_v56  ;;  %v415_v5 = vperm.slane %v265_v3, %v705_v56 }
  0xb0   :  { %v483_v8 = vsel %vm466_vm4, %v415_v5, %v482_v6 }
  0xb1   :  { %v484_v9 = vsel %vm468_vm5, %v416_v4, %v483_v8 }
  0xb2   :  { %v485_v10 = vsel %vm470_vm6, %v417_v7, %v484_v9 }
  0xb3   :  { %532 = vst.msk [vmem:[%s916_s1 + $0x10] sm:$0xff] %vm529_vm7, %v485_v10 }
  0xb4   :  { %v307_v21 = vpop.permute.xlu2 %306 }
  0xb5   :  { %v277_v11 = vpop.permute.xlu1 %276  ;;  %v274_v12 = vpop.permute.xlu0 %273  ;;  %v429_v45 = vperm.slane %v307_v21, %v705_v56 }
  0xb6   :  { %v419_v14 = vperm.slane %v277_v11, %v705_v56  ;;  %v418_v15 = vperm.slane %v274_v12, %v705_v56 }
  0xb8   :  { %v486_v16 = vsel %vm458_vm0, %v419_v14, %v418_v15 }
  0xb9   :  { %v487_v23 = vsel %vm460_vm1, %v420_v19, %v486_v16 }
  0xbc   :  { %v316_v34 = vpop.permute.xlu2 %315 }
  0xbd   :  { %v286_v17 = vpop.permute.xlu1 %285  ;;  %v283_v18 = vpop.permute.xlu0 %282  ;;  %v432_v51 = vperm.slane %v316_v34, %v705_v56 }
  0xbe   :  { %v421_v20 = vperm.slane %v283_v18, %v705_v56  ;;  %v422_v22 = vperm.slane %v286_v17, %v705_v56 }
  0xc0   :  { %v488_v24 = vsel %vm462_vm2, %v421_v20, %v487_v23 }
  0xc1   :  { %v489_v25 = vsel %vm464_vm3, %v422_v22, %v488_v24 }
  0xc2   :  { %v490_v31 = vsel %vm466_vm4, %v423_v26, %v489_v25 }
  0xc4   :  { %v325_v41 = vpop.permute.xlu2 %324 }
  0xc5   :  { %v295_v27 = vpop.permute.xlu1 %294  ;;  %v292_v28 = vpop.permute.xlu0 %291  ;;  %v435_v62 = vperm.slane %v325_v41, %v705_v56 }
  0xc6   :  { %v425_v29 = vperm.slane %v295_v27, %v705_v56  ;;  %v424_v30 = vperm.slane %v292_v28, %v705_v56 }
  0xc8   :  { %v491_v32 = vsel %vm468_vm5, %v424_v30, %v490_v31 }
  0xc9   :  { %v492_v33 = vsel %vm470_vm6, %v425_v29, %v491_v32 }
  0xca   :  { %533 = vst.msk [vmem:[%s916_s1 + $0x18] sm:$0xff] %vm529_vm7, %v492_v33 }
  0xcc   :  { %v334_v54 = vpop.permute.xlu2 %333 }
  0xcd   :  { %v304_v35 = vpop.permute.xlu1 %303  ;;  %v301_v36 = vpop.permute.xlu0 %300  ;;  %v438_v5 = vperm.slane %v334_v54, %v705_v56 }
  0xce   :  { %v427_v37 = vperm.slane %v301_v36, %v705_v56  ;;  %v428_v39 = vperm.slane %v304_v35, %v705_v56 }
  0xd0   :  { %v493_v40 = vsel %vm458_vm0, %v427_v37, %v426_v38 }
  0xd1   :  { %v494_v42 = vsel %vm460_vm1, %v428_v39, %v493_v40 }
  0xd2   :  { %v495_v48 = vsel %vm462_vm2, %v429_v45, %v494_v42 }
  0xd4   :  { %v343_v0 = vpop.permute.xlu2 %342 }
  0xd5   :  { %v313_v43 = vpop.permute.xlu1 %312  ;;  %v310_v44 = vpop.permute.xlu0 %309  ;;  %v441_v11 = vperm.slane %v343_v0, %v705_v56 }
  0xd6   :  { %v430_v46 = vperm.slane %v310_v44, %v705_v56  ;;  %v431_v47 = vperm.slane %v313_v43, %v705_v56 }
  0xd8   :  { %v496_v49 = vsel %vm464_vm3, %v430_v46, %v495_v48 }
  0xd9   :  { %v497_v50 = vsel %vm466_vm4, %v431_v47, %v496_v49 }
  0xda   :  { %v498_v57 = vsel %vm468_vm5, %v432_v51, %v497_v50 }
  0xdc   :  { %v352_v14 = vpop.permute.xlu2 %351 }
  0xdd   :  { %v322_v52 = vpop.permute.xlu1 %321  ;;  %v319_v53 = vpop.permute.xlu0 %318  ;;  %v444_v24 = vperm.slane %v352_v14, %v705_v56 }
  0xde   :  { %v433_v55 = vperm.slane %v319_v53, %v705_v56  ;;  %v434_v59 = vperm.slane %v322_v52, %v705_v56 }
  0xe0   :  { %v499_v58 = vsel %vm470_vm6, %v433_v55, %v498_v57  ;;  %v500_v1 = vsel %vm458_vm0, %v435_v62, %v434_v59 }
  0xe1   :  { %534 = vst.msk [vmem:[%s916_s1 + $0x20] sm:$0xff] %vm529_vm7, %v499_v58 }
  0xe4   :  { %v361_v20 = vpop.permute.xlu2 %360 }
  0xe5   :  { %v331_v60 = vpop.permute.xlu1 %330  ;;  %v328_v61 = vpop.permute.xlu0 %327  ;;  %v447_v30 = vperm.slane %v361_v20, %v705_v56 }
  0xe6   :  { %v436_v63 = vperm.slane %v328_v61, %v705_v56  ;;  %v437_v2 = vperm.slane %v331_v60, %v705_v56 }
  0xe8   :  { %v501_v3 = vsel %vm460_vm1, %v436_v63, %v500_v1 }
  0xe9   :  { %v502_v4 = vsel %vm462_vm2, %v437_v2, %v501_v3 }
  0xea   :  { %v503_v10 = vsel %vm464_vm3, %v438_v5, %v502_v4 }
  0xec   :  { %v370_v33 = vpop.permute.xlu2 %369 }
  0xed   :  { %v340_v6 = vpop.permute.xlu1 %339  ;;  %v337_v7 = vpop.permute.xlu0 %336  ;;  %v450_v42 = vperm.slane %v370_v33, %v705_v56 }
  0xee   :  { %v440_v8 = vperm.slane %v340_v6, %v705_v56  ;;  %v439_v9 = vperm.slane %v337_v7, %v705_v56 }
  0xf0   :  { %v504_v12 = vsel %vm466_vm4, %v439_v9, %v503_v10 }
  0xf1   :  { %v505_v13 = vsel %vm468_vm5, %v440_v8, %v504_v12 }
  0xf2   :  { %v506_v15 = vsel %vm470_vm6, %v441_v11, %v505_v13 }
  0xf3   :  { %535 = vst.msk [vmem:[%s916_s1 + $0x28] sm:$0xff] %vm529_vm7, %v506_v15 }
  0xf4   :  { %v379_v43 = vpop.permute.xlu2 %378 }
  0xf5   :  { %v349_v16 = vpop.permute.xlu1 %348  ;;  %v346_v17 = vpop.permute.xlu0 %345  ;;  %v453_v49 = vperm.slane %v379_v43, %v705_v56 }
  0xf6   :  { %v443_v18 = vperm.slane %v349_v16, %v705_v56  ;;  %v442_v19 = vperm.slane %v346_v17, %v705_v56 }
  0xf8   :  { %v507_v21 = vsel %vm458_vm0, %v443_v18, %v442_v19 }
  0xf9   :  { %v508_v27 = vsel %vm460_vm1, %v444_v24, %v507_v21 }
  0xfc   :  { %v388_v54 = vpop.permute.xlu2 %387 }
  0xfd   :  { %v358_v22 = vpop.permute.xlu1 %357  ;;  %v355_v23 = vpop.permute.xlu0 %354  ;;  %v456_v57 = vperm.slane %v388_v54, %v705_v56 }
  0xfe   :  { %v445_v25 = vperm.slane %v355_v23, %v705_v56  ;;  %v446_v26 = vperm.slane %v358_v22, %v705_v56 }
 0x100   :  { %v509_v28 = vsel %vm462_vm2, %v445_v25, %v508_v27 }
 0x101   :  { %v510_v29 = vsel %vm464_vm3, %v446_v26, %v509_v28 }
 0x102   :  { %v511_v36 = vsel %vm466_vm4, %v447_v30, %v510_v29 }
 0x105   :  { %v367_v31 = vpop.permute.xlu1 %366  ;;  %v364_v32 = vpop.permute.xlu0 %363 }
 0x106   :  { %v449_v34 = vperm.slane %v367_v31, %v705_v56  ;;  %v448_v35 = vperm.slane %v364_v32, %v705_v56 }
 0x108   :  { %v512_v37 = vsel %vm468_vm5, %v448_v35, %v511_v36 }
 0x109   :  { %v513_v38 = vsel %vm470_vm6, %v449_v34, %v512_v37 }
 0x10a   :  { %536 = vst.msk [vmem:[%s916_s1 + $0x30] sm:$0xff] %vm529_vm7, %v513_v38 }
 0x10d   :  { %v376_v39 = vpop.permute.xlu1 %375  ;;  %v373_v40 = vpop.permute.xlu0 %372 }
 0x10e   :  { %v451_v41 = vperm.slane %v373_v40, %v705_v56  ;;  %v452_v44 = vperm.slane %v376_v39, %v705_v56 }
 0x110   :  { %v514_v45 = vsel %vm458_vm0, %v451_v41, %v450_v42 }
 0x111   :  { %v515_v46 = vsel %vm460_vm1, %v452_v44, %v514_v45 }
 0x112   :  { %v516_v52 = vsel %vm462_vm2, %v453_v49, %v515_v46 }
 0x115   :  { %v385_v47 = vpop.permute.xlu1 %384  ;;  %v382_v48 = vpop.permute.xlu0 %381 }
 0x116   :  { %v454_v50 = vperm.slane %v382_v48, %v705_v56  ;;  %v455_v51 = vperm.slane %v385_v47, %v705_v56 }
 0x118   :  { %v517_v53 = vsel %vm464_vm3, %v454_v50, %v516_v52 }
 0x119   :  { %v518_v55 = vsel %vm466_vm4, %v455_v51, %v517_v53 }
 0x11a   :  { %v519_v60 = vsel %vm468_vm5, %v456_v57, %v518_v55 }
 0x11d   :  { %v391_v58 = vpop.permute.xlu0 %390 }
 0x11e   :  { %v457_v59 = vperm.slane %v391_v58, %v705_v56 }
 0x120   :  { %v520_v61 = vsel %vm470_vm6, %v457_v59, %v519_v60 }
 0x121   :  { %537 = vst.msk [vmem:[%s916_s1 + $0x38] sm:$0xff] %vm529_vm7, %v520_v61 }

</bundles_post_ra>
